<compile_context>
chip_gen: v7x
topology: tpu7x:2x2x1
jax: 0.10.0
libtpu: 0.0.40
codegen_flags: <defaults>
</compile_context>

<pallas_src>
import jax
import jax.numpy as jnp
from jax.experimental import pallas as pl
from jax.experimental.pallas import tpu as pltpu

FEAT = 48            # SwinUNETR feature_size
MLP_HIDDEN = 96
NUM_CLASSES = 2
PATCH = 2            # patch-embed kernel = stride = 2
IN_CH = 1
K_IN = PATCH ** 3 * IN_CH   # flattened 2x2x2 receptive field = 8
LN_EPS = 1e-5


def _seg_kernel(patch_ref, wet_ref, be_ref, w1t_ref, b1_ref,
                w2ht_ref, wht_ref, bh_ref, out_ref):
    """Fused patch-embed -> LayerNorm -> MLP -> head, feature-major (lanes = tokens)."""
    x = patch_ref[0]                                                    # (K_IN, tm) bf16

    # Patch embedding (Conv3d k=2,s=2 as matmul): (FEAT, K_IN) @ (K_IN, tm) -> f32
    feat = jnp.dot(wet_ref[...], x, preferred_element_type=jnp.float32)
    feat = feat + be_ref[...]                                           # (FEAT, tm)

    # LayerNorm over the feature (sublane) axis; gamma/beta are folded into w1/b1.
    mu = jnp.mean(feat, axis=0, keepdims=True)
    var = jnp.mean((feat - mu) * (feat - mu), axis=0, keepdims=True)
    n0 = (feat - mu) * jax.lax.rsqrt(var + LN_EPS)                      # (FEAT, tm) f32

    # MLP up-projection (LN affine folded in): (HID, FEAT) @ (FEAT, tm)
    h = jnp.dot(w1t_ref[...], n0.astype(w1t_ref.dtype),
                preferred_element_type=jnp.float32) + b1_ref[...]
    # TODO(synk): torch.nn.GELU default is exact erf; tanh approximation used here.
    h = jax.nn.gelu(h, approximate=True)                                # (HID, tm) f32

    # Head folded through the MLP output + residual:
    #   logits = Wh^T @ feat + (W2 @ Wh)^T @ gelu(h) + (b2 @ Wh + bh)
    logits = jnp.dot(wht_ref[...], feat.astype(wht_ref.dtype),
                     preferred_element_type=jnp.float32)
    logits = logits + jnp.dot(w2ht_ref[...], h.astype(w2ht_ref.dtype),
                              preferred_element_type=jnp.float32)
    logits = logits + bh_ref[...]                                       # (NC, tm) f32

    out_ref[0, :, :] = logits.astype(out_ref.dtype)


def _run_fused_kernel(patches, kparams, *, tm=1024):
    """patches: (B, K_IN, Mb) bf16 -> logits (B, NUM_CLASSES, Mb) f32."""
    B, k_in, mb = patches.shape
    assert k_in == K_IN

    # Largest tile <= tm that divides Mb.  After padding to 32, Mb is a multiple of
    # 4096, so this normally returns tm unchanged (grid stays >= 2 and even).
    tile = min(tm, mb)
    while mb % tile != 0:
        tile //= 2
    assert tile >= 128 and mb % tile == 0, (mb, tile)

    wet, bec, w1t, b1c, w2ht, wht, bhc = kparams

    def rep(shape):  # weights/biases: full array, resident across all grid steps
        return pl.BlockSpec(shape, lambda b, i: (0,) * len(shape))

    return pl.pallas_call(
        _seg_kernel,
        out_shape=jax.ShapeDtypeStruct((B, NUM_CLASSES, mb), jnp.float32),
        grid=(B, mb // tile),
        in_specs=[
            pl.BlockSpec((1, K_IN, tile), lambda b, i: (b, 0, i)),   # token patches (bf16)
            rep((FEAT, K_IN)),               # w_embed^T            (bf16)
            rep((FEAT, 1)),                  # b_embed              (f32)
            rep((MLP_HIDDEN, FEAT)),         # (gamma*w1)^T         (bf16)
            rep((MLP_HIDDEN, 1)),            # beta@w1 + b1         (f32)
            rep((NUM_CLASSES, MLP_HIDDEN)),  # (w2@wh)^T            (bf16)
            rep((NUM_CLASSES, FEAT)),        # wh^T                 (bf16)
            rep((NUM_CLASSES, 1)),           # b2@wh + bh           (f32)
        ],
        out_specs=pl.BlockSpec((1, NUM_CLASSES, tile), lambda b, i: (b, 0, i)),
        compiler_params=pltpu.CompilerParams(
            dimension_semantics=("parallel", "parallel"),
            vmem_limit_bytes=32 * 1024 * 1024,
        ),
    )(patches, wet, bec, w1t, b1c, w2ht, wht, bhc)


def init_params(key):
    """Synthetic PyTorch-layout parameters for the simplified encoder block + head."""
    ks = jax.random.split(key, 6)
    s = 0.1
    return (
        s * jax.random.normal(ks[0], (K_IN, FEAT), jnp.float32),         # w_embed
        jnp.zeros((FEAT,), jnp.float32),                                  # b_embed
        jnp.ones((FEAT,), jnp.float32),                                   # ln gamma
        jnp.zeros((FEAT,), jnp.float32),                                  # ln beta
        s * jax.random.normal(ks[1], (FEAT, MLP_HIDDEN), jnp.float32),    # w1
        s * jax.random.normal(ks[2], (MLP_HIDDEN,), jnp.float32),         # b1
        s * jax.random.normal(ks[3], (MLP_HIDDEN, FEAT), jnp.float32),    # w2
        s * jax.random.normal(ks[4], (FEAT,), jnp.float32),               # b2
        s * jax.random.normal(ks[5], (FEAT, NUM_CLASSES), jnp.float32),   # w_head
        jnp.zeros((NUM_CLASSES,), jnp.float32),                           # b_head
    )


def prepare_kernel_params(params):
    """Constant-fold LN affine into w1/b1 and the 1x1x1 head through the MLP output,
    transpose everything to feature-major, cast matmul operands to bf16."""
    we, be, g, b, w1, b1, w2, b2, wh, bh = params
    wet = we.T.astype(jnp.bfloat16)                                    # (FEAT, K_IN)
    bec = be.reshape(FEAT, 1).astype(jnp.float32)
    w1t = (g[:, None] * w1).T.astype(jnp.bfloat16)                     # (HID, FEAT)
    b1c = (b @ w1 + b1).reshape(MLP_HIDDEN, 1).astype(jnp.float32)
    w2ht = (w2 @ wh).T.astype(jnp.bfloat16)                            # (NC, HID)
    wht = wh.T.astype(jnp.bfloat16)                                    # (NC, FEAT)
    bhc = (b2 @ wh + bh).reshape(NUM_CLASSES, 1).astype(jnp.float32)
    return (wet, bec, w1t, b1c, w2ht, wht, bhc)


@jax.jit
def medical_3d_segmenter_forward(x, kparams):
    """x: (B, 1, D, H, W) float32 NCDHW -> (B, NUM_CLASSES, D, H, W) float32."""
    B, C, D0, H0, W0 = x.shape

    # --- _pad_input_for_swin_unetr: pad spatial dims to multiples of 32 ---
    pad = lambda n: (-n) % 32
    pd, ph, pw = pad(D0), pad(H0), pad(W0)
    xp = jnp.pad(x, ((0, 0), (0, 0), (0, pd), (0, ph), (0, pw)))
    _, _, D, H, W = xp.shape
    p = PATCH
    D2, H2, W2 = D // p, H // p, W // p
    mb = D2 * H2 * W2

    # --- glue: regroup 2x2x2 patches, feature-major (K_IN, tokens), bf16 ---
    # TODO(synk): fuse this regroup into the kernel's DMA (BlockSpec over volume
    # slabs) to remove this full-volume XLA pass entirely.
    xr = xp.astype(jnp.bfloat16).reshape(B, C, D2, p, H2, p, W2, p)
    xr = jnp.transpose(xr, (0, 3, 5, 7, 1, 2, 4, 6))        # (B, p,p,p, C, D2,H2,W2)
    patches = xr.reshape(B, K_IN, mb)

    # --- fused Pallas hot path: embed -> LN -> MLP -> head (class-major output) ---
    logits = _run_fused_kernel(patches, kparams)             # (B, NC, mb) f32

    # --- nearest x2 upsample written directly in NCDHW (no full-res transpose) ---
    l = logits.reshape(B, NUM_CLASSES, D2, H2, W2)
    out = jnp.broadcast_to(
        l[:, :, :, None, :, None, :, None],
        (B, NUM_CLASSES, D2, p, H2, p, W2, p),
    ).reshape(B, NUM_CLASSES, D, H, W)

    # --- _crop_output_to_original_size ---
    return out[:, :, :D0, :H0, :W0]


if __name__ == "__main__":
    key = jax.random.PRNGKey(0)
    k_x, k_p = jax.random.split(key)

    # small single-channel 3D volume, NCDHW (consistent with the module)
    x = jax.random.normal(k_x, (2, 1, 16, 16, 16), dtype=jnp.float32)
    params = init_params(k_p)
    kparams = prepare_kernel_params(params)

    out = medical_3d_segmenter_forward(x, kparams)
    out = jax.block_until_ready(out)

    assert out.shape == (2, NUM_CLASSES, 16, 16, 16), out.shape
    assert out.dtype == jnp.float32
    assert bool(jnp.all(jnp.isfinite(out)))
    print("KERNEL_OK")
</pallas_src>

<mosaic_0001>
module attributes {stable_mosaic.version = 11 : i64} {
  func.func @_seg_kernel(%arg0: i32, %arg1: i32, %arg2: memref<1x8x1024xbf16, #tpu.memory_space<vmem>>, %arg3: memref<48x8xbf16, #tpu.memory_space<vmem>>, %arg4: memref<48x1xf32, #tpu.memory_space<vmem>>, %arg5: memref<96x48xbf16, #tpu.memory_space<vmem>>, %arg6: memref<96x1xf32, #tpu.memory_space<vmem>>, %arg7: memref<2x96xbf16, #tpu.memory_space<vmem>>, %arg8: memref<2x48xbf16, #tpu.memory_space<vmem>>, %arg9: memref<2x1xf32, #tpu.memory_space<vmem>>, %arg10: memref<1x2x1024xf32, #tpu.memory_space<vmem>>) attributes {dimension_semantics = [#tpu.dimension_semantics<parallel>, #tpu.dimension_semantics<parallel>], iteration_bounds = array<i64: 2, 4>, scalar_prefetch = 0 : i64, scratch_operands = 0 : i64, tpu.core_type = #tpu.core_type<tc>, window_params = [{transform_indices = @transform_0, window_bounds = array<i64: 1, 8, 1024>}, {pipeline_mode = #tpu.pipeline_mode<synchronous>, transform_indices = @transform_1, window_bounds = array<i64: 48, 8>}, {pipeline_mode = #tpu.pipeline_mode<synchronous>, transform_indices = @transform_2, window_bounds = array<i64: 48, 1>}, {pipeline_mode = #tpu.pipeline_mode<synchronous>, transform_indices = @transform_3, window_bounds = array<i64: 96, 48>}, {pipeline_mode = #tpu.pipeline_mode<synchronous>, transform_indices = @transform_4, window_bounds = array<i64: 96, 1>}, {pipeline_mode = #tpu.pipeline_mode<synchronous>, transform_indices = @transform_5, window_bounds = array<i64: 2, 96>}, {pipeline_mode = #tpu.pipeline_mode<synchronous>, transform_indices = @transform_6, window_bounds = array<i64: 2, 48>}, {pipeline_mode = #tpu.pipeline_mode<synchronous>, transform_indices = @transform_7, window_bounds = array<i64: 2, 1>}, {transform_indices = @transform_8, window_bounds = array<i64: 1, 2, 1024>}]} {
    %c0 = arith.constant 0 : index
    %c0_0 = arith.constant 0 : index
    %c0_1 = arith.constant 0 : index
    %0 = vector.load %arg2[%c0, %c0_0, %c0_1] : memref<1x8x1024xbf16, #tpu.memory_space<vmem>>, vector<1x8x1024xbf16>
    %1 = vector.shape_cast %0 : vector<1x8x1024xbf16> to vector<8x1024xbf16>
    %c0_2 = arith.constant 0 : index
    %c0_3 = arith.constant 0 : index
    %2 = vector.load %arg3[%c0_2, %c0_3] : memref<48x8xbf16, #tpu.memory_space<vmem>>, vector<48x8xbf16>
    %cst = arith.constant dense<0.000000e+00> : vector<48x1024xf32>
    %3 = tpu.matmul %2, %1, %cst {dimension_numbers = #tpu.dot_dimension_numbers<[1], [0], [0], [1], [0, 0, 1, 1], [], []>} : vector<48x8xbf16>, vector<8x1024xbf16>, vector<48x1024xf32> -> vector<48x1024xf32>
    %c0_4 = arith.constant 0 : index
    %c0_5 = arith.constant 0 : index
    %4 = vector.load %arg4[%c0_4, %c0_5] : memref<48x1xf32, #tpu.memory_space<vmem>>, vector<48x1xf32>
    %5 = vector.broadcast %4 : vector<48x1xf32> to vector<48x1024xf32>
    %6 = arith.addf %3, %5 : vector<48x1024xf32>
    %cst_6 = arith.constant dense<0.000000e+00> : vector<1024xf32>
    %7 = vector.multi_reduction <add>, %6, %cst_6 [0] : vector<48x1024xf32> to vector<1024xf32>
    %8 = vector.shape_cast %7 : vector<1024xf32> to vector<1x1024xf32>
    %cst_7 = arith.constant 4.800000e+01 : f32
    %9 = vector.broadcast %cst_7 : f32 to vector<1x1024xf32>
    %10 = arith.divf %8, %9 : vector<1x1024xf32>
    %11 = vector.broadcast %10 : vector<1x1024xf32> to vector<48x1024xf32>
    %12 = arith.subf %6, %11 : vector<48x1024xf32>
    %13 = vector.broadcast %10 : vector<1x1024xf32> to vector<48x1024xf32>
    %14 = arith.subf %6, %13 : vector<48x1024xf32>
    %15 = arith.mulf %12, %14 : vector<48x1024xf32>
    %cst_8 = arith.constant dense<0.000000e+00> : vector<1024xf32>
    %16 = vector.multi_reduction <add>, %15, %cst_8 [0] : vector<48x1024xf32> to vector<1024xf32>
    %17 = vector.shape_cast %16 : vector<1024xf32> to vector<1x1024xf32>
    %cst_9 = arith.constant 4.800000e+01 : f32
    %18 = vector.broadcast %cst_9 : f32 to vector<1x1024xf32>
    %19 = arith.divf %17, %18 : vector<1x1024xf32>
    %20 = vector.broadcast %10 : vector<1x1024xf32> to vector<48x1024xf32>
    %21 = arith.subf %6, %20 : vector<48x1024xf32>
    %cst_10 = arith.constant 9.99999974E-6 : f32
    %22 = vector.broadcast %cst_10 : f32 to vector<1x1024xf32>
    %23 = arith.addf %19, %22 : vector<1x1024xf32>
    %24 = math.rsqrt %23 : vector<1x1024xf32>
    %25 = vector.broadcast %24 : vector<1x1024xf32> to vector<48x1024xf32>
    %26 = arith.mulf %21, %25 : vector<48x1024xf32>
    %c0_11 = arith.constant 0 : index
    %c0_12 = arith.constant 0 : index
    %27 = vector.load %arg5[%c0_11, %c0_12] : memref<96x48xbf16, #tpu.memory_space<vmem>>, vector<96x48xbf16>
    %28 = arith.truncf %26 : vector<48x1024xf32> to vector<48x1024xbf16>
    %cst_13 = arith.constant dense<0.000000e+00> : vector<96x1024xf32>
    %29 = tpu.matmul %27, %28, %cst_13 {dimension_numbers = #tpu.dot_dimension_numbers<[1], [0], [0], [1], [0, 0, 1, 1], [], []>} : vector<96x48xbf16>, vector<48x1024xbf16>, vector<96x1024xf32> -> vector<96x1024xf32>
    %c0_14 = arith.constant 0 : index
    %c0_15 = arith.constant 0 : index
    %30 = vector.load %arg6[%c0_14, %c0_15] : memref<96x1xf32, #tpu.memory_space<vmem>>, vector<96x1xf32>
    %31 = vector.broadcast %30 : vector<96x1xf32> to vector<96x1024xf32>
    %32 = arith.addf %29, %31 : vector<96x1024xf32>
    %33 = arith.mulf %32, %32 : vector<96x1024xf32>
    %34 = arith.mulf %32, %33 : vector<96x1024xf32>
    %cst_16 = arith.constant 4.471500e-02 : f32
    %35 = vector.broadcast %cst_16 : f32 to vector<96x1024xf32>
    %36 = arith.mulf %35, %34 : vector<96x1024xf32>
    %37 = arith.addf %32, %36 : vector<96x1024xf32>
    %cst_17 = arith.constant 0.797884583 : f32
    %38 = vector.broadcast %cst_17 : f32 to vector<96x1024xf32>
    %39 = arith.mulf %38, %37 : vector<96x1024xf32>
    %40 = math.tanh %39 : vector<96x1024xf32>
    %cst_18 = arith.constant 1.000000e+00 : f32
    %41 = vector.broadcast %cst_18 : f32 to vector<96x1024xf32>
    %42 = arith.addf %41, %40 : vector<96x1024xf32>
    %cst_19 = arith.constant 5.000000e-01 : f32
    %43 = vector.broadcast %cst_19 : f32 to vector<96x1024xf32>
    %44 = arith.mulf %43, %42 : vector<96x1024xf32>
    %45 = arith.mulf %32, %44 : vector<96x1024xf32>
    %c0_20 = arith.constant 0 : index
    %c0_21 = arith.constant 0 : index
    %46 = vector.load %arg8[%c0_20, %c0_21] : memref<2x48xbf16, #tpu.memory_space<vmem>>, vector<2x48xbf16>
    %47 = arith.truncf %6 : vector<48x1024xf32> to vector<48x1024xbf16>
    %cst_22 = arith.constant dense<0.000000e+00> : vector<2x1024xf32>
    %48 = tpu.matmul %46, %47, %cst_22 {dimension_numbers = #tpu.dot_dimension_numbers<[1], [0], [0], [1], [0, 0, 1, 1], [], []>} : vector<2x48xbf16>, vector<48x1024xbf16>, vector<2x1024xf32> -> vector<2x1024xf32>
    %c0_23 = arith.constant 0 : index
    %c0_24 = arith.constant 0 : index
    %49 = vector.load %arg7[%c0_23, %c0_24] : memref<2x96xbf16, #tpu.memory_space<vmem>>, vector<2x96xbf16>
    %50 = arith.truncf %45 : vector<96x1024xf32> to vector<96x1024xbf16>
    %cst_25 = arith.constant dense<0.000000e+00> : vector<2x1024xf32>
    %51 = tpu.matmul %49, %50, %cst_25 {dimension_numbers = #tpu.dot_dimension_numbers<[1], [0], [0], [1], [0, 0, 1, 1], [], []>} : vector<2x96xbf16>, vector<96x1024xbf16>, vector<2x1024xf32> -> vector<2x1024xf32>
    %52 = arith.addf %48, %51 : vector<2x1024xf32>
    %c0_26 = arith.constant 0 : index
    %c0_27 = arith.constant 0 : index
    %53 = vector.load %arg9[%c0_26, %c0_27] : memref<2x1xf32, #tpu.memory_space<vmem>>, vector<2x1xf32>
    %54 = vector.broadcast %53 : vector<2x1xf32> to vector<2x1024xf32>
    %55 = arith.addf %52, %54 : vector<2x1024xf32>
    %c0_28 = arith.constant 0 : index
    %c0_29 = arith.constant 0 : index
    %c0_30 = arith.constant 0 : index
    %56 = vector.load %arg10[%c0_28, %c0_29, %c0_30] : memref<1x2x1024xf32, #tpu.memory_space<vmem>>, vector<1x2x1024xf32>
    %57 = vector.shape_cast %56 : vector<1x2x1024xf32> to vector<2x1024xf32>
    %58 = vector.shape_cast %55 : vector<2x1024xf32> to vector<1x2x1024xf32>
    tpu.vector_store %arg10[%c0_28, %c0_29, %c0_30], %58 {strides = array<i32>} : memref<1x2x1024xf32, #tpu.memory_space<vmem>>, vector<1x2x1024xf32>,
    return
  }
  func.func @transform_0(%arg0: i32, %arg1: i32) -> (i32, i32, i32) {
    %c0_i32 = arith.constant 0 : i32
    %c0_i32_0 = arith.constant 0 : i32
    return %arg0, %c0_i32, %arg1 : i32, i32, i32
  }
  func.func @transform_1(%arg0: i32, %arg1: i32) -> (i32, i32) {
    %c0_i32 = arith.constant 0 : i32
    %c0_i32_0 = arith.constant 0 : i32
    %c0_i32_1 = arith.constant 0 : i32
    return %c0_i32, %c0_i32_0 : i32, i32
  }
  func.func @transform_2(%arg0: i32, %arg1: i32) -> (i32, i32) {
    %c0_i32 = arith.constant 0 : i32
    %c0_i32_0 = arith.constant 0 : i32
    %c0_i32_1 = arith.constant 0 : i32
    return %c0_i32, %c0_i32_0 : i32, i32
  }
  func.func @transform_3(%arg0: i32, %arg1: i32) -> (i32, i32) {
    %c0_i32 = arith.constant 0 : i32
    %c0_i32_0 = arith.constant 0 : i32
    %c0_i32_1 = arith.constant 0 : i32
    return %c0_i32, %c0_i32_0 : i32, i32
  }
  func.func @transform_4(%arg0: i32, %arg1: i32) -> (i32, i32) {
    %c0_i32 = arith.constant 0 : i32
    %c0_i32_0 = arith.constant 0 : i32
    %c0_i32_1 = arith.constant 0 : i32
    return %c0_i32, %c0_i32_0 : i32, i32
  }
  func.func @transform_5(%arg0: i32, %arg1: i32) -> (i32, i32) {
    %c0_i32 = arith.constant 0 : i32
    %c0_i32_0 = arith.constant 0 : i32
    %c0_i32_1 = arith.constant 0 : i32
    return %c0_i32, %c0_i32_0 : i32, i32
  }
  func.func @transform_6(%arg0: i32, %arg1: i32) -> (i32, i32) {
    %c0_i32 = arith.constant 0 : i32
    %c0_i32_0 = arith.constant 0 : i32
    %c0_i32_1 = arith.constant 0 : i32
    return %c0_i32, %c0_i32_0 : i32, i32
  }
  func.func @transform_7(%arg0: i32, %arg1: i32) -> (i32, i32) {
    %c0_i32 = arith.constant 0 : i32
    %c0_i32_0 = arith.constant 0 : i32
    %c0_i32_1 = arith.constant 0 : i32
    return %c0_i32, %c0_i32_0 : i32, i32
  }
  func.func @transform_8(%arg0: i32, %arg1: i32) -> (i32, i32, i32) {
    %c0_i32 = arith.constant 0 : i32
    %c0_i32_0 = arith.constant 0 : i32
    return %arg0, %c0_i32, %arg1 : i32, i32, i32
  }
}

</mosaic_0001>

<bundles_post_ra>
// kernel: medical_3d_segmenter_forward.1
= control target key start
LH: loop header
LB: loop body
LE: loop exit
PB: predicated region body
PF: predicated region fallthrough
CT: control target
= control target key end

     0   :  { %s3453_s27 = smov 0   ;;  %s3455_s28 = smov 0   ;;  %s5744_s0 = inlined_call_operand.vmem [shape: bf16[2,8,4096], index: 0, kind: input, shape index: {}]   ;;  %s5745_s1 = inlined_call_operand.vmem [shape: bf16[48,8], index: 1, kind: input, shape index: {}]   ;;  %s5746_s2 = inlined_call_operand.vmem [shape: f32[48,1], index: 2, kind: input, shape index: {}]   ;;  %s5747_s3 = inlined_call_operand.vmem [shape: bf16[96,48], index: 3, kind: input, shape index: {}]   ;;  %s5748_s4 = inlined_call_operand.vmem [shape: f32[96,1], index: 4, kind: input, shape index: {}]   ;;  %s5749_s5 = inlined_call_operand.vmem [shape: bf16[2,96], index: 5, kind: input, shape index: {}]   ;;  %s5750_s6 = inlined_call_operand.vmem [shape: bf16[2,48], index: 6, kind: input, shape index: {}]   ;;  %s5751_s7 = inlined_call_operand.vmem [shape: f32[2,1], index: 7, kind: input, shape index: {}]   ;;  %s5752_s8 = inlined_call_operand.vmem [shape: f32[2,2,4096], index: 8, kind: output, shape index: {}]  }
   0x1   :  { %s3457_s29 = smov 0   ;;  %s3459_s30 = smov 0  }
   0x2   :  { %s3461_s9 = smov 0  }
   0x3 LB: > { %s27_s10 = sadd.s32 1, %s3396_s29  ;;  %s30_s11 = sadd.s32 1, %s3400_s30  ;;  %s3404_s9 = sphi %s3461_s9, %s18_s9   ;;  %s3400_s30 = sphi %s3459_s30, %s6226_s30   ;;  %s3396_s29 = sphi %s3457_s29, %s6225_s29   ;;  %s3392_s28 = sphi %s3455_s28, %s6224_s28   ;;  %s3388_s27 = sphi %s3453_s27, %s6223_s27  }
   0x4   : > { %p28_p0 = scmp.ge.s32.totalorder %s27_s10, 4  ;;  %p3023_p1 = scmp.ge.s32.totalorder %s3404_s9, 1 }
   0x5   : > { %p283_p2 = scmp.lt.s32.totalorder %s3404_s9, 9 }
   0x6   : > { %s6228_s10 = smov (%p28_p0, %s27_s10), 0  ;;  %s6230_s11 = smov (!%p28_p0, %s30_s11), %s3400_s30 }
   0x7   : > { %p284_p3 = pnand %p3023_p1, %p283_p2  ;;  %p32_p4 = scmp.ge.s32.totalorder %s6230_s11, 2 }
   0x9   : > { %s6232_s11 = smov (%p32_p4, %s6230_s11), 0  ;;  %287 = sbr.rel (%p284_p3) target bundleno = 1093 (0x445), region = 52 }
  0x10   : > { %s3024_s12 = sshll.u32 %s3388_s27, 3  ;;  %p326_p5 = scmp.lt.s32.totalorder %s3392_s28, 1  ;;  %v5753_v0 = vmov 0   ;;  %v356_v1 = vld [vmem:[%s5746_s2] sm:$0xff]  ;;  %v358_v2 = vld [vmem:[%s5746_s2 + $0x10] sm:$0xff]  ;;  %v357_v3 = vld [vmem:[%s5746_s2 + $0x8] sm:$0xff] }
  0x11   : > { %p328_p6 = scmp.lt.s32.totalorder %s3024_s12, 31  ;;  %494 = vmatprep.mubr.bf16.mxu0 %v5753_v0  ;;  %557 = vmatprep.mubr.bf16.mxu1 %v5753_v0  ;;  %v359_v4 = vld [vmem:[%s5746_s2 + $0x18] sm:$0xff]  ;;  %vm437_vm0 = vcmask 1043456   ;;  %vm427_vm1 = vcmask 64512   ;;  %v3145_v13 = vld [vmem:[%s5745_s1] sm:$0xff]   ;;  %v361_v21 = vld [vmem:[%s5746_s2 + $0x28] sm:$0xff] }
  0x12   : > { %s6234_s28 = smov (!%p326_p5, %s3392_s28), 1  ;;  %3139 = vset.pattern.permute.xlu0 %v5753_v0  ;;  %3140 = vset.pattern.permute.xlu1 %v5753_v0  ;;  %v360_v20 = vld [vmem:[%s5746_s2 + $0x20] sm:$0xff]  ;;  %v1104_v25 = vld [vmem:[%s5748_s4 + $0x8] sm:$0xff]  ;;  %v1105_v27 = vld [vmem:[%s5748_s4 + $0x10] sm:$0xff]  ;;  %vm1205_vm2 = vcmask 392192   ;;  %vm2534_vm3 = vcmask 785408  }
  0x13   : > { %s6236_s12 = smov (!%p328_p6, %s3024_s12), 31  ;;  %s3025_s15 = sshll.u32 %s6234_s28, 5  ;;  %364 = vperm.xlu0 %3139, %v356_v1   ;;  %374 = vperm.xlu1 %3140, %v358_v2   ;;  %v1103_v24 = vld [vmem:[%s5748_s4] sm:$0xff]  ;;  %v3146_v26 = vld [vmem:[%s5745_s1 + $0x8] sm:$0xff]   ;;  %v1106_v28 = vld [vmem:[%s5748_s4 + $0x18] sm:$0xff] }
  0x14   : > { %s3493_s18 = sadd.s32 %s3025_s15, %s6236_s12  ;;  %v1107_v29 = vld [vmem:[%s5748_s4 + $0x20] sm:$0xff]  ;;  %v1108_v30 = vld [vmem:[%s5748_s4 + $0x28] sm:$0xff]  ;;  %v3147_v31 = vld [vmem:[%s5745_s1 + $0x10] sm:$0xff]  }
  0x15   : > { %s3026_s21 = sshll.u32 %s3493_s18, 2  ;;  %v1109_v32 = vld [vmem:[%s5748_s4 + $0x30] sm:$0xff]  ;;  %v1110_v33 = vld [vmem:[%s5748_s4 + $0x38] sm:$0xff]  ;;  %v1111_v34 = vld [vmem:[%s5748_s4 + $0x40] sm:$0xff]  ;;  %s3029_s14 = sshll.u32 %s3493_s18, 1 }
  0x16   : > { %s333_s26 = scalar_lea.vmem %s5744_s0, %s3026_s21  ;;  %v1112_v35 = vld [vmem:[%s5748_s4 + $0x48] sm:$0xff]  ;;  %v1113_v36 = vld [vmem:[%s5748_s4 + $0x50] sm:$0xff]  ;;  %v1114_v37 = vld [vmem:[%s5748_s4 + $0x58] sm:$0xff]  ;;  %s343_s17 = scalar_lea.vmem %s5752_s8, %s3029_s14 }
  0x17   : > { %v346_v5 = vld [vmem:[%s333_s26] sm:$0xff]  ;;  %v347_v6 = vld [vmem:[%s333_s26 + $0x8] sm:$0xff]  ;;  %v348_v7 = vld [vmem:[%s333_s26 + $0x10] sm:$0xff]  ;;  %369 = vperm.xlu0 %3139, %v357_v3   ;;  %379 = vperm.xlu1 %3140, %v359_v4  }
  0x18   : > { %v3034_v8 = vcombine.high %v346_v5, %v346_v5  ;;  %v3036_v9 = vcombine.high %v347_v6, %v347_v6  ;;  %v3033_v10 = vcombine.low %v346_v5, %v346_v5  ;;  %v3035_v11 = vcombine.low %v347_v6, %v347_v6  ;;  %v349_v12 = vld [vmem:[%s333_s26 + $0x18] sm:$0xff]  ;;  %v2869_v38 = vld [vmem:[%s5751_s7] sm:$0x3] }
  0x19   : > { %v3038_v14 = vcombine.high %v348_v7, %v348_v7  ;;  %v3040_v15 = vcombine.high %v349_v12, %v349_v12  ;;  %v3037_v16 = vcombine.low %v348_v7, %v348_v7  ;;  %v3039_v17 = vcombine.low %v349_v12, %v349_v12 }
  0x1a   : > { %3041 = vmatprep.subr.msk.bf16.mxu0 %vm437_vm0, %v3034_v8  ;;  %3045 = vmatprep.subr.msk.bf16.mxu1 %vm437_vm0, %v3036_v9  ;;  %v439_v18 = vsel %vm437_vm0, %v3033_v10, 0  ;;  %v445_v19 = vsel %vm437_vm0, %v3035_v11, 0 }
  0x1b   : > { %463 = vmatpush1.bf16.msra.mxu0 %v439_v18  ;;  %526 = vmatpush1.bf16.msra.mxu1 %v445_v19  ;;  %v451_v22 = vsel %vm437_vm0, %v3037_v16, 0  ;;  %v457_v23 = vsel %vm437_vm0, %v3039_v17, 0 }
  0x1c   : > { %3049 = vmatprep.subr.msk.bf16.mxu0 %vm437_vm0, %v3038_v14  ;;  %3053 = vmatprep.subr.msk.bf16.mxu1 %vm437_vm0, %v3040_v15 }
  0x1d   : > { %384 = vperm.xlu0 %3139, %v360_v20   ;;  %389 = vperm.xlu1 %3140, %v361_v21  }
  0x1e   : > { %3042 = vmatmul.mubr.msk.bf16.vlgmr.msra.gmra.mrb[0].mxu0 %vm427_vm1, %v3145_v13  ;;  %3046 = vmatmul.mubr.msk.bf16.vlgmr.msra.gmra.mrb[0].mxu1 %vm427_vm1, %v3145_v13 }
  0x1f   : > { %504 = vmatprep.mubr.bf16.mxu0 %v5753_v0  ;;  %567 = vmatprep.mubr.bf16.mxu1 %v5753_v0 }
  0x20   : > { %589 = vmatpush1.bf16.msra.mxu0 %v451_v22  ;;  %652 = vmatpush1.bf16.msra.mxu1 %v457_v23 }
  0x21   : > { %1117 = vperm.xlu0 %3139, %v1103_v24   ;;  %1122 = vperm.xlu1 %3140, %v1104_v25  }
  0x25   : > { %1127 = vperm.xlu0 %3139, %v1105_v27   ;;  %1132 = vperm.xlu1 %3140, %v1106_v28  }
  0x26   : > { %3043 = vmatmul.mubr.msk.bf16.gmra.mrb[4].mxu0 %vm427_vm1, %v3146_v26  ;;  %3047 = vmatmul.mubr.msk.bf16.gmra.mrb[4].mxu1 %vm427_vm1, %v3146_v26 }
  0x27   : > { %514 = vmatprep.mubr.bf16.mxu0 %v5753_v0  ;;  %577 = vmatprep.mubr.bf16.mxu1 %v5753_v0 }
  0x29   : > { %1137 = vperm.xlu0 %3139, %v1107_v29   ;;  %1142 = vperm.xlu1 %3140, %v1108_v30  }
  0x2d   : > { %1147 = vperm.xlu0 %3139, %v1109_v32   ;;  %1152 = vperm.xlu1 %3140, %v1110_v33  }
  0x2e   : > { %3044 = vmatmul.mubr.msk.bf16.gmra.mrb[8].mxu0 %vm427_vm1, %v3147_v31  ;;  %3048 = vmatmul.mubr.msk.bf16.gmra.mrb[8].mxu1 %vm427_vm1, %v3147_v31 }
  0x2f   : > { %620 = vmatprep.mubr.bf16.mxu0 %v5753_v0  ;;  %683 = vmatprep.mubr.bf16.mxu1 %v5753_v0 }
  0x31   : > { %1157 = vperm.xlu0 %3139, %v1111_v34   ;;  %1162 = vperm.xlu1 %3140, %v1112_v35  }
  0x35   : > { %1167 = vperm.xlu0 %3139, %v1113_v36   ;;  %1172 = vperm.xlu1 %3140, %v1114_v37  }
  0x36   : > { %3050 = vmatmul.mubr.msk.bf16.vlgmr.msra.gmra.mrb[12].mxu0 %vm427_vm1, %v3145_v13  ;;  %3054 = vmatmul.mubr.msk.bf16.vlgmr.msra.gmra.mrb[12].mxu1 %vm427_vm1, %v3145_v13 }
  0x37   : > { %630 = vmatprep.mubr.bf16.mxu0 %v5753_v0  ;;  %693 = vmatprep.mubr.bf16.mxu1 %v5753_v0 }
  0x39   : > { %2872 = vperm.xlu0 %3139, %v2869_v38  }
  0x3e   : > { %3051 = vmatmul.mubr.msk.bf16.gmra.mrb[16].mxu0 %vm427_vm1, %v3146_v26  ;;  %3055 = vmatmul.mubr.msk.bf16.gmra.mrb[16].mxu1 %vm427_vm1, %v3146_v26 }
  0x3f   : > { %640 = vmatprep.mubr.bf16.mxu0 %v5753_v0  ;;  %703 = vmatprep.mubr.bf16.mxu1 %v5753_v0 }
  0x46   : > { %3052 = vmatmul.mubr.msk.bf16.gmra.mrb[20].mxu0 %vm427_vm1, %v3147_v31  ;;  %3056 = vmatmul.mubr.msk.bf16.gmra.mrb[20].mxu1 %vm427_vm1, %v3147_v31 }
  0x47   : > { %1256 = vmatprep.mubr.bf16.mxu0 %v5753_v0  ;;  %1349 = vmatprep.mubr.bf16.mxu1 %v5753_v0 }
  0x92   : > { %v3591_v39 = vpop.permute.xlu0 %364  ;;  %v3595_v41 = vpop.permute.xlu1 %374 }
  0x96   : > { %v3593_v40 = vpop.permute.xlu0 %369  ;;  %v3617_v58 = vpop.permute.xlu1 %379 }
  0x9c   : > { %v3669_v26 = vpop.permute.xlu0 %384  ;;  %v3671_v27 = vpop.permute.xlu1 %389 }
  0xf1   : > { %v496_v42 = vpop.f32.mrb[0].mxu0  ;;  %v559_v43 = vpop.f32.mrb[0].mxu1 }
  0xf2   : > { %v498_v44 = vpop.f32.mrb[1].mxu0  ;;  %v561_v45 = vpop.f32.mrb[1].mxu1  ;;  %v3598_v48 = vadd.f32 %v496_v42, %v3591_v39  ;;  %v3601_v49 = vadd.f32 %v559_v43, %v3591_v39 }
  0xf3   : > { %v500_v46 = vpop.f32.mrb[2].mxu0  ;;  %v563_v47 = vpop.f32.mrb[2].mxu1  ;;  %v3632_v4 = vadd.f32 %v498_v44, %v3591_v39  ;;  %v3635_v5 = vadd.f32 %v561_v45, %v3591_v39 }
  0xf4   : > { %5876 = vst [vmem:[#allocation2_spill] sm:$0xff] %v3598_v48  ;;  %5877 = vst [vmem:[#allocation3_spill] sm:$0xff] %v3601_v49  ;;  %v3604_v50 = vadd.f32 %v500_v46, %v3593_v40  ;;  %v3607_v51 = vadd.f32 %v563_v47, %v3593_v40  ;;  %v502_v52 = vpop.f32.mrb[3].mxu0  ;;  %v565_v53 = vpop.f32.mrb[3].mxu1 }
  0xf5   : > { %v3620_v59 = vadd.f32 %v502_v52, %v3593_v40  ;;  %v3623_v60 = vadd.f32 %v565_v53, %v3593_v40  ;;  %5884 = vst [vmem:[#allocation10_spill] sm:$0xff] %v3632_v4  ;;  %5885 = vst [vmem:[#allocation11_spill] sm:$0xff] %v3635_v5 }
  0xf6   : > { %5878 = vst [vmem:[#allocation4_spill] sm:$0xff] %v3604_v50  ;;  %5879 = vst [vmem:[#allocation5_spill] sm:$0xff] %v3607_v51  ;;  %v714_v54 = vadd.f32 %v3604_v50, %v3598_v48  ;;  %v736_v56 = vadd.f32 %v3607_v51, %v3601_v49 }
  0xf7   : > { %5880 = vst [vmem:[#allocation6_spill] sm:$0xff] %v3620_v59  ;;  %5881 = vst [vmem:[#allocation7_spill] sm:$0xff] %v3623_v60  ;;  %v725_v16 = vadd.f32 %v3620_v59, %v3632_v4  ;;  %v747_v17 = vadd.f32 %v3623_v60, %v3635_v5 }
  0xf9   : > { %v506_v61 = vpop.f32.mrb[4].mxu0  ;;  %v569_v62 = vpop.f32.mrb[4].mxu1 }
  0xfa   : > { %v3626_v63 = vadd.f32 %v506_v61, %v3595_v41  ;;  %v3629_v1 = vadd.f32 %v569_v62, %v3595_v41  ;;  %v508_v2 = vpop.f32.mrb[5].mxu0  ;;  %v571_v3 = vpop.f32.mrb[5].mxu1 }
  0xfb   : > { %v3638_v6 = vadd.f32 %v508_v2, %v3595_v41  ;;  %v3641_v7 = vadd.f32 %v571_v3, %v3595_v41  ;;  %v510_v8 = vpop.f32.mrb[6].mxu0  ;;  %v573_v9 = vpop.f32.mrb[6].mxu1 }
  0xfc   : > { %5882 = vst [vmem:[#allocation8_spill] sm:$0xff] %v3626_v63  ;;  %5883 = vst [vmem:[#allocation9_spill] sm:$0xff] %v3629_v1  ;;  %v715_v10 = vadd.f32 %v714_v54, %v3626_v63  ;;  %v737_v11 = vadd.f32 %v736_v56, %v3629_v1  ;;  %v3646_v12 = vadd.f32 %v510_v8, %v3617_v58  ;;  %v512_v14 = vpop.f32.mrb[7].mxu0  ;;  %v575_v15 = vpop.f32.mrb[7].mxu1 }
  0xfd   : > { %5886 = vst [vmem:[#allocation12_spill] sm:$0xff] %v3638_v6  ;;  %5887 = vst [vmem:[#allocation13_spill] sm:$0xff] %v3641_v7  ;;  %v3649_v13 = vadd.f32 %v573_v9, %v3617_v58  ;;  %v726_v22 = vadd.f32 %v725_v16, %v3638_v6  ;;  %v748_v23 = vadd.f32 %v747_v17, %v3641_v7 }
  0xfe   : > { %5888 = vst [vmem:[#allocation14_spill] sm:$0xff] %v3646_v12  ;;  %v716_v18 = vadd.f32 %v715_v10, %v3646_v12  ;;  %v3664_v24 = vadd.f32 %v512_v14, %v3617_v58  ;;  %v3667_v25 = vadd.f32 %v575_v15, %v3617_v58 }
  0xff   : > { %5889 = vst [vmem:[#allocation15_spill] sm:$0xff] %v3649_v13  ;;  %v738_v20 = vadd.f32 %v737_v11, %v3649_v13 }
 0x100   : > { %5890 = vst [vmem:[#allocation16_spill] sm:$0xff] %v3664_v24  ;;  %5891 = vst [vmem:[#allocation17_spill] sm:$0xff] %v3667_v25  ;;  %v727_v34 = vadd.f32 %v726_v22, %v3664_v24  ;;  %v749_v35 = vadd.f32 %v748_v23, %v3667_v25 }
 0x101   : > { %v516_v28 = vpop.f32.mrb[8].mxu0  ;;  %v579_v29 = vpop.f32.mrb[8].mxu1 }
 0x102   : > { %v3674_v30 = vadd.f32 %v516_v28, %v3669_v26  ;;  %v3677_v31 = vadd.f32 %v579_v29, %v3669_v26  ;;  %v518_v32 = vpop.f32.mrb[9].mxu0  ;;  %v581_v33 = vpop.f32.mrb[9].mxu1 }
 0x103   : > { %v3682_v36 = vadd.f32 %v518_v32, %v3669_v26  ;;  %v3685_v37 = vadd.f32 %v581_v33, %v3669_v26  ;;  %v520_v38 = vpop.f32.mrb[10].mxu0  ;;  %v583_v42 = vpop.f32.mrb[10].mxu1 }
 0x104   : > { %5892 = vst [vmem:[#allocation18_spill] sm:$0xff] %v3674_v30  ;;  %5893 = vst [vmem:[#allocation19_spill] sm:$0xff] %v3677_v31  ;;  %v717_v43 = vadd.f32 %v716_v18, %v3674_v30  ;;  %v739_v44 = vadd.f32 %v738_v20, %v3677_v31  ;;  %v3690_v45 = vadd.f32 %v520_v38, %v3671_v27  ;;  %v522_v47 = vpop.f32.mrb[11].mxu0  ;;  %v585_v52 = vpop.f32.mrb[11].mxu1 }
 0x105   : > { %5894 = vst [vmem:[#allocation20_spill] sm:$0xff] %v3682_v36  ;;  %5895 = vst [vmem:[#allocation21_spill] sm:$0xff] %v3685_v37  ;;  %v3693_v46 = vadd.f32 %v583_v42, %v3671_v27  ;;  %v728_v53 = vadd.f32 %v727_v34, %v3682_v36  ;;  %v750_v54 = vadd.f32 %v749_v35, %v3685_v37 }
 0x106   : > { %5896 = vst [vmem:[#allocation22_spill] sm:$0xff] %v3690_v45  ;;  %v3698_v56 = vadd.f32 %v522_v47, %v3671_v27  ;;  %v3701_v61 = vadd.f32 %v585_v52, %v3671_v27  ;;  %v718_v62 = vadd.f32 %v717_v43, %v3690_v45 }
 0x107   : > { %5897 = vst [vmem:[#allocation23_spill] sm:$0xff] %v3693_v46  ;;  %v740_v3 = vadd.f32 %v739_v44, %v3693_v46 }
 0x108   : > { %5898 = vst [vmem:[#allocation24_spill] sm:$0xff] %v3698_v56  ;;  %5899 = vst [vmem:[#allocation25_spill] sm:$0xff] %v3701_v61  ;;  %v729_v9 = vadd.f32 %v728_v53, %v3698_v56  ;;  %v751_v10 = vadd.f32 %v750_v54, %v3701_v61  ;;  %v719_v11 = vrot.slane %v718_v62, 4 }
 0x109   : > { %v741_v14 = vrot.slane %v740_v3, 4  ;;  %v622_v17 = vpop.f32.mrb[12].mxu0  ;;  %v685_v18 = vpop.f32.mrb[12].mxu1 }
 0x10a   : > { %v730_v15 = vrot.slane %v729_v9, 4  ;;  %v752_v16 = vrot.slane %v751_v10, 4  ;;  %v720_v20 = vadd.f32 %v719_v11, %v718_v62  ;;  %v624_v23 = vpop.f32.mrb[13].mxu0  ;;  %v687_v28 = vpop.f32.mrb[13].mxu1  ;;  %v3712_v33 = vadd.f32 %v622_v17, %v3591_v39 }
 0x10b   : > { %v742_v22 = vadd.f32 %v741_v14, %v740_v3  ;;  %v626_v34 = vpop.f32.mrb[14].mxu0  ;;  %v689_v35 = vpop.f32.mrb[14].mxu1  ;;  %v3721_v62 = vadd.f32 %v685_v18, %v3591_v39  ;;  %v3732_v18 = vadd.f32 %v624_v23, %v3591_v39 }
 0x10c   : > { %v731_v29 = vadd.f32 %v730_v15, %v729_v9  ;;  %v753_v32 = vadd.f32 %v752_v16, %v751_v10  ;;  %5900 = vst [vmem:[#allocation26_spill] sm:$0xff] %v3712_v33  ;;  %v721_v38 = vrot.slane %v720_v20, 2  ;;  %v3715_v43 = vadd.f32 %v626_v34, %v3593_v40  ;;  %v628_v47 = vpop.f32.mrb[15].mxu0  ;;  %v691_v52 = vpop.f32.mrb[15].mxu1 }
 0x10d   : > { %v743_v42 = vrot.slane %v742_v22, 2  ;;  %v3718_v44 = vadd.f32 %v689_v35, %v3593_v40  ;;  %5903 = vst [vmem:[#allocation29_spill] sm:$0xff] %v3721_v62  ;;  %5904 = vst [vmem:[#allocation30_spill] sm:$0xff] %v3732_v18 }
 0x10e   : > { %5901 = vst [vmem:[#allocation27_spill] sm:$0xff] %v3715_v43  ;;  %v732_v53 = vrot.slane %v731_v29, 2  ;;  %v754_v54 = vrot.slane %v753_v32, 2  ;;  %v722_v3 = vadd.f32 %v721_v38, %v720_v20  ;;  %v758_v10 = vadd.f32 %v3715_v43, %v3712_v33 }
 0x10f   : > { %5902 = vst [vmem:[#allocation28_spill] sm:$0xff] %v3718_v44  ;;  %v744_v9 = vadd.f32 %v743_v42, %v742_v22  ;;  %v780_v16 = vadd.f32 %v3718_v44, %v3721_v62  ;;  %v3735_v20 = vadd.f32 %v687_v28, %v3591_v39  ;;  %v3738_v42 = vadd.f32 %v628_v47, %v3593_v40 }
 0x110   : > { %v733_v14 = vadd.f32 %v732_v53, %v731_v29  ;;  %v755_v15 = vadd.f32 %v754_v54, %v753_v32  ;;  %v723_v34 = vrot.slane %v722_v3, 1  ;;  %v3741_v29 = vadd.f32 %v691_v52, %v3593_v40 }
 0x111   : > { %v745_v35 = vrot.slane %v744_v9, 1  ;;  %5905 = vst [vmem:[#allocation31_spill] sm:$0xff] %v3735_v20  ;;  %5906 = vst [vmem:[#allocation32_spill] sm:$0xff] %v3738_v42  ;;  %v632_v32 = vpop.f32.mrb[16].mxu0  ;;  %v695_v53 = vpop.f32.mrb[16].mxu1 }
 0x112   : > { %v734_v22 = vrot.slane %v733_v14, 1  ;;  %v756_v38 = vrot.slane %v755_v15, 1  ;;  %5907 = vst [vmem:[#allocation33_spill] sm:$0xff] %v3741_v29  ;;  %v724_v54 = vadd.f32 %v723_v34, %v722_v3  ;;  %v3744_v11 = vadd.f32 %v632_v32, %v3595_v41  ;;  %v634_v39 = vpop.f32.mrb[17].mxu0  ;;  %v697_v28 = vpop.f32.mrb[17].mxu1 }
 0x113   : > { %v746_v17 = vadd.f32 %v745_v35, %v744_v9  ;;  %v3747_v23 = vadd.f32 %v695_v53, %v3595_v41  ;;  %v3750_v47 = vadd.f32 %v634_v39, %v3595_v41  ;;  %v3753_v40 = vadd.f32 %v697_v28, %v3595_v41  ;;  %v636_v52 = vpop.f32.mrb[18].mxu0  ;;  %v699_v21 = vpop.f32.mrb[18].mxu1 }
 0x114   : > { %5908 = vst [vmem:[#allocation34_spill] sm:$0xff] %v3744_v11  ;;  %v735_v8 = vadd.f32 %v734_v22, %v733_v14  ;;  %v757_v2 = vadd.f32 %v756_v38, %v755_v15  ;;  %v803_v3 = vmul.f32 0.020833334, %v724_v54  ;;  %v759_v34 = vadd.f32 %v758_v10, %v3744_v11  ;;  %v638_v32 = vpop.f32.mrb[19].mxu0  ;;  %v701_v53 = vpop.f32.mrb[19].mxu1 }
 0x115   : > { %5909 = vst [vmem:[#allocation35_spill] sm:$0xff] %v3747_v23  ;;  %5910 = vst [vmem:[#allocation36_spill] sm:$0xff] %v3750_v47  ;;  %v805_v9 = vmul.f32 0.020833334, %v746_v17  ;;  %v781_v35 = vadd.f32 %v780_v16, %v3747_v23  ;;  %v769_v15 = vadd.f32 %v3738_v42, %v3732_v18  ;;  %v791_v41 = vadd.f32 %v3741_v29, %v3735_v20 }
 0x116   : > { %5911 = vst [vmem:[#allocation37_spill] sm:$0xff] %v3753_v40  ;;  %v3757_v19 = vmul.f32 0.020833334, %v735_v8  ;;  %v3759_v14 = vmul.f32 0.020833334, %v757_v2  ;;  %v3766_v22 = vsub.f32 %v3598_v48, %v803_v3  ;;  %v3769_v17 = vsub.f32 %v3604_v50, %v803_v3 }
 0x117   : > { %v3772_v10 = vsub.f32 %v3626_v63, %v803_v3  ;;  %v3775_v8 = vsub.f32 %v3646_v12, %v803_v3  ;;  %v3778_v2 = vsub.f32 %v3674_v30, %v803_v3  ;;  %v3781_v16 = vsub.f32 %v3690_v45, %v803_v3 }
 0x118   : > { %v3784_v38 = vsub.f32 %v3601_v49, %v805_v9  ;;  %v3787_v54 = vsub.f32 %v3607_v51, %v805_v9  ;;  %v859_v39 = vmul.f32 %v3766_v22, %v3766_v22  ;;  %v867_v28 = vmul.f32 %v3769_v17, %v3769_v17 }
 0x119   : > { %5912 = vst [vmem:[#allocation38_spill] sm:$0xff] %v3775_v8  ;;  %5913 = vst [vmem:[#allocation39_spill] sm:$0xff] %v3778_v2  ;;  %v770_v57 = vadd.f32 %v769_v15, %v3750_v47  ;;  %v792_v55 = vadd.f32 %v791_v41, %v3753_v40  ;;  %v875_v3 = vmul.f32 %v3772_v10, %v3772_v10  ;;  %v642_v63 = vpop.f32.mrb[20].mxu0  ;;  %v705_v12 = vpop.f32.mrb[20].mxu1 }
 0x11a   : > { %v883_v0 = vmul.f32 %v3775_v8, %v3775_v8  ;;  %v3800_v30 = vsub.f32 %v3629_v1, %v805_v9  ;;  %v3803_v45 = vsub.f32 %v3649_v13, %v805_v9  ;;  %v907_v49 = vadd.f32 %v867_v28, %v859_v39  ;;  %v644_v48 = vpop.f32.mrb[21].mxu0  ;;  %v707_v50 = vpop.f32.mrb[21].mxu1 }
 0x11b   : > { %v3806_v51 = vsub.f32 %v3677_v31, %v805_v9  ;;  %v3809_v15 = vsub.f32 %v3693_v46, %v805_v9  ;;  %v861_v41 = vmul.f32 %v3784_v38, %v3784_v38  ;;  %v891_v1 = vmul.f32 %v3778_v2, %v3778_v2  ;;  %v646_v31 = vpop.f32.mrb[22].mxu0  ;;  %v709_v9 = vpop.f32.mrb[22].mxu1 }
 0x11c   : > { %5914 = vst [vmem:[#allocation40_spill] sm:$0xff] %v3800_v30  ;;  %5915 = vst [vmem:[#allocation41_spill] sm:$0xff] %v3803_v45  ;;  %v899_v13 = vmul.f32 %v3781_v16, %v3781_v16  ;;  %v869_v39 = vmul.f32 %v3787_v54, %v3787_v54  ;;  %v877_v28 = vmul.f32 %v3800_v30, %v3800_v30  ;;  %v648_v47 = vpop.f32.mrb[23].mxu0  ;;  %v711_v42 = vpop.f32.mrb[23].mxu1 }
 0x11d   : > { %5916 = vst [vmem:[#allocation42_spill] sm:$0xff] %v3806_v51  ;;  %v908_v46 = vadd.f32 %v907_v49, %v875_v3  ;;  %v885_v40 = vmul.f32 %v3803_v45, %v3803_v45  ;;  %v893_v29 = vmul.f32 %v3806_v51, %v3806_v51  ;;  %v3827_v20 = vsub.f32 %v3698_v56, %v3757_v19 }
 0x11e   : > { %v901_v18 = vmul.f32 %v3809_v15, %v3809_v15  ;;  %v929_v2 = vadd.f32 %v869_v39, %v861_v41  ;;  %v3832_v30 = vadd.f32 %v636_v52, %v3617_v58  ;;  %v3835_v49 = vadd.f32 %v699_v21, %v3617_v58 }
 0x11f   : > { %5917 = vst [vmem:[#allocation43_spill] sm:$0xff] %v3827_v20  ;;  %v909_v3 = vadd.f32 %v908_v46, %v883_v0  ;;  %v3839_v51 = vsub.f32 %v3701_v61, %v3759_v14  ;;  %v3842_v56 = vadd.f32 %v638_v32, %v3617_v58  ;;  %v3845_v45 = vadd.f32 %v701_v53, %v3617_v58 }
 0x120   : > { %5918 = vst [vmem:[#allocation44_spill] sm:$0xff] %v3832_v30  ;;  %5919 = vst [vmem:[#allocation45_spill] sm:$0xff] %v3835_v49  ;;  %v930_v8 = vadd.f32 %v929_v2, %v877_v28  ;;  %v760_v41 = vadd.f32 %v759_v34, %v3832_v30  ;;  %v782_v21 = vadd.f32 %v781_v35, %v3835_v49 }
 0x121   : > { %5920 = vst [vmem:[#allocation46_spill] sm:$0xff] %v3839_v51  ;;  %5921 = vst [vmem:[#allocation47_spill] sm:$0xff] %v3842_v56  ;;  %v910_v39 = vadd.f32 %v909_v3, %v891_v1  ;;  %v771_v46 = vadd.f32 %v770_v57, %v3842_v56  ;;  %v793_v32 = vadd.f32 %v792_v55, %v3845_v45 }
 0x122   : > { %5922 = vst [vmem:[#allocation48_spill] sm:$0xff] %v3845_v45  ;;  %v931_v61 = vadd.f32 %v930_v8, %v885_v40  ;;  %v3856_v58 = vadd.f32 %v642_v63, %v3669_v26  ;;  %v3859_v53 = vadd.f32 %v705_v12, %v3669_v26  ;;  %v3862_v34 = vadd.f32 %v644_v48, %v3669_v26 }
 0x123   : > { %v911_v2 = vadd.f32 %v910_v39, %v899_v13  ;;  %v3865_v1 = vadd.f32 %v707_v50, %v3669_v26  ;;  %v3868_v35 = vadd.f32 %v646_v31, %v3671_v27  ;;  %v3871_v57 = vadd.f32 %v709_v9, %v3671_v27 }
 0x124   : > { %5923 = vst [vmem:[#allocation49_spill] sm:$0xff] %v3856_v58  ;;  %5924 = vst [vmem:[#allocation50_spill] sm:$0xff] %v3859_v53  ;;  %v932_v55 = vadd.f32 %v931_v61, %v893_v29  ;;  %v761_v63 = vadd.f32 %v760_v41, %v3856_v58  ;;  %v783_v40 = vadd.f32 %v782_v21, %v3859_v53 }
 0x125   : > { %5925 = vst [vmem:[#allocation51_spill] sm:$0xff] %v3862_v34  ;;  %5926 = vst [vmem:[#allocation52_spill] sm:$0xff] %v3865_v1  ;;  %v772_v12 = vadd.f32 %v771_v46, %v3862_v34  ;;  %v912_v8 = vrot.slane %v911_v2, 4  ;;  %v794_v48 = vadd.f32 %v793_v32, %v3865_v1  ;;  %v3884_v29 = vadd.f32 %v648_v47, %v3671_v27 }
 0x126   : > { %5927 = vst [vmem:[#allocation53_spill] sm:$0xff] %v3868_v35  ;;  %5928 = vst [vmem:[#allocation54_spill] sm:$0xff] %v3871_v57  ;;  %v933_v26 = vadd.f32 %v932_v55, %v901_v18  ;;  %v762_v31 = vadd.f32 %v761_v63, %v3868_v35  ;;  %v784_v61 = vadd.f32 %v783_v40, %v3871_v57 }
 0x127   : > { %5929 = vst [vmem:[#allocation55_spill] sm:$0xff] %v3884_v29  ;;  %v913_v28 = vadd.f32 %v912_v8, %v911_v2  ;;  %v3888_v9 = vmul.f32 %v3827_v20, %v3827_v20  ;;  %v3892_v3 = vmul.f32 %v3839_v51, %v3839_v51  ;;  %v3895_v41 = vadd.f32 %v711_v42, %v3671_v27 }
 0x128   : > { %v934_v18 = vrot.slane %v933_v26, 4  ;;  %v763_v21 = vrot.slane %v762_v31, 4  ;;  %v785_v39 = vrot.slane %v784_v61, 4  ;;  %v773_v46 = vadd.f32 %v772_v12, %v3884_v29 }
 0x129   : > { %5930 = vst [vmem:[#allocation56_spill] sm:$0xff] %v3895_v41  ;;  %v914_v32 = vrot.slane %v913_v28, 2  ;;  %v795_v47 = vadd.f32 %v794_v48, %v3895_v41  ;;  %v3901_v2 = vsub.f32 %v3632_v4, %v3757_v19  ;;  %v3905_v55 = vsub.f32 %v3620_v59, %v3757_v19 }
 0x12a   : > { %v935_v63 = vadd.f32 %v934_v18, %v933_v26  ;;  %v764_v40 = vadd.f32 %v763_v21, %v762_v31  ;;  %v786_v27 = vadd.f32 %v785_v39, %v784_v61  ;;  %v774_v42 = vrot.slane %v773_v46, 4 }
 0x12b   : > { %5931 = vst [vmem:[#allocation57_spill] sm:$0xff] %v3901_v2  ;;  %v915_v8 = vadd.f32 %v914_v32, %v913_v28  ;;  %v796_v13 = vrot.slane %v795_v47, 4  ;;  %v3909_v12 = vsub.f32 %v3638_v6, %v3757_v19  ;;  %v3913_v48 = vsub.f32 %v3664_v24, %v3757_v19 }
 0x12c   : > { %v936_v50 = vrot.slane %v935_v63, 2  ;;  %v765_v0 = vrot.slane %v764_v40, 2  ;;  %v787_v52 = vrot.slane %v786_v27, 2  ;;  %v775_v4 = vadd.f32 %v774_v42, %v773_v46 }
 0x12d   : > { %v916_v59 = vrot.slane %v915_v8, 1  ;;  %v797_v51 = vadd.f32 %v796_v13, %v795_v47  ;;  %v860_v26 = vmul.f32 %v3901_v2, %v3901_v2  ;;  %v868_v31 = vmul.f32 %v3905_v55, %v3905_v55 }
 0x12e   : > { %v937_v61 = vadd.f32 %v936_v50, %v935_v63  ;;  %v766_v28 = vadd.f32 %v765_v0, %v764_v40  ;;  %v788_v18 = vadd.f32 %v787_v52, %v786_v27  ;;  %v776_v21 = vrot.slane %v775_v4, 2 }
 0x12f   : > { %v917_v39 = vadd.f32 %v916_v59, %v915_v8  ;;  %v798_v32 = vrot.slane %v797_v51, 2  ;;  %v3921_v24 = vsub.f32 %v3682_v36, %v3757_v19  ;;  %v876_v46 = vmul.f32 %v3909_v12, %v3909_v12 }
 0x130   : > { %v938_v13 = vrot.slane %v937_v61, 1  ;;  %v767_v47 = vrot.slane %v766_v28, 1  ;;  %v789_v42 = vrot.slane %v788_v18, 1  ;;  %v777_v6 = vadd.f32 %v776_v21, %v775_v4 }
 0x131   : > { %v995_v20 = vmul.f32 0.020833334, %v917_v39  ;;  %v799_v2 = vadd.f32 %v798_v32, %v797_v51  ;;  %v884_v0 = vmul.f32 %v3913_v48, %v3913_v48  ;;  %v918_v52 = vadd.f32 %v868_v31, %v860_v26 }
 0x132   : > { %v939_v50 = vadd.f32 %v938_v13, %v937_v61  ;;  %v768_v59 = vadd.f32 %v767_v47, %v766_v28  ;;  %v790_v63 = vadd.f32 %v789_v42, %v788_v18  ;;  %v778_v40 = vrot.slane %v777_v6, 1 }
 0x133   : > { %v1003_v27 = vadd.f32 1e-05, %v995_v20  ;;  %v800_v19 = vrot.slane %v799_v2, 1  ;;  %v892_v8 = vmul.f32 %v3921_v24, %v3921_v24  ;;  %v3931_v36 = vsub.f32 %v3635_v5, %v3759_v14 }
 0x134   : > { %v997_v4 = vmul.f32 0.020833334, %v939_v50  ;;  %v807_v21 = vmul.f32 0.020833334, %v768_v59  ;;  %v809_v51 = vmul.f32 0.020833334, %v790_v63  ;;  %v919_v39 = vadd.f32 %v918_v52, %v876_v46 }
 0x135   : > { %3158 = vrsqrt.f32 %v1003_v27  ;;  %v779_v32 = vadd.f32 %v778_v40, %v777_v6  ;;  %v801_v26 = vadd.f32 %v800_v19, %v799_v2  ;;  %v3935_v31 = vsub.f32 %v3623_v60, %v3759_v14 }
 0x136   : > { %v1005_v20 = vadd.f32 1e-05, %v997_v4  ;;  %v3938_v61 = vsub.f32 %v3712_v33, %v807_v21  ;;  %v3941_v28 = vsub.f32 %v3715_v43, %v807_v21  ;;  %v3944_v18 = vsub.f32 %v3744_v11, %v807_v21 }
 0x137   : > { %v3947_v13 = vsub.f32 %v3832_v30, %v807_v21  ;;  %v3950_v6 = vsub.f32 %v3856_v58, %v807_v21  ;;  %v3953_v2 = vsub.f32 %v3868_v35, %v807_v21  ;;  %v3956_v46 = vsub.f32 %v3721_v62, %v809_v51 }
 0x138   : > { %3160 = vrsqrt.f32 %v1005_v20  ;;  %v863_v47 = vmul.f32 %v3938_v61, %v3938_v61  ;;  %v871_v42 = vmul.f32 %v3941_v28, %v3941_v28  ;;  %v920_v52 = vadd.f32 %v919_v39, %v884_v0 }
 0x139   : > { %v879_v50 = vmul.f32 %v3944_v18, %v3944_v18  ;;  %v887_v59 = vmul.f32 %v3947_v13, %v3947_v13  ;;  %v3967_v63 = vsub.f32 %v3718_v44, %v809_v51  ;;  %v3971_v40 = vsub.f32 %v3641_v7, %v3759_v14 }
 0x13a   : > { %v951_v27 = vadd.f32 %v871_v42, %v863_v47  ;;  %v3974_v19 = vsub.f32 %v3747_v23, %v809_v51  ;;  %v3977_v4 = vsub.f32 %v3835_v49, %v809_v51  ;;  %v3980_v0 = vsub.f32 %v3859_v53, %v809_v51 }
 0x13b   : > { %v3983_v21 = vsub.f32 %v3871_v57, %v809_v51  ;;  %v865_v39 = vmul.f32 %v3956_v46, %v3956_v46  ;;  %v873_v20 = vmul.f32 %v3967_v63, %v3967_v63  ;;  %v3989_v58 = vmul.f32 0.020833334, %v779_v32 }
 0x13c   : > { %v895_v47 = vmul.f32 %v3950_v6, %v3950_v6  ;;  %v903_v42 = vmul.f32 %v3953_v2, %v3953_v2  ;;  %v952_v35 = vadd.f32 %v951_v27, %v879_v50  ;;  %v881_v53 = vmul.f32 %v3974_v19, %v3974_v19 }
 0x13d   : > { %v889_v51 = vmul.f32 %v3977_v4, %v3977_v4  ;;  %v973_v57 = vadd.f32 %v873_v20, %v865_v39  ;;  %v4001_v23 = vsub.f32 %v3884_v29, %v3989_v58  ;;  %v4003_v32 = vmul.f32 0.020833334, %v801_v26 }
 0x13e   : > { %v953_v49 = vadd.f32 %v952_v35, %v887_v59  ;;  %v921_v11 = vadd.f32 %v920_v52, %v892_v8  ;;  %v4007_v30 = vsub.f32 %v3667_v25, %v3759_v14  ;;  %v4011_v50 = vsub.f32 %v3685_v37, %v3759_v14 }
 0x13f   : > { %v3159_v27 = vpop.eup %3158  ;;  %v897_v39 = vmul.f32 %v3980_v0, %v3980_v0  ;;  %v974_v20 = vadd.f32 %v973_v57, %v881_v53  ;;  %v4017_v62 = vsub.f32 %v3895_v41, %v4003_v32  ;;  %v862_v35 = vmul.f32 %v3931_v36, %v3931_v36 }
 0x140   : > { %v4022_v8 = vmul.f32 %v3159_v27, %v3781_v16  ;;  %v954_v26 = vadd.f32 %v953_v49, %v895_v47  ;;  %v922_v52 = vadd.f32 %v921_v11, %v3888_v9  ;;  %v870_v14 = vmul.f32 %v3935_v31, %v3935_v31 }
 0x141   : > { %v905_v59 = vmul.f32 %v3983_v21, %v3983_v21  ;;  %v975_v53 = vadd.f32 %v974_v20, %v889_v51  ;;  %v878_v57 = vmul.f32 %v3971_v40, %v3971_v40  ;;  %v886_v44 = vmul.f32 %v4007_v30, %v4007_v30 }
 0x142   : > { %v3161_v33 = vpop.eup %3160  ;;  %v955_v43 = vadd.f32 %v954_v26, %v903_v42  ;;  %v923_v16 = vrot.slane %v922_v52, 4  ;;  %v894_v49 = vmul.f32 %v4011_v50, %v4011_v50  ;;  %v940_v11 = vadd.f32 %v870_v14, %v862_v35 }
 0x143   : > { %v4036_v9 = vmul.f32 %v3161_v33, %v3809_v15  ;;  %v976_v47 = vadd.f32 %v975_v53, %v897_v39  ;;  %v4039_v37 = vmul.f32 %v3159_v27, %v3766_v22  ;;  %v4042_v51 = vmul.f32 %v3159_v27, %v3769_v17  ;;  %v5932_v53 = vld [vmem:[#allocation38_spill] sm:$0xff] }
 0x144   : > { %v956_v20 = vrot.slane %v955_v43, 4  ;;  %v924_v25 = vadd.f32 %v923_v16, %v922_v52  ;;  %v941_v7 = vadd.f32 %v940_v11, %v878_v57  ;;  %v4045_v42 = vmul.f32 %v3161_v33, %v3784_v38  ;;  %v5934_v16 = vld [vmem:[#allocation41_spill] sm:$0xff]  ;;  %v5936_v38 = vld [vmem:[#allocation42_spill] sm:$0xff] }
 0x145   : > { %v977_v26 = vadd.f32 %v976_v47, %v905_v59  ;;  %v4050_v15 = vmul.f32 %v3161_v33, %v3787_v54  ;;  %v4053_v39 = vmul.f32 %v3159_v27, %v3772_v10  ;;  %v4056_v60 = vmul.f32 %v3159_v27, %v5932_v53  ;;  %v5933_v59 = vld [vmem:[#allocation40_spill] sm:$0xff] }
 0x146   : > { %v957_v22 = vadd.f32 %v956_v20, %v955_v43  ;;  %v925_v14 = vrot.slane %v924_v25, 2  ;;  %v942_v17 = vadd.f32 %v941_v7, %v886_v44  ;;  %v4061_v57 = vmul.f32 %v3161_v33, %v5933_v59  ;;  %v5935_v20 = vld [vmem:[#allocation39_spill] sm:$0xff] }
 0x147   : > { %v978_v52 = vrot.slane %v977_v26, 4  ;;  %v4064_v11 = vmul.f32 %v3161_v33, %v5934_v16  ;;  %v4071_v53 = vmul.f32 %v3159_v27, %v5935_v20  ;;  %v4074_v35 = vmul.f32 %v3161_v33, %v5936_v38  ;;  %v5939_v27 = vld [vmem:[#allocation32_spill] sm:$0xff] }
 0x148   : > { %v958_v54 = vrot.slane %v957_v22, 2  ;;  %v926_v47 = vadd.f32 %v925_v14, %v924_v25  ;;  %v943_v10 = vadd.f32 %v942_v17, %v894_v49  ;;  %v5937_v25 = vld [vmem:[#allocation30_spill] sm:$0xff]  ;;  %v4095_v20 = vsub.f32 %v3842_v56, %v3989_v58 }
 0x149   : > { %v979_v7 = vadd.f32 %v978_v52, %v977_v26  ;;  %v4079_v49 = vsub.f32 %v5937_v25, %v3989_v58  ;;  %v4087_v52 = vsub.f32 %v5939_v27, %v3989_v58  ;;  %v4099_v44 = vsub.f32 %v3862_v34, %v3989_v58 }
 0x14a   : > { %v959_v59 = vadd.f32 %v958_v54, %v957_v22  ;;  %v927_v5 = vrot.slane %v926_v47, 1  ;;  %v944_v16 = vadd.f32 %v943_v10, %v3892_v3  ;;  %v5941_v3 = vld [vmem:[#allocation36_spill] sm:$0xff]  ;;  %5943 = vst [vmem:[#allocation39_spill] sm:$0xff] %v4095_v20 }
 0x14b   : > { %5938 = vst [vmem:[#allocation38_spill] sm:$0xff] %v4079_v49  ;;  %v980_v14 = vrot.slane %v979_v7, 2  ;;  %5940 = vst [vmem:[#allocation40_spill] sm:$0xff] %v4087_v52  ;;  %v4091_v54 = vsub.f32 %v5941_v3, %v3989_v58  ;;  %v864_v17 = vmul.f32 %v4079_v49, %v4079_v49  ;;  %v896_v58 = vmul.f32 %v4099_v44, %v4099_v44 }
 0x14c   : > { %v960_v33 = vrot.slane %v959_v59, 1  ;;  %v928_v22 = vadd.f32 %v927_v5, %v926_v47  ;;  %v945_v38 = vrot.slane %v944_v16, 4  ;;  %5944 = vst [vmem:[#allocation42_spill] sm:$0xff] %v4099_v44  ;;  %v872_v47 = vmul.f32 %v4087_v52, %v4087_v52 }
 0x14d   : > { %5942 = vst [vmem:[#allocation41_spill] sm:$0xff] %v4091_v54  ;;  %v981_v10 = vadd.f32 %v980_v14, %v979_v7  ;;  %v880_v7 = vmul.f32 %v4091_v54, %v4091_v54  ;;  %v888_v14 = vmul.f32 %v4095_v20, %v4095_v20  ;;  %v5947_v54 = vld [vmem:[#allocation37_spill] sm:$0xff] }
 0x14e   : > { %v961_v26 = vadd.f32 %v960_v33, %v959_v59  ;;  %v996_v43 = vmul.f32 0.020833334, %v928_v22  ;;  %v946_v5 = vadd.f32 %v945_v38, %v944_v16  ;;  %v962_v49 = vadd.f32 %v872_v47, %v864_v17  ;;  %v5945_v16 = vld [vmem:[#allocation31_spill] sm:$0xff]  ;;  %v5946_v22 = vld [vmem:[#allocation33_spill] sm:$0xff] }
 0x14f   : > { %v982_v3 = vrot.slane %v981_v10, 1  ;;  %v4113_v33 = vsub.f32 %v5945_v16, %v4003_v32  ;;  %v4117_v38 = vsub.f32 %v5946_v22, %v4003_v32  ;;  %v4121_v52 = vsub.f32 %v5947_v54, %v4003_v32 }
 0x150   : > { %v999_v56 = vmul.f32 0.020833334, %v961_v26  ;;  %v1004_v27 = vadd.f32 1e-05, %v996_v43  ;;  %v947_v25 = vrot.slane %v946_v5, 2  ;;  %v963_v26 = vadd.f32 %v962_v49, %v880_v7 }
 0x151   : > { %v983_v59 = vadd.f32 %v982_v3, %v981_v10  ;;  %v4125_v17 = vsub.f32 %v3845_v45, %v4003_v32  ;;  %v4129_v3 = vsub.f32 %v3865_v1, %v4003_v32  ;;  %v866_v10 = vmul.f32 %v4113_v33, %v4113_v33 }
 0x152   : > { %v1007_v20 = vadd.f32 1e-05, %v999_v56  ;;  %3162 = vrsqrt.f32 %v1004_v27  ;;  %v948_v44 = vadd.f32 %v947_v25, %v946_v5  ;;  %v964_v54 = vadd.f32 %v963_v26, %v888_v14 }
 0x153   : > { %v1001_v43 = vmul.f32 0.020833334, %v983_v59  ;;  %v874_v56 = vmul.f32 %v4117_v38, %v4117_v38  ;;  %v904_v49 = vmul.f32 %v4001_v23, %v4001_v23  ;;  %v882_v7 = vmul.f32 %v4121_v52, %v4121_v52 }
 0x154   : > { %3164 = vrsqrt.f32 %v1007_v20  ;;  %v949_v47 = vrot.slane %v948_v44, 1  ;;  %v965_v5 = vadd.f32 %v964_v54, %v896_v58  ;;  %v890_v20 = vmul.f32 %v4125_v17, %v4125_v17 }
 0x155   : > { %v1009_v25 = vadd.f32 1e-05, %v1001_v43  ;;  %v984_v32 = vadd.f32 %v874_v56, %v866_v10  ;;  %v898_v43 = vmul.f32 %v4129_v3, %v4129_v3  ;;  %v906_v10 = vmul.f32 %v4017_v62, %v4017_v62 }
 0x156   : > { %v950_v27 = vadd.f32 %v949_v47, %v948_v44  ;;  %v966_v45 = vadd.f32 %v965_v5, %v904_v49 }
 0x157   : > { %3166 = vrsqrt.f32 %v1009_v25  ;;  %v985_v14 = vadd.f32 %v984_v32, %v882_v7  ;;  %v5948_v25 = vld [vmem:[#allocation57_spill] sm:$0xff] }
 0x158   : > { %v998_v59 = vmul.f32 0.020833334, %v950_v27  ;;  %v967_v22 = vrot.slane %v966_v45, 4 }
 0x159   : > { %v986_v16 = vadd.f32 %v985_v14, %v890_v20 }
 0x15a   : > { %v1006_v26 = vadd.f32 1e-05, %v998_v59  ;;  %v968_v47 = vadd.f32 %v967_v22, %v966_v45 }
 0x15b   : > { %v987_v56 = vadd.f32 %v986_v16, %v898_v43  ;;  %v5949_v16 = vld [vmem:[#allocation43_spill] sm:$0xff] }
 0x15c   : > { %v3163_v58 = vpop.eup %3162  ;;  %3168 = vrsqrt.f32 %v1006_v26  ;;  %v969_v59 = vrot.slane %v968_v47, 2 }
 0x15d   : > { %v1020_v49 = vmul.f32 %v3163_v58, %v5948_v25  ;;  %v1028_v27 = vmul.f32 %v3163_v58, %v3905_v55  ;;  %v1036_v5 = vmul.f32 %v3163_v58, %v3909_v12  ;;  %v1044_v7 = vmul.f32 %v3163_v58, %v3913_v48 }
 0x15e   : > { %v3165_v32 = vpop.eup %3164  ;;  %v988_v20 = vadd.f32 %v987_v56, %v906_v10  ;;  %v1052_v44 = vmul.f32 %v3163_v58, %v3921_v24  ;;  %v1060_v22 = vmul.f32 %v3163_v58, %v5949_v16  ;;  %v970_v26 = vadd.f32 %v969_v59, %v968_v47 }
 0x15f   : > { %v4154_v14 = vmul.f32 %v3165_v32, %v3953_v2  ;;  %v1080_v54 = vpack.c.bf16 %v1028_v27, %v1020_v49  ;;  %v4158_v45 = vmul.f32 %v3165_v32, %v3938_v61  ;;  %v4162_v12 = vmul.f32 %v3165_v32, %v3941_v28 }
 0x160   : > { %v989_v55 = vrot.slane %v988_v20, 4  ;;  %v1088_v43 = vpack.c.bf16 %v1044_v7, %v1036_v5  ;;  %v4165_v10 = vmul.f32 %v3165_v32, %v3944_v18  ;;  %v4168_v2 = vmul.f32 %v3165_v32, %v3947_v13 }
 0x161   : > { %v3167_v48 = vpop.eup %3166  ;;  %1224 = vmatprep.subr.bf16.mxu0 %v1080_v54  ;;  %v4171_v24 = vmul.f32 %v3165_v32, %v3950_v6  ;;  %v5950_v58 = vpack.c.bf16 %v4042_v51, %v4039_v37  ;;  %v971_v28 = vrot.slane %v970_v26, 1  ;;  %v1083_v54 = vpack.c.bf16 %v4162_v12, %v4158_v45  ;;  %v4340_v12 = vpop.permute.xlu1 %1122 }
 0x162   : > { %v4174_v61 = vmul.f32 %v3167_v48, %v3983_v21  ;;  %v990_v47 = vadd.f32 %v989_v55, %v988_v20  ;;  %v4182_v18 = vmul.f32 %v3167_v48, %v3956_v46  ;;  %v4185_v13 = vmul.f32 %v3167_v48, %v3967_v63  ;;  %5964 = vst [vmem:[#allocation43_spill] sm:$0xff] %v4340_v12 }
 0x163   : > { %1225 = vmatpush1.bf16.msra.mxu0 %v5950_v58  ;;  %v1091_v6 = vpack.c.bf16 %v4168_v2, %v4165_v10  ;;  %v4190_v21 = vmul.f32 %v3167_v48, %v3974_v19  ;;  %v972_v37 = vadd.f32 %v971_v28, %v970_v26  ;;  %v4193_v56 = vmul.f32 %v3167_v48, %v3977_v4  ;;  %v5953_v26 = vld [vmem:[#allocation46_spill] sm:$0xff] }
 0x164   : > { %1226 = vmatprep.subr.bf16.mxu0 %v1088_v43  ;;  %v991_v51 = vrot.slane %v990_v47, 2  ;;  %v1099_v25 = vpack.c.bf16 %v4154_v14, %v4171_v24  ;;  %v1096_v49 = vpack.c.bf16 %v1060_v22, %v1052_v44  ;;  %v1085_v46 = vpack.c.bf16 %v4185_v13, %v4182_v18 }
 0x165   : > { %v4200_v63 = vmul.f32 %v3167_v48, %v3980_v0  ;;  %v5951_v19 = vpack.c.bf16 %v4056_v60, %v4053_v39  ;;  %v1000_v5 = vmul.f32 0.020833334, %v972_v37  ;;  %v1093_v4 = vpack.c.bf16 %v4193_v56, %v4190_v21  ;;  %v4214_v60 = vld [vmem:[%s5747_s3] sm:$0xff]  }
 0x166   : > { %v3169_v27 = vpop.eup %3168  ;;  %v992_v7 = vadd.f32 %v991_v51, %v990_v47  ;;  %v5954_v48 = vpack.c.bf16 %v4050_v15, %v4045_v42  ;;  %v5956_v28 = vpack.c.bf16 %v4064_v11, %v4061_v57  ;;  %v5957_v15 = vpack.c.bf16 %v4036_v9, %v4074_v35  ;;  %v5958_v47 = vld [vmem:[#allocation38_spill] sm:$0xff]  ;;  %v5959_v51 = vld [vmem:[#allocation40_spill] sm:$0xff]  ;;  %v5960_v11 = vld [vmem:[#allocation41_spill] sm:$0xff] }
 0x167   : > { %1227 = vmatpush1.bf16.msra.mxu0 %v5951_v19  ;;  %v1022_v32 = vmul.f32 %v3169_v27, %v3931_v36  ;;  %v1030_v44 = vmul.f32 %v3169_v27, %v3935_v31  ;;  %v1038_v59 = vmul.f32 %v3169_v27, %v3971_v40  ;;  %v1046_v20 = vmul.f32 %v3169_v27, %v4007_v30 }
 0x168   : > { %1228 = vmatprep.subr.bf16.mxu0 %v1096_v49  ;;  %v1008_v0 = vadd.f32 1e-05, %v1000_v5  ;;  %v993_v16 = vrot.slane %v992_v7, 1  ;;  %v1101_v39 = vpack.c.bf16 %v4174_v61, %v4200_v63  ;;  %v5952_v36 = vpack.c.bf16 %v4022_v8, %v4071_v53  ;;  %v5962_v5 = vld [vmem:[#allocation42_spill] sm:$0xff] }
 0x169   : > { %v1082_v22 = vpack.c.bf16 %v1030_v44, %v1022_v32  ;;  %v1090_v30 = vpack.c.bf16 %v1046_v20, %v1038_v59  ;;  %v1054_v40 = vmul.f32 %v3169_v27, %v4011_v50  ;;  %v1062_v55 = vmul.f32 %v3169_v27, %v5953_v26  ;;  %v4235_v50 = vld [vmem:[%s5747_s3 + $0x8] sm:$0xff]   ;;  %v3154_v59 = vld [vmem:[%s5747_s3 + $0x10] sm:$0xff]  }
 0x16a   : > { %3170 = vrsqrt.f32 %v1008_v0  ;;  %v994_v31 = vadd.f32 %v993_v16, %v992_v7  ;;  %v5955_v8 = vmov 0   ;;  %v5961_v27 = vld [vmem:[#allocation39_spill] sm:$0xff] }
 0x16b   : > { %1229 = vmatpush1.bf16.msra.mxu0 %v5952_v36  ;;  %1317 = vmatprep.subr.bf16.mxu1 %v1082_v22  ;;  %v1098_v58 = vpack.c.bf16 %v1062_v55, %v1054_v40 }
 0x16c   : > { %1318 = vmatpush1.bf16.msra.mxu1 %v5954_v48  ;;  %v1002_v43 = vmul.f32 0.020833334, %v994_v31 }
 0x16d   : > { %1319 = vmatprep.subr.bf16.mxu1 %v1090_v30 }
 0x16e   : > { %3063 = vmatmul.mubr.msk.bf16.vlgmr.msra.gmra.mrb[24].mxu0 %vm1205_vm2, %v4214_v60  ;;  %v1010_v53 = vadd.f32 1e-05, %v1002_v43 }
 0x16f   : > { %1266 = vmatprep.mubr.bf16.mxu0 %v5955_v8 }
 0x170   : > { %1320 = vmatpush1.bf16.msra.mxu1 %v5956_v28  ;;  %3172 = vrsqrt.f32 %v1010_v53 }
 0x171   : > { %1321 = vmatprep.subr.bf16.mxu1 %v1098_v58 }
 0x174   : > { %v3171_v42 = vpop.eup %3170  ;;  %1322 = vmatpush1.bf16.msra.mxu1 %v5957_v15 }
 0x175   : > { %v1024_v37 = vmul.f32 %v3171_v42, %v5958_v47  ;;  %v1032_v57 = vmul.f32 %v3171_v42, %v5959_v51  ;;  %v1040_v49 = vmul.f32 %v3171_v42, %v5960_v11  ;;  %v1048_v19 = vmul.f32 %v3171_v42, %v5961_v27 }
 0x176   : > { %3064 = vmatmul.mubr.msk.bf16.gmra.mrb[28].mxu0 %vm1205_vm2, %v4235_v50  ;;  %v1056_v7 = vmul.f32 %v3171_v42, %v5962_v5  ;;  %v1064_v32 = vmul.f32 %v3171_v42, %v4001_v23 }
 0x177   : > { %1276 = vmatprep.mubr.bf16.mxu0 %v5955_v8  ;;  %3069 = vmatmul.mubr.msk.bf16.vlgmr.msra.gmra.mrb[24].mxu1 %vm1205_vm2, %v4214_v60  ;;  %v1084_v9 = vpack.c.bf16 %v1032_v57, %v1024_v37  ;;  %v1092_v35 = vpack.c.bf16 %v1048_v19, %v1040_v49 }
 0x178   : > { %1359 = vmatprep.mubr.bf16.mxu1 %v5955_v8  ;;  %v1100_v44 = vpack.c.bf16 %v1064_v32, %v1056_v7 }
 0x179   : > { %1410 = vmatprep.subr.bf16.mxu0 %v1084_v9 }
 0x17a   : > { %v3173_v20 = vpop.eup %3172  ;;  %1411 = vmatpush1.bf16.msra.mxu0 %v1083_v54 }
 0x17b   : > { %v1026_v23 = vmul.f32 %v3173_v20, %v4113_v33  ;;  %v1034_v0 = vmul.f32 %v3173_v20, %v4117_v38  ;;  %1412 = vmatprep.subr.bf16.mxu0 %v1092_v35  ;;  %v1042_v16 = vmul.f32 %v3173_v20, %v4121_v52  ;;  %v1050_v22 = vmul.f32 %v3173_v20, %v4125_v17  ;;  %v3156_v52 = vld [vmem:[%s5747_s3 + $0x20] sm:$0xff]   ;;  %v3157_v38 = vld [vmem:[%s5747_s3 + $0x28] sm:$0xff]   ;;  %v4335_v17 = vpop.permute.xlu0 %1117 }
 0x17c   : > { %v1058_v36 = vmul.f32 %v3173_v20, %v4129_v3  ;;  %v1066_v31 = vmul.f32 %v3173_v20, %v4017_v62  ;;  %v3155_v62 = vld [vmem:[%s5747_s3 + $0x18] sm:$0xff]   ;;  %5963 = vst [vmem:[#allocation57_spill] sm:$0xff] %v4335_v17 }
 0x17d   : > { %v1086_v30 = vpack.c.bf16 %v1034_v0, %v1026_v23  ;;  %v1094_v40 = vpack.c.bf16 %v1050_v22, %v1042_v16 }
 0x17e   : > { %3065 = vmatmul.mubr.msk.bf16.gmra.mrb[32].mxu0 %vm1205_vm2, %v3154_v59  ;;  %v1102_v33 = vpack.c.bf16 %v1066_v31, %v1058_v36  ;;  %v4399_v31 = vpop.permute.xlu1 %1132 }
 0x17f   : > { %1413 = vmatpush1.bf16.msra.mxu0 %v1091_v6  ;;  %1286 = vmatprep.mubr.bf16.mxu0 %v5955_v8  ;;  %5967 = vst [vmem:[#allocation40_spill] sm:$0xff] %v4399_v31 }
 0x180   : > { %3070 = vmatmul.mubr.msk.bf16.gmra.mrb[28].mxu1 %vm1205_vm2, %v4235_v50  ;;  %1503 = vmatprep.subr.bf16.mxu1 %v1086_v30 }
 0x181   : > { %1504 = vmatpush1.bf16.msra.mxu1 %v1085_v46  ;;  %1369 = vmatprep.mubr.bf16.mxu1 %v5955_v8 }
 0x182   : > { %1505 = vmatprep.subr.bf16.mxu1 %v1094_v40  ;;  %1414 = vmatprep.subr.bf16.mxu0 %v1100_v44 }
 0x183   : > { %1415 = vmatpush1.bf16.msra.mxu0 %v1099_v25 }
 0x185   : > { %1506 = vmatpush1.bf16.msra.mxu1 %v1093_v4  ;;  %v4362_v4 = vpop.permute.xlu0 %1127 }
 0x186   : > { %1507 = vmatprep.subr.bf16.mxu1 %v1102_v33  ;;  %3066 = vmatmul.mubr.msk.bf16.gmra.mrb[36].mxu0 %vm1205_vm2, %v3155_v62  ;;  %5965 = vst [vmem:[#allocation46_spill] sm:$0xff] %v4362_v4 }
 0x187   : > { %1296 = vmatprep.mubr.bf16.mxu0 %v5955_v8 }
 0x188   : > { %3071 = vmatmul.mubr.msk.bf16.gmra.mrb[32].mxu1 %vm1205_vm2, %v3154_v59 }
 0x189   : > { %1508 = vmatpush1.bf16.msra.mxu1 %v1101_v39  ;;  %1379 = vmatprep.mubr.bf16.mxu1 %v5955_v8 }
 0x18e   : > { %3067 = vmatmul.mubr.msk.bf16.gmra.mrb[40].mxu0 %vm1205_vm2, %v3156_v52 }
 0x18f   : > { %1306 = vmatprep.mubr.bf16.mxu0 %v5955_v8 }
 0x190   : > { %3072 = vmatmul.mubr.msk.bf16.gmra.mrb[36].mxu1 %vm1205_vm2, %v3155_v62 }
 0x191   : > { %1389 = vmatprep.mubr.bf16.mxu1 %v5955_v8 }
 0x196   : > { %3068 = vmatmul.mubr.msk.bf16.gmra.mrb[44].mxu0 %vm1205_vm2, %v3157_v38 }
 0x197   : > { %1442 = vmatprep.mubr.bf16.mxu0 %v5955_v8 }
 0x198   : > { %3073 = vmatmul.mubr.msk.bf16.gmra.mrb[40].mxu1 %vm1205_vm2, %v3156_v52 }
 0x199   : > { %1399 = vmatprep.mubr.bf16.mxu1 %v5955_v8 }
 0x19e   : > { %3075 = vmatmul.mubr.msk.bf16.vlgmr.msra.gmra.mrb[48].mxu0 %vm1205_vm2, %v4214_v60 }
 0x19f   : > { %1452 = vmatprep.mubr.bf16.mxu0 %v5955_v8 }
 0x1a0   : > { %3074 = vmatmul.mubr.msk.bf16.gmra.mrb[44].mxu1 %vm1205_vm2, %v3157_v38 }
 0x1a1   : > { %1535 = vmatprep.mubr.bf16.mxu1 %v5955_v8 }
 0x1a6   : > { %3076 = vmatmul.mubr.msk.bf16.gmra.mrb[52].mxu0 %vm1205_vm2, %v4235_v50 }
 0x1a7   : > { %1462 = vmatprep.mubr.bf16.mxu0 %v5955_v8 }
 0x1a8   : > { %3081 = vmatmul.mubr.msk.bf16.vlgmr.msra.gmra.mrb[48].mxu1 %vm1205_vm2, %v4214_v60 }
 0x1a9   : > { %1545 = vmatprep.mubr.bf16.mxu1 %v5955_v8 }
 0x1ae   : > { %3077 = vmatmul.mubr.msk.bf16.gmra.mrb[56].mxu0 %vm1205_vm2, %v3154_v59 }
 0x1af   : > { %1472 = vmatprep.mubr.bf16.mxu0 %v5955_v8 }
 0x1b0   : > { %3082 = vmatmul.mubr.msk.bf16.gmra.mrb[52].mxu1 %vm1205_vm2, %v4235_v50 }
 0x1b1   : > { %1555 = vmatprep.mubr.bf16.mxu1 %v5955_v8 }
 0x1b6   : > { %3078 = vmatmul.mubr.msk.bf16.gmra.mrb[60].mxu0 %vm1205_vm2, %v3155_v62 }
 0x1b7   : > { %1482 = vmatprep.mubr.bf16.mxu0 %v5955_v8 }
 0x1b8   : > { %3083 = vmatmul.mubr.msk.bf16.gmra.mrb[56].mxu1 %vm1205_vm2, %v3154_v59 }
 0x1b9   : > { %1565 = vmatprep.mubr.bf16.mxu1 %v5955_v8 }
 0x1be   : > { %3079 = vmatmul.mubr.msk.bf16.gmra.mrb[64].mxu0 %vm1205_vm2, %v3156_v52 }
 0x1bf   : > { %1492 = vmatprep.mubr.bf16.mxu0 %v5955_v8 }
 0x1c0   : > { %3084 = vmatmul.mubr.msk.bf16.gmra.mrb[60].mxu1 %vm1205_vm2, %v3155_v62 }
 0x1c1   : > { %1575 = vmatprep.mubr.bf16.mxu1 %v5955_v8 }
 0x1c6   : > { %3080 = vmatmul.mubr.msk.bf16.gmra.mrb[68].mxu0 %vm1205_vm2, %v3157_v38 }
 0x1c7   : > { %2570 = vmatprep.mubr.bf16.mxu0 %v5955_v8 }
 0x1c8   : > { %3085 = vmatmul.mubr.msk.bf16.gmra.mrb[64].mxu1 %vm1205_vm2, %v3156_v52 }
 0x1c9   : > { %1585 = vmatprep.mubr.bf16.mxu1 %v5955_v8 }
 0x1d0   : > { %3086 = vmatmul.mubr.msk.bf16.gmra.mrb[68].mxu1 %vm1205_vm2, %v3157_v38 }
 0x1d1   : > { %2611 = vmatprep.mubr.bf16.mxu1 %v5955_v8 }
 0x241   : > { %v1258_v3 = vpop.f32.mrb[24].mxu0 }
 0x242   : > { %v4338_v14 = vadd.f32 %v1258_v3, %v4335_v17  ;;  %v1260_v45 = vpop.f32.mrb[25].mxu0 }
 0x243   : > { %v4343_v10 = vadd.f32 %v1260_v45, %v4335_v17  ;;  %v1262_v2 = vpop.f32.mrb[26].mxu0 }
 0x244   : > { %v1596_v24 = vmul.f32 %v4338_v14, %v4338_v14  ;;  %v4348_v61 = vadd.f32 %v1262_v2, %v4340_v12  ;;  %v1264_v54 = vpop.f32.mrb[27].mxu0 }
 0x245   : > { %v1597_v18 = vmul.f32 %v4343_v10, %v4343_v10  ;;  %v4353_v13 = vadd.f32 %v1264_v54, %v4340_v12 }
 0x246   : > { %v1692_v6 = vmul.f32 %v1596_v24, %v4338_v14  ;;  %v1604_v21 = vmul.f32 %v4348_v61, %v4348_v61 }
 0x247   : > { %v1693_v56 = vmul.f32 %v1597_v18, %v4343_v10  ;;  %v1605_v25 = vmul.f32 %v4353_v13, %v4353_v13 }
 0x248   : > { %v1788_v46 = vmul.f32 0.044715, %v1692_v6  ;;  %v1700_v63 = vmul.f32 %v1604_v21, %v4348_v61 }
 0x249   : > { %v1789_v60 = vmul.f32 0.044715, %v1693_v56  ;;  %v1701_v39 = vmul.f32 %v1605_v25, %v4353_v13  ;;  %v1268_v26 = vpop.f32.mrb[28].mxu0 }
 0x24a   : > { %v1884_v55 = vadd.f32 %v1788_v46, %v4338_v14  ;;  %v1796_v48 = vmul.f32 0.044715, %v1700_v63  ;;  %v4367_v43 = vadd.f32 %v1268_v26, %v4362_v4  ;;  %v1270_v53 = vpop.f32.mrb[29].mxu0  ;;  %v1351_v58 = vpop.f32.mrb[24].mxu1 }
 0x24b   : > { %v1885_v28 = vadd.f32 %v1789_v60, %v4343_v10  ;;  %v1797_v50 = vmul.f32 0.044715, %v1701_v39  ;;  %v4371_v42 = vadd.f32 %v1270_v53, %v4362_v4  ;;  %v1272_v15 = vpop.f32.mrb[30].mxu0  ;;  %v4374_v37 = vadd.f32 %v1351_v58, %v4335_v17  ;;  %v1353_v51 = vpop.f32.mrb[25].mxu1 }
 0x24c   : > { %v1980_v47 = vmul.f32 0.7978846, %v1884_v55  ;;  %v1892_v57 = vadd.f32 %v1796_v48, %v4348_v61  ;;  %v1612_v11 = vmul.f32 %v4367_v43, %v4367_v43  ;;  %v1274_v49 = vpop.f32.mrb[31].mxu0  ;;  %v4380_v19 = vadd.f32 %v1353_v51, %v4335_v17  ;;  %v1355_v5 = vpop.f32.mrb[26].mxu1 }
 0x24d   : > { %5966 = vst [vmem:[#allocation38_spill] sm:$0xff] %v4371_v42  ;;  %v1981_v27 = vmul.f32 0.7978846, %v1885_v28  ;;  %v1893_v7 = vadd.f32 %v1797_v50, %v4353_v13  ;;  %v1613_v32 = vmul.f32 %v4371_v42, %v4371_v42  ;;  %v1598_v9 = vmul.f32 %v4374_v37, %v4374_v37  ;;  %v1357_v59 = vpop.f32.mrb[27].mxu1 }
 0x24e   : > { %3174 = vtanh.f32 %v1980_v47  ;;  %v1988_v35 = vmul.f32 0.7978846, %v1892_v57  ;;  %v4388_v44 = vadd.f32 %v1355_v5, %v4340_v12  ;;  %v1599_v20 = vmul.f32 %v4380_v19, %v4380_v19 }
 0x24f   : > { %3176 = vtanh.f32 %v1981_v27  ;;  %v1989_v23 = vmul.f32 0.7978846, %v1893_v7  ;;  %v4393_v0 = vadd.f32 %v1357_v59, %v4340_v12  ;;  %v1694_v16 = vmul.f32 %v1598_v9, %v4374_v37 }
 0x250   : > { %3178 = vtanh.f32 %v1988_v35  ;;  %v1606_v22 = vmul.f32 %v4388_v44, %v4388_v44  ;;  %v1708_v36 = vmul.f32 %v1612_v11, %v4367_v43  ;;  %v1695_v30 = vmul.f32 %v1599_v20, %v4380_v19 }
 0x251   : > { %3180 = vtanh.f32 %v1989_v23  ;;  %v1607_v40 = vmul.f32 %v4393_v0, %v4393_v0  ;;  %v1709_v33 = vmul.f32 %v1613_v32, %v4371_v42  ;;  %v4405_v62 = vpop.f32.mrb[32].mxu0  ;;  %v1790_v52 = vmul.f32 0.044715, %v1694_v16 }
 0x252   : > { %v1702_v38 = vmul.f32 %v1606_v22, %v4388_v44  ;;  %v1804_v3 = vmul.f32 0.044715, %v1708_v36  ;;  %v4409_v45 = vadd.f32 %v1272_v15, %v4399_v31  ;;  %v4411_v2 = vpop.f32.mrb[33].mxu0  ;;  %v1791_v24 = vmul.f32 0.044715, %v1695_v30 }
 0x253   : > { %v1703_v54 = vmul.f32 %v1607_v40, %v4393_v0  ;;  %v1361_v18 = vpop.f32.mrb[28].mxu1  ;;  %v1805_v6 = vmul.f32 0.044715, %v1709_v33  ;;  %v4415_v21 = vadd.f32 %v1274_v49, %v4399_v31  ;;  %v4417_v56 = vpop.f32.mrb[34].mxu0  ;;  %v1886_v25 = vadd.f32 %v1790_v52, %v4374_v37 }
 0x254   : > { %v1798_v46 = vmul.f32 0.044715, %v1702_v38  ;;  %v1900_v63 = vadd.f32 %v1804_v3, %v4367_v43  ;;  %v4422_v60 = vadd.f32 %v1361_v18, %v4362_v4  ;;  %v1363_v39 = vpop.f32.mrb[29].mxu1  ;;  %v4424_v26 = vpop.f32.mrb[35].mxu0  ;;  %v1887_v55 = vadd.f32 %v1791_v24, %v4380_v19 }
 0x255   : > { %5968 = vst [vmem:[#allocation41_spill] sm:$0xff] %v4415_v21  ;;  %v1799_v48 = vmul.f32 0.044715, %v1703_v54  ;;  %v1901_v53 = vadd.f32 %v1805_v6, %v4371_v42  ;;  %v4429_v58 = vadd.f32 %v1363_v39, %v4362_v4  ;;  %v1365_v28 = vpop.f32.mrb[30].mxu1  ;;  %v1982_v50 = vmul.f32 0.7978846, %v1886_v25 }
 0x256   : > { %v1894_v15 = vadd.f32 %v1798_v46, %v4388_v44  ;;  %v1996_v47 = vmul.f32 0.7978846, %v1900_v63  ;;  %v1614_v51 = vmul.f32 %v4422_v60, %v4422_v60  ;;  %v1367_v57 = vpop.f32.mrb[31].mxu1  ;;  %v1983_v11 = vmul.f32 0.7978846, %v1887_v55 }
 0x257   : > { %5969 = vst [vmem:[#allocation39_spill] sm:$0xff] %v4429_v58  ;;  %v1895_v49 = vadd.f32 %v1799_v48, %v4393_v0  ;;  %v1997_v27 = vmul.f32 0.7978846, %v1901_v53  ;;  %v1615_v5 = vmul.f32 %v4429_v58, %v4429_v58  ;;  %3182 = vtanh.f32 %v1982_v50 }
 0x258   : > { %v3175_v7 = vpop.eup %3174  ;;  %v1990_v32 = vmul.f32 0.7978846, %v1894_v15  ;;  %v1710_v9 = vmul.f32 %v1614_v51, %v4422_v60  ;;  %v1620_v35 = vmul.f32 %v4409_v45, %v4409_v45  ;;  %3184 = vtanh.f32 %v1983_v11  ;;  %v4466_v15 = vpop.permute.xlu0 %1137 }
 0x259   : > { %v4440_v59 = vpop.eup %3176  ;;  %v2172_v20 = vadd.f32 1.0, %v3175_v7  ;;  %v1991_v23 = vmul.f32 0.7978846, %v1895_v49  ;;  %v1711_v16 = vmul.f32 %v1615_v5, %v4429_v58  ;;  %v4443_v22 = vpop.f32.mrb[36].mxu0  ;;  %v4447_v33 = vadd.f32 %v1365_v28, %v4399_v31  ;;  %5970 = vst [vmem:[#allocation42_spill] sm:$0xff] %v4466_v15 }
 0x25a   : > { %v3179_v36 = vpop.eup %3178  ;;  %3186 = vtanh.f32 %v1990_v32  ;;  %v1806_v30 = vmul.f32 0.044715, %v1710_v9  ;;  %v1716_v40 = vmul.f32 %v1620_v35, %v4409_v45  ;;  %v4449_v52 = vpop.f32.mrb[37].mxu0  ;;  %v1621_v49 = vmul.f32 %v4415_v21, %v4415_v21 }
 0x25b   : > { %v4451_v38 = vpop.eup %3180  ;;  %v2268_v3 = vmul.f32 0.5, %v2172_v20  ;;  %v2180_v24 = vadd.f32 1.0, %v3179_v36  ;;  %3188 = vtanh.f32 %v1991_v23  ;;  %v1807_v54 = vmul.f32 0.044715, %v1711_v16  ;;  %v1371_v18 = vpop.f32.mrb[32].mxu1 }
 0x25c   : > { %v4453_v6 = vpop.f32.mrb[38].mxu0  ;;  %3190 = vtanh.f32 %v1996_v47  ;;  %v1902_v25 = vadd.f32 %v1806_v30, %v4422_v60  ;;  %v1812_v46 = vmul.f32 0.044715, %v1716_v40  ;;  %v1622_v63 = vmul.f32 %v4447_v33, %v4447_v33  ;;  %v1373_v39 = vpop.f32.mrb[33].mxu1 }
 0x25d   : > { %v4458_v55 = vpop.f32.mrb[39].mxu0  ;;  %v4461_v48 = vmul.f32 %v2268_v3, %v4338_v14  ;;  %v2276_v53 = vmul.f32 0.5, %v2180_v24  ;;  %3192 = vtanh.f32 %v1997_v27  ;;  %v1903_v28 = vadd.f32 %v1807_v54, %v4429_v58  ;;  %v4464_v50 = vpop.f32.mrb[34].mxu1 }
 0x25e   : > { %v1998_v47 = vmul.f32 0.7978846, %v1902_v25  ;;  %v1908_v51 = vadd.f32 %v1812_v46, %v4409_v45  ;;  %v1718_v11 = vmul.f32 %v1622_v63, %v4447_v33  ;;  %v4472_v5 = vpop.f32.mrb[35].mxu1  ;;  %v4478_v7 = vadd.f32 %v1367_v57, %v4399_v31  ;;  %v4590_v12 = vpop.permute.xlu0 %1147 }
 0x25f   : > { %v4475_v14 = vmul.f32 %v2276_v53, %v4348_v61  ;;  %v1999_v27 = vmul.f32 0.7978846, %v1903_v28  ;;  %v4482_v32 = vadd.f32 %v4405_v62, %v4466_v15  ;;  %v1717_v20 = vmul.f32 %v1621_v49, %v4415_v21  ;;  %5979 = vst [vmem:[#allocation66_spill] sm:$0xff] %v4590_v12 }
 0x260   : > { %5971 = vst [vmem:[#allocation58_spill] sm:$0xff] %v4478_v7  ;;  %3194 = vtanh.f32 %v1998_v47  ;;  %v2004_v9 = vmul.f32 0.7978846, %v1908_v51  ;;  %v1814_v35 = vmul.f32 0.044715, %v1718_v11  ;;  %v1623_v23 = vmul.f32 %v4478_v7, %v4478_v7 }
 0x261   : > { %3196 = vtanh.f32 %v1999_v27  ;;  %v1628_v61 = vmul.f32 %v4482_v32, %v4482_v32  ;;  %v4490_v16 = vadd.f32 %v1371_v18, %v4466_v15  ;;  %v4492_v57 = vpop.f32.mrb[40].mxu0  ;;  %v3183_v36 = vpop.eup %3182  ;;  %v1813_v30 = vmul.f32 0.044715, %v1717_v20 }
 0x262   : > { %3198 = vtanh.f32 %v2004_v9  ;;  %v1910_v62 = vadd.f32 %v1814_v35, %v4447_v33  ;;  %v4497_v40 = vadd.f32 %v4411_v2, %v4466_v15  ;;  %v4499_v3 = vpop.f32.mrb[41].mxu0  ;;  %v4501_v24 = vpop.eup %3184  ;;  %v2174_v54 = vadd.f32 1.0, %v3183_v36 }
 0x263   : > { %v1719_v25 = vmul.f32 %v1623_v23, %v4478_v7  ;;  %v1724_v18 = vmul.f32 %v1628_v61, %v4482_v32  ;;  %v1630_v46 = vmul.f32 %v4490_v16, %v4490_v16  ;;  %v4507_v63 = vpop.f32.mrb[36].mxu1  ;;  %v4509_v53 = vpop.f32.mrb[42].mxu0  ;;  %v1909_v2 = vadd.f32 %v1813_v30, %v4415_v21 }
 0x264   : > { %5972 = vst [vmem:[#allocation59_spill] sm:$0xff] %v4497_v40  ;;  %v3187_v28 = vpop.eup %3186  ;;  %v2006_v47 = vmul.f32 0.7978846, %v1910_v62  ;;  %v1629_v51 = vmul.f32 %v4497_v40, %v4497_v40  ;;  %v4515_v11 = vadd.f32 %v1373_v39, %v4466_v15  ;;  %v4517_v49 = vpop.f32.mrb[37].mxu1  ;;  %v2270_v35 = vmul.f32 0.5, %v2174_v54 }
 0x265   : > { %v4519_v27 = vpop.f32.mrb[43].mxu0  ;;  %v4521_v9 = vpop.eup %3188  ;;  %v2182_v20 = vadd.f32 1.0, %v3187_v28  ;;  %v1815_v23 = vmul.f32 0.044715, %v1719_v25  ;;  %v1820_v61 = vmul.f32 0.044715, %v1724_v18  ;;  %v1726_v30 = vmul.f32 %v1630_v46, %v4490_v16 }
 0x266   : > { %5973 = vst [vmem:[#allocation60_spill] sm:$0xff] %v4515_v11  ;;  %v3191_v36 = vpop.eup %3190  ;;  %3200 = vtanh.f32 %v2006_v47  ;;  %v2005_v62 = vmul.f32 0.7978846, %v1909_v2  ;;  %v1725_v1 = vmul.f32 %v1629_v51, %v4497_v40  ;;  %v4525_v41 = vpop.f32.mrb[38].mxu1  ;;  %v4530_v34 = vmul.f32 %v2270_v35, %v4374_v37 }
 0x267   : > { %v4527_v39 = vpop.eup %3192  ;;  %v2278_v29 = vmul.f32 0.5, %v2182_v20  ;;  %v2188_v8 = vadd.f32 1.0, %v3191_v36  ;;  %v1911_v54 = vadd.f32 %v1815_v23, %v4478_v7  ;;  %v4533_v25 = vpop.f32.mrb[39].mxu1  ;;  %v1916_v18 = vadd.f32 %v1820_v61, %v4482_v32 }
 0x268   : > { %3202 = vtanh.f32 %v2005_v62  ;;  %v1822_v28 = vmul.f32 0.044715, %v1726_v30  ;;  %v1821_v46 = vmul.f32 0.044715, %v1725_v1  ;;  %v4536_v47 = vpop.permute.xlu1 %1142  ;;  %v1631_v37 = vmul.f32 %v4515_v11, %v4515_v11 }
 0x269   : > { %5974 = vst [vmem:[#allocation61_spill] sm:$0xff] %v4536_v47  ;;  %v4539_v2 = vmul.f32 %v2278_v29, %v4388_v44  ;;  %v2284_v51 = vmul.f32 0.5, %v2188_v8  ;;  %v2007_v15 = vmul.f32 0.7978846, %v1911_v54  ;;  %v4543_v35 = vpop.f32.mrb[44].mxu0  ;;  %v4549_v1 = vadd.f32 %v4417_v56, %v4536_v47 }
 0x26a   : > { %v3195_v20 = vpop.eup %3194  ;;  %v2012_v23 = vmul.f32 0.7978846, %v1916_v18  ;;  %v1918_v36 = vadd.f32 %v1822_v28, %v4490_v16  ;;  %v1917_v61 = vadd.f32 %v1821_v46, %v4497_v40  ;;  %v4551_v62 = vpop.f32.mrb[45].mxu0  ;;  %v1727_v30 = vmul.f32 %v1631_v37, %v4515_v11 }
 0x26b   : > { %v4553_v29 = vpop.eup %3196  ;;  %v4556_v8 = vmul.f32 %v2284_v51, %v4367_v43  ;;  %v2190_v44 = vadd.f32 1.0, %v3195_v20  ;;  %3204 = vtanh.f32 %v2007_v15  ;;  %v4559_v54 = vpop.f32.mrb[40].mxu1  ;;  %v1636_v31 = vmul.f32 %v4549_v1, %v4549_v1 }
 0x26c   : > { %v4561_v18 = vpop.f32.mrb[46].mxu0  ;;  %v3199_v28 = vpop.eup %3198  ;;  %3206 = vtanh.f32 %v2012_v23  ;;  %v2014_v46 = vmul.f32 0.7978846, %v1918_v36  ;;  %v2013_v56 = vmul.f32 0.7978846, %v1917_v61  ;;  %v4571_v37 = vadd.f32 %v4464_v50, %v4536_v47 }
 0x26d   : > { %5975 = vst [vmem:[#allocation62_spill] sm:$0xff] %v4556_v8  ;;  %v4565_v4 = vpop.f32.mrb[41].mxu1  ;;  %v4567_v40 = vpop.f32.mrb[47].mxu0  ;;  %v2286_v43 = vmul.f32 0.5, %v2190_v44  ;;  %v2196_v51 = vadd.f32 1.0, %v3199_v28  ;;  %v1732_v23 = vmul.f32 %v1636_v31, %v4549_v1  ;;  %v4578_v36 = vadd.f32 %v4424_v26, %v4536_v47 }
 0x26e   : > { %v1823_v15 = vmul.f32 0.044715, %v1727_v30  ;;  %v4573_v20 = vpop.f32.mrb[42].mxu1  ;;  %3208 = vtanh.f32 %v2014_v46  ;;  %v4582_v61 = vadd.f32 %v4472_v5, %v4536_v47  ;;  %v1638_v26 = vmul.f32 %v4571_v37, %v4571_v37 }
 0x26f   : > { %5976 = vst [vmem:[#allocation63_spill] sm:$0xff] %v4578_v36  ;;  %v4584_v44 = vpop.f32.mrb[43].mxu1  ;;  %v4587_v30 = vmul.f32 %v2286_v43, %v4422_v60  ;;  %v2292_v50 = vmul.f32 0.5, %v2196_v51  ;;  %3210 = vtanh.f32 %v2013_v56  ;;  %v1828_v31 = vmul.f32 0.044715, %v1732_v23 }
 0x270   : > { %5977 = vst [vmem:[#allocation64_spill] sm:$0xff] %v4582_v61  ;;  %v1919_v28 = vadd.f32 %v1823_v15, %v4515_v11  ;;  %v3201_v46 = vpop.eup %3200  ;;  %v1637_v5 = vmul.f32 %v4578_v36, %v4578_v36  ;;  %v1639_v47 = vmul.f32 %v4582_v61, %v4582_v61  ;;  %v4603_v51 = vadd.f32 %v4443_v22, %v4590_v12 }
 0x271   : > { %5978 = vst [vmem:[#allocation65_spill] sm:$0xff] %v4587_v30  ;;  %v4599_v60 = vmul.f32 %v2292_v50, %v4409_v45  ;;  %v2198_v43 = vadd.f32 1.0, %v3201_v46  ;;  %v4605_v15 = vpop.f32.mrb[48].mxu0  ;;  %v1924_v11 = vadd.f32 %v1828_v31, %v4549_v1  ;;  %v1734_v17 = vmul.f32 %v1638_v26, %v4571_v37 }
 0x272   : > { %v2015_v56 = vmul.f32 0.7978846, %v1919_v28  ;;  %5981 = vst [vmem:[#allocation68_spill] sm:$0xff] %v4605_v15  ;;  %v4607_v23 = vpop.eup %3202  ;;  %v1733_v30 = vmul.f32 %v1637_v5, %v4578_v36  ;;  %v1735_v7 = vmul.f32 %v1639_v47, %v4582_v61  ;;  %v4613_v45 = vpop.f32.mrb[49].mxu0  ;;  %v1644_v22 = vmul.f32 %v4603_v51, %v4603_v51 }
 0x273   : > { %5980 = vst [vmem:[#allocation67_spill] sm:$0xff] %v4599_v60  ;;  %5982 = vst [vmem:[#allocation69_spill] sm:$0xff] %v4613_v45  ;;  %v2294_v50 = vmul.f32 0.5, %v2198_v43  ;;  %v4619_v28 = vadd.f32 %v4507_v63, %v4590_v12  ;;  %v4621_v46 = vpop.f32.mrb[44].mxu1  ;;  %v4623_v31 = vpop.f32.mrb[50].mxu0  ;;  %v4627_v47 = vadd.f32 %v4449_v52, %v4590_v12 }
 0x274   : > { %3212 = vtanh.f32 %v2015_v56  ;;  %5983 = vst [vmem:[#allocation70_spill] sm:$0xff] %v4623_v31  ;;  %v2020_v26 = vmul.f32 0.7978846, %v1924_v11  ;;  %v1830_v15 = vmul.f32 0.044715, %v1734_v17  ;;  %v1740_v63 = vmul.f32 %v1644_v22, %v4603_v51  ;;  %v4637_v8 = vpop.f32.mrb[45].mxu1 }
 0x275   : > { %v1829_v5 = vmul.f32 0.044715, %v1733_v30  ;;  %5984 = vst [vmem:[#allocation71_spill] sm:$0xff] %v4627_v47  ;;  %v4629_v43 = vpop.eup %3204  ;;  %v4632_v56 = vmul.f32 %v2294_v50, %v4447_v33  ;;  %v1831_v45 = vmul.f32 0.044715, %v1735_v7  ;;  %v1646_v60 = vmul.f32 %v4619_v28, %v4619_v28  ;;  %v4639_v11 = vpop.f32.mrb[51].mxu0 }
 0x276   : > { %5985 = vst [vmem:[#allocation72_spill] sm:$0xff] %v4629_v43  ;;  %5987 = vst [vmem:[#allocation74_spill] sm:$0xff] %v4639_v11  ;;  %v3207_v17 = vpop.eup %3206  ;;  %3214 = vtanh.f32 %v2020_v26  ;;  %v1926_v52 = vadd.f32 %v1830_v15, %v4571_v37  ;;  %v1645_v33 = vmul.f32 %v4627_v47, %v4627_v47  ;;  %v4645_v50 = vpop.f32.mrb[46].mxu1  ;;  %v1836_v31 = vmul.f32 0.044715, %v1740_v63 }
 0x277   : > { %5986 = vst [vmem:[#allocation73_spill] sm:$0xff] %v4632_v56  ;;  %v1925_v30 = vadd.f32 %v1829_v5, %v4578_v36  ;;  %v2204_v7 = vadd.f32 1.0, %v3207_v17  ;;  %v1927_v22 = vadd.f32 %v1831_v45, %v4582_v61  ;;  %v1742_v56 = vmul.f32 %v1646_v60, %v4619_v28  ;;  %v4649_v58 = vpop.f32.mrb[47].mxu1  ;;  %v4661_v60 = vpop.permute.xlu1 %1152 }
 0x278   : > { %v3209_v11 = vpop.eup %3208  ;;  %v2022_v21 = vmul.f32 0.7978846, %v1926_v52  ;;  %v1741_v15 = vmul.f32 %v1645_v33, %v4627_v47  ;;  %v4654_v5 = vadd.f32 %v4517_v49, %v4590_v12  ;;  %v1932_v45 = vadd.f32 %v1836_v31, %v4603_v51  ;;  %5991 = vst [vmem:[#allocation78_spill] sm:$0xff] %v4661_v60 }
 0x279   : > { %v2021_v26 = vmul.f32 0.7978846, %v1925_v30  ;;  %v4656_v36 = vpop.eup %3210  ;;  %v2300_v42 = vmul.f32 0.5, %v2204_v7  ;;  %v2206_v17 = vadd.f32 1.0, %v3209_v11  ;;  %v2023_v43 = vmul.f32 0.7978846, %v1927_v22 }
 0x27a   : > { %5988 = vst [vmem:[#allocation75_spill] sm:$0xff] %v4654_v5  ;;  %5989 = vst [vmem:[#allocation76_spill] sm:$0xff] %v4656_v36  ;;  %v4659_v63 = vpop.f32.mrb[52].mxu0  ;;  %3216 = vtanh.f32 %v2022_v21  ;;  %v1838_v52 = vmul.f32 0.044715, %v1742_v56  ;;  %v1647_v33 = vmul.f32 %v4654_v5, %v4654_v5 }
 0x27b   : > { %5990 = vst [vmem:[#allocation77_spill] sm:$0xff] %v4659_v63  ;;  %v1837_v30 = vmul.f32 0.044715, %v1741_v15  ;;  %v4665_v61 = vpop.f32.mrb[53].mxu0  ;;  %v4668_v49 = vmul.f32 %v2300_v42, %v4482_v32  ;;  %v2302_v7 = vmul.f32 0.5, %v2206_v17  ;;  %3218 = vtanh.f32 %v2021_v26  ;;  %v4670_v22 = vpop.f32.mrb[48].mxu1 }
 0x27c   : > { %5992 = vst [vmem:[#allocation79_spill] sm:$0xff] %v4665_v61  ;;  %v2028_v11 = vmul.f32 0.7978846, %v1932_v45  ;;  %v4672_v31 = vpop.f32.mrb[54].mxu0  ;;  %3220 = vtanh.f32 %v2023_v43  ;;  %v1934_v21 = vadd.f32 %v1838_v52, %v4619_v28  ;;  %v1743_v15 = vmul.f32 %v1647_v33, %v4654_v5  ;;  %v4677_v12 = vpop.f32.mrb[49].mxu1 }
 0x27d   : > { %5993 = vst [vmem:[#allocation80_spill] sm:$0xff] %v4668_v49  ;;  %5994 = vst [vmem:[#allocation81_spill] sm:$0xff] %v4672_v31  ;;  %v1933_v56 = vadd.f32 %v1837_v30, %v4627_v47  ;;  %v4679_v61 = vpop.f32.mrb[55].mxu0  ;;  %v4684_v32 = vmul.f32 %v2302_v7, %v4490_v16  ;;  %v4688_v26 = vadd.f32 %v4453_v6, %v4661_v60  ;;  %v4694_v17 = vpop.f32.mrb[50].mxu1 }
 0x27e   : > { %5995 = vst [vmem:[#allocation82_spill] sm:$0xff] %v4679_v61  ;;  %v4681_v42 = vpop.eup %3212  ;;  %3222 = vtanh.f32 %v2028_v11  ;;  %v4692_v43 = vadd.f32 %v4525_v41, %v4661_v60  ;;  %v4696_v45 = vpop.permute.xlu0 %1157  ;;  %v2030_v52 = vmul.f32 0.7978846, %v1934_v21  ;;  %v1839_v33 = vmul.f32 0.044715, %v1743_v15 }
 0x27f   : > { %5996 = vst [vmem:[#allocation83_spill] sm:$0xff] %v4681_v42  ;;  %5997 = vst [vmem:[#allocation84_spill] sm:$0xff] %v4684_v32  ;;  %v2029_v30 = vmul.f32 0.7978846, %v1933_v56  ;;  %v4700_v16 = vadd.f32 %v4458_v55, %v4661_v60  ;;  %v1652_v7 = vmul.f32 %v4688_v26, %v4688_v26  ;;  %v4708_v41 = vadd.f32 %v4533_v25, %v4661_v60  ;;  %v4714_v21 = vpop.f32.mrb[51].mxu1 }
 0x280   : > { %5998 = vst [vmem:[#allocation85_spill] sm:$0xff] %v4696_v45  ;;  %v1654_v6 = vmul.f32 %v4692_v43, %v4692_v43  ;;  %v4712_v11 = vadd.f32 %v4492_v57, %v4696_v45  ;;  %v3215_v56 = vpop.eup %3214  ;;  %3224 = vtanh.f32 %v2030_v52  ;;  %v1935_v55 = vadd.f32 %v1839_v33, %v4654_v5 }
 0x281   : > { %5999 = vst [vmem:[#allocation86_spill] sm:$0xff] %v4708_v41  ;;  %v1653_v15 = vmul.f32 %v4700_v16, %v4700_v16  ;;  %v4721_v47 = vadd.f32 %v4559_v54, %v4696_v45  ;;  %v2212_v61 = vadd.f32 1.0, %v3215_v56  ;;  %3226 = vtanh.f32 %v2029_v30  ;;  %v4725_v60 = vpop.f32.mrb[56].mxu0 }
 0x282   : > { %v1748_v25 = vmul.f32 %v1652_v7, %v4688_v26  ;;  %v1750_v57 = vmul.f32 %v1654_v6, %v4692_v43  ;;  %6000 = vst [vmem:[#allocation87_spill] sm:$0xff] %v4725_v60  ;;  %v2031_v31 = vmul.f32 0.7978846, %v1935_v55  ;;  %v1655_v33 = vmul.f32 %v4708_v41, %v4708_v41  ;;  %v4732_v63 = vpop.f32.mrb[57].mxu0 }
 0x283   : > { %v1749_v52 = vmul.f32 %v1653_v15, %v4700_v16  ;;  %v1660_v5 = vmul.f32 %v4712_v11, %v4712_v11  ;;  %6001 = vst [vmem:[#allocation88_spill] sm:$0xff] %v4732_v63  ;;  %v2308_v54 = vmul.f32 0.5, %v2212_v61  ;;  %v1662_v7 = vmul.f32 %v4721_v47, %v4721_v47  ;;  %v4736_v6 = vpop.f32.mrb[52].mxu1  ;;  %v4742_v42 = vpop.f32.mrb[58].mxu0 }
 0x284   : > { %v1844_v56 = vmul.f32 0.044715, %v1748_v25  ;;  %v1846_v30 = vmul.f32 0.044715, %v1750_v57  ;;  %6002 = vst [vmem:[#allocation89_spill] sm:$0xff] %v4736_v6  ;;  %v3217_v60 = vpop.eup %3216  ;;  %3228 = vtanh.f32 %v2031_v31  ;;  %v1751_v15 = vmul.f32 %v1655_v33, %v4708_v41  ;;  %v4740_v49 = vpop.f32.mrb[53].mxu1 }
 0x285   : > { %v1845_v55 = vmul.f32 0.044715, %v1749_v52  ;;  %v1756_v32 = vmul.f32 %v1660_v5, %v4712_v11  ;;  %6003 = vst [vmem:[#allocation90_spill] sm:$0xff] %v4740_v49  ;;  %6004 = vst [vmem:[#allocation91_spill] sm:$0xff] %v4742_v42  ;;  %v4744_v63 = vpop.eup %3218  ;;  %v4747_v61 = vmul.f32 %v2308_v54, %v4549_v1  ;;  %v2214_v25 = vadd.f32 1.0, %v3217_v60  ;;  %v4751_v31 = vpop.f32.mrb[54].mxu1 }
 0x286   : > { %6005 = vst [vmem:[#allocation92_spill] sm:$0xff] %v4744_v63  ;;  %v1940_v57 = vadd.f32 %v1844_v56, %v4688_v26  ;;  %v1942_v6 = vadd.f32 %v1846_v30, %v4692_v43  ;;  %6007 = vst [vmem:[#allocation94_spill] sm:$0xff] %v4751_v31  ;;  %v4753_v52 = vpop.f32.mrb[59].mxu0  ;;  %v4755_v33 = vpop.eup %3220  ;;  %v1847_v49 = vmul.f32 0.044715, %v1751_v15  ;;  %v1758_v63 = vmul.f32 %v1662_v7, %v4721_v47 }
 0x287   : > { %6006 = vst [vmem:[#allocation93_spill] sm:$0xff] %v4747_v61  ;;  %6008 = vst [vmem:[#allocation95_spill] sm:$0xff] %v4753_v52  ;;  %v1941_v5 = vadd.f32 %v1845_v55, %v4700_v16  ;;  %v1852_v42 = vmul.f32 0.044715, %v1756_v32  ;;  %v4759_v36 = vpop.f32.mrb[55].mxu1  ;;  %v2310_v60 = vmul.f32 0.5, %v2214_v25  ;;  %v4763_v30 = vadd.f32 %v4499_v3, %v4696_v45 }
 0x288   : > { %v3223_v1 = vpop.eup %3222  ;;  %v2036_v54 = vmul.f32 0.7978846, %v1940_v57  ;;  %v2038_v56 = vmul.f32 0.7978846, %v1942_v6  ;;  %v1943_v61 = vadd.f32 %v1847_v49, %v4708_v41  ;;  %v1854_v7 = vmul.f32 0.044715, %v1758_v63  ;;  %v4774_v57 = vpop.permute.xlu1 %1162 }
 0x289   : > { %6009 = vst [vmem:[#allocation96_spill] sm:$0xff] %v4763_v30  ;;  %v2220_v31 = vadd.f32 1.0, %v3223_v1  ;;  %v2037_v52 = vmul.f32 0.7978846, %v1941_v5  ;;  %v1948_v55 = vadd.f32 %v1852_v42, %v4712_v11  ;;  %v4768_v32 = vmul.f32 %v2310_v60, %v4571_v37  ;;  %v4772_v25 = vpop.f32.mrb[60].mxu0  ;;  %6011 = vst [vmem:[#allocation98_spill] sm:$0xff] %v4774_v57 }
 0x28a   : > { %3230 = vtanh.f32 %v2036_v54  ;;  %v1661_v15 = vmul.f32 %v4763_v30, %v4763_v30  ;;  %6010 = vst [vmem:[#allocation97_spill] sm:$0xff] %v4772_v25  ;;  %v3225_v6 = vpop.eup %3224  ;;  %v2039_v5 = vmul.f32 0.7978846, %v1943_v61  ;;  %v4776_v49 = vpop.f32.mrb[61].mxu0  ;;  %v1950_v63 = vadd.f32 %v1854_v7, %v4721_v47 }
 0x28b   : > { %v2316_v3 = vmul.f32 0.5, %v2220_v31  ;;  %3232 = vtanh.f32 %v2038_v56  ;;  %v2044_v1 = vmul.f32 0.7978846, %v1948_v55  ;;  %6012 = vst [vmem:[#allocation99_spill] sm:$0xff] %v4776_v49  ;;  %v4778_v42 = vpop.eup %3226  ;;  %v2222_v37 = vadd.f32 1.0, %v3225_v6  ;;  %v4782_v54 = vpop.f32.mrb[56].mxu1 }
 0x28c   : > { %3234 = vtanh.f32 %v2037_v52  ;;  %v1757_v60 = vmul.f32 %v1661_v15, %v4763_v30  ;;  %6013 = vst [vmem:[#allocation100_spill] sm:$0xff] %v4782_v54  ;;  %v4784_v25 = vpop.f32.mrb[62].mxu0  ;;  %v4791_v61 = vadd.f32 %v4565_v4, %v4696_v45  ;;  %v4795_v31 = vadd.f32 %v4509_v53, %v4774_v57  ;;  %v4797_v52 = vpop.f32.mrb[57].mxu1 }
 0x28d   : > { %6014 = vst [vmem:[#allocation101_spill] sm:$0xff] %v4784_v25  ;;  %v4787_v41 = vmul.f32 %v2316_v3, %v4603_v51  ;;  %3236 = vtanh.f32 %v2039_v5  ;;  %6016 = vst [vmem:[#allocation103_spill] sm:$0xff] %v4797_v52  ;;  %v4799_v56 = vpop.f32.mrb[63].mxu0  ;;  %v2318_v55 = vmul.f32 0.5, %v2222_v37  ;;  %v2046_v7 = vmul.f32 0.7978846, %v1950_v63 }
 0x28e   : > { %6015 = vst [vmem:[#allocation102_spill] sm:$0xff] %v4791_v61  ;;  %6017 = vst [vmem:[#allocation104_spill] sm:$0xff] %v4799_v56  ;;  %3238 = vtanh.f32 %v2044_v1  ;;  %v1853_v15 = vmul.f32 0.044715, %v1757_v60  ;;  %v4801_v6 = vpop.f32.mrb[58].mxu1  ;;  %v4803_v51 = vpop.eup %3228  ;;  %v1663_v4 = vmul.f32 %v4791_v61, %v4791_v61  ;;  %v1668_v3 = vmul.f32 %v4795_v31, %v4795_v31 }
 0x28f   : > { %6018 = vst [vmem:[#allocation105_spill] sm:$0xff] %v4801_v6  ;;  %v4811_v53 = vadd.f32 %v4573_v20, %v4774_v57  ;;  %v4815_v5 = vadd.f32 %v4519_v27, %v4774_v57  ;;  %v4817_v1 = vpop.f32.mrb[59].mxu1  ;;  %v4820_v37 = vmul.f32 %v2318_v55, %v4619_v28  ;;  %3240 = vtanh.f32 %v2046_v7 }
 0x290   : > { %6019 = vst [vmem:[#allocation106_spill] sm:$0xff] %v4817_v1  ;;  %v1949_v63 = vadd.f32 %v1853_v15, %v4763_v30  ;;  %v4825_v60 = vadd.f32 %v4584_v44, %v4774_v57  ;;  %v1759_v45 = vmul.f32 %v1663_v4, %v4791_v61  ;;  %v1764_v20 = vmul.f32 %v1668_v3, %v4795_v31 }
 0x291   : > { %6020 = vst [vmem:[#allocation107_spill] sm:$0xff] %v4820_v37  ;;  %v1670_v27 = vmul.f32 %v4811_v53, %v4811_v53  ;;  %v1669_v56 = vmul.f32 %v4815_v5, %v4815_v5  ;;  %v2173_v55 = vadd.f32 1.0, %v4440_v59  ;;  %v2181_v7 = vadd.f32 1.0, %v4451_v38  ;;  %v4837_v44 = vpop.f32.mrb[64].mxu0 }
 0x292   : > { %v2045_v25 = vmul.f32 0.7978846, %v1949_v63  ;;  %v1671_v28 = vmul.f32 %v4825_v60, %v4825_v60  ;;  %6021 = vst [vmem:[#allocation108_spill] sm:$0xff] %v4837_v44  ;;  %v1855_v15 = vmul.f32 0.044715, %v1759_v45  ;;  %v4841_v49 = vpop.f32.mrb[65].mxu0 }
 0x293   : > { %v1860_v4 = vmul.f32 0.044715, %v1764_v20  ;;  %v1766_v3 = vmul.f32 %v1670_v27, %v4811_v53  ;;  %v1765_v57 = vmul.f32 %v1669_v56, %v4815_v5  ;;  %6022 = vst [vmem:[#allocation109_spill] sm:$0xff] %v4841_v49  ;;  %v2269_v1 = vmul.f32 0.5, %v2173_v55  ;;  %v4844_v52 = vpop.f32.mrb[60].mxu1  ;;  %v4846_v59 = vpop.f32.mrb[66].mxu0 }
 0x294   : > { %v3231_v30 = vpop.eup %3230  ;;  %3242 = vtanh.f32 %v2045_v25  ;;  %v1767_v63 = vmul.f32 %v1671_v28, %v4825_v60  ;;  %v2277_v6 = vmul.f32 0.5, %v2181_v7  ;;  %6023 = vst [vmem:[#allocation110_spill] sm:$0xff] %v4844_v52  ;;  %6024 = vst [vmem:[#allocation111_spill] sm:$0xff] %v4846_v59  ;;  %v1951_v45 = vadd.f32 %v1855_v15, %v4791_v61  ;;  %v4850_v56 = vpop.f32.mrb[61].mxu1 }
 0x295   : > { %v3233_v38 = vpop.eup %3232  ;;  %v2228_v44 = vadd.f32 1.0, %v3231_v30  ;;  %v1956_v20 = vadd.f32 %v1860_v4, %v4795_v31  ;;  %v1862_v27 = vmul.f32 0.044715, %v1766_v3  ;;  %6025 = vst [vmem:[#allocation112_spill] sm:$0xff] %v4850_v56  ;;  %v4852_v49 = vpop.f32.mrb[67].mxu0  ;;  %v2365_v52 = vmul.f32 %v2269_v1, %v4343_v10 }
 0x296   : > { %6026 = vst [vmem:[#allocation113_spill] sm:$0xff] %v4852_v49  ;;  %v4854_v25 = vpop.eup %3234  ;;  %v2230_v28 = vadd.f32 1.0, %v3233_v38  ;;  %v1861_v55 = vmul.f32 0.044715, %v1765_v57  ;;  %v1863_v7 = vmul.f32 0.044715, %v1767_v63  ;;  %v2373_v63 = vmul.f32 %v2277_v6, %v4353_v13 }
 0x297   : > { %v4857_v54 = vpop.f32.mrb[62].mxu1  ;;  %v4859_v59 = vpop.eup %3236  ;;  %v2324_v30 = vmul.f32 0.5, %v2228_v44  ;;  %v2047_v15 = vmul.f32 0.7978846, %v1951_v45  ;;  %v2052_v61 = vmul.f32 0.7978846, %v1956_v20  ;;  %v1958_v4 = vadd.f32 %v1862_v27, %v4811_v53 }
 0x298   : > { %v4862_v3 = vpop.f32.mrb[63].mxu1  ;;  %v3239_v56 = vpop.eup %3238  ;;  %v2326_v49 = vmul.f32 0.5, %v2230_v28  ;;  %v1957_v37 = vadd.f32 %v1861_v55, %v4815_v5  ;;  %v1959_v57 = vadd.f32 %v1863_v7, %v4825_v60  ;;  %v2487_v55 = vpack.c.bf16 %v2373_v63, %v2365_v52 }
 0x299   : > { %6027 = vst [vmem:[#allocation114_spill] sm:$0xff] %v4862_v3  ;;  %v4868_v10 = vmul.f32 %v2324_v30, %v4688_v26  ;;  %v2236_v1 = vadd.f32 1.0, %v3239_v56  ;;  %3244 = vtanh.f32 %v2047_v15  ;;  %v2054_v44 = vmul.f32 0.7978846, %v1958_v4  ;;  %v3241_v38 = vpop.eup %3240  ;;  %v4879_v7 = vpop.permute.xlu0 %1167 }
 0x29a   : > { %v4871_v45 = vmul.f32 %v2326_v49, %v4692_v43  ;;  %3246 = vtanh.f32 %v2052_v61  ;;  %v2053_v20 = vmul.f32 0.7978846, %v1957_v37  ;;  %v2055_v27 = vmul.f32 0.7978846, %v1959_v57  ;;  %6029 = vst [vmem:[#allocation116_spill] sm:$0xff] %v4879_v7  ;;  %2538 = vmatprep.subr.bf16.mxu0 %v2487_v55 }
 0x29b   : > { %v2332_v28 = vmul.f32 0.5, %v2236_v1  ;;  %v2238_v3 = vadd.f32 1.0, %v3241_v38  ;;  %3248 = vtanh.f32 %v2054_v44  ;;  %v2175_v13 = vadd.f32 1.0, %v4501_v24  ;;  %v4877_v56 = vpop.f32.mrb[64].mxu1 }
 0x29c   : > { %3250 = vtanh.f32 %v2053_v20  ;;  %v2183_v26 = vadd.f32 1.0, %v4521_v9  ;;  %v2486_v6 = vpack.c.bf16 %v4475_v14, %v4461_v48  ;;  %6028 = vst [vmem:[#allocation115_spill] sm:$0xff] %v4877_v56  ;;  %v2488_v61 = vpack.c.bf16 %v4539_v2, %v4530_v34  ;;  %v4886_v52 = vpop.f32.mrb[65].mxu1  ;;  %v4890_v9 = vpop.permute.xlu1 %1172  ;;  %v6070_v56 = vld [vmem:[#allocation77_spill] sm:$0xff] }
 0x29d   : > { %v4882_v43 = vmul.f32 %v2332_v28, %v4712_v11  ;;  %v2334_v49 = vmul.f32 0.5, %v2238_v3  ;;  %3252 = vtanh.f32 %v2055_v27  ;;  %6030 = vst [vmem:[#allocation117_spill] sm:$0xff] %v4886_v52  ;;  %6031 = vst [vmem:[#allocation118_spill] sm:$0xff] %v4890_v9  ;;  %v2271_v48 = vmul.f32 0.5, %v2175_v13  ;;  %v4900_v30 = vpop.f32.mrb[66].mxu1 }
 0x29e   : > { %v4888_v24 = vpop.eup %3242  ;;  %v2279_v14 = vmul.f32 0.5, %v2183_v26  ;;  %2539 = vmatpush1.bf16.msra.mxu0 %v2486_v6  ;;  %v4894_v37 = vadd.f32 %v4543_v35, %v4879_v7  ;;  %v4898_v11 = vadd.f32 %v4621_v46, %v4879_v7  ;;  %6032 = vst [vmem:[#allocation119_spill] sm:$0xff] %v4900_v30  ;;  %v4907_v2 = vadd.f32 %v4551_v62, %v4879_v7  ;;  %v4917_v4 = vpop.f32.mrb[67].mxu1 }
 0x29f   : > { %v4903_v34 = vmul.f32 %v2334_v49, %v4721_v47  ;;  %v4911_v15 = vadd.f32 %v4637_v8, %v4879_v7  ;;  %v4915_v35 = vadd.f32 %v4561_v18, %v4890_v9  ;;  %6033 = vst [vmem:[#allocation120_spill] sm:$0xff] %v4917_v4  ;;  %v2367_v46 = vmul.f32 %v2271_v48, %v4380_v19  ;;  %v4954_v49 = vpop.f32.mrb[68].mxu0 }
 0x2a0   : > { %v2375_v3 = vmul.f32 %v2279_v14, %v4393_v0  ;;  %v1676_v47 = vmul.f32 %v4894_v37, %v4894_v37  ;;  %v1678_v62 = vmul.f32 %v4898_v11, %v4898_v11  ;;  %v1677_v8 = vmul.f32 %v4907_v2, %v4907_v2  ;;  %6034 = vst [vmem:[#allocation121_spill] sm:$0xff] %v4954_v49 }
 0x2a1   : > { %v1679_v57 = vmul.f32 %v4911_v15, %v4911_v15  ;;  %v1684_v18 = vmul.f32 %v4915_v35, %v4915_v35  ;;  %v4933_v19 = vadd.f32 %v4645_v50, %v4890_v9  ;;  %v4939_v44 = vadd.f32 %v4567_v40, %v4890_v9 }
 0x2a2   : > { %v2489_v0 = vpack.c.bf16 %v2375_v3, %v2367_v46  ;;  %v1772_v63 = vmul.f32 %v1676_v47, %v4894_v37  ;;  %v1774_v1 = vmul.f32 %v1678_v62, %v4898_v11  ;;  %v1773_v20 = vmul.f32 %v1677_v8, %v4907_v2  ;;  %v4959_v8 = vpop.f32.mrb[69].mxu0 }
 0x2a3   : > { %v4941_v38 = vpop.eup %3244  ;;  %v1775_v27 = vmul.f32 %v1679_v57, %v4911_v15  ;;  %v1780_v28 = vmul.f32 %v1684_v18, %v4915_v35  ;;  %v1686_v50 = vmul.f32 %v4933_v19, %v4933_v19  ;;  %v1685_v6 = vmul.f32 %v4939_v44, %v4939_v44  ;;  %v4956_v48 = vpop.f32.mrb[68].mxu1  ;;  %6036 = vst [vmem:[#allocation123_spill] sm:$0xff] %v4959_v8 }
 0x2a4   : > { %v3247_v55 = vpop.eup %3246  ;;  %2579 = vmatprep.subr.bf16.mxu1 %v2489_v0  ;;  %v1868_v13 = vmul.f32 0.044715, %v1772_v63  ;;  %v1870_v26 = vmul.f32 0.044715, %v1774_v1  ;;  %v4952_v40 = vadd.f32 %v4649_v58, %v4890_v9  ;;  %6035 = vst [vmem:[#allocation122_spill] sm:$0xff] %v4956_v48  ;;  %v4965_v1 = vpop.f32.mrb[69].mxu1 }
 0x2a5   : > { %v3249_v14 = vpop.eup %3248  ;;  %v2244_v46 = vadd.f32 1.0, %v3247_v55  ;;  %2580 = vmatpush1.bf16.msra.mxu1 %v2488_v61  ;;  %v1869_v3 = vmul.f32 0.044715, %v1773_v20  ;;  %v1871_v47 = vmul.f32 0.044715, %v1775_v27  ;;  %v1782_v62 = vmul.f32 %v1686_v50, %v4933_v19  ;;  %6037 = vst [vmem:[#allocation124_spill] sm:$0xff] %v4965_v1 }
 0x2a6   : > { %v4961_v57 = vpop.eup %3250  ;;  %v2246_v18 = vadd.f32 1.0, %v3249_v14  ;;  %v1964_v0 = vadd.f32 %v1868_v13, %v4894_v37  ;;  %v1966_v58 = vadd.f32 %v1870_v26, %v4898_v11  ;;  %v1876_v63 = vmul.f32 0.044715, %v1780_v28  ;;  %v4967_v9 = vpop.f32.mrb[70].mxu0 }
 0x2a7   : > { %6038 = vst [vmem:[#allocation125_spill] sm:$0xff] %v4967_v9  ;;  %v4969_v55 = vpop.eup %3252  ;;  %v2340_v61 = vmul.f32 0.5, %v2244_v46  ;;  %v1965_v20 = vadd.f32 %v1869_v3, %v4907_v2  ;;  %v1967_v27 = vadd.f32 %v1871_v47, %v4911_v15  ;;  %v1878_v50 = vmul.f32 0.044715, %v1782_v62  ;;  %v4973_v8 = vpop.f32.mrb[70].mxu1 }
 0x2a8   : > { %6039 = vst [vmem:[#allocation126_spill] sm:$0xff] %v4973_v8  ;;  %v4975_v14 = vpop.f32.mrb[71].mxu0  ;;  %v2342_v13 = vmul.f32 0.5, %v2246_v18  ;;  %v2060_v48 = vmul.f32 0.7978846, %v1964_v0  ;;  %v1972_v28 = vadd.f32 %v1876_v63, %v4915_v35  ;;  %v4978_v1 = vpop.f32.mrb[71].mxu1  ;;  %v1781_v18 = vmul.f32 %v1685_v6, %v4939_v44 }
 0x2a9   : > { %6040 = vst [vmem:[#allocation127_spill] sm:$0xff] %v4975_v14  ;;  %v2062_v26 = vmul.f32 0.7978846, %v1966_v58  ;;  %6041 = vst [vmem:[#allocation128_spill] sm:$0xff] %v4978_v1  ;;  %v4981_v9 = vmul.f32 %v2340_v61, %v4795_v31  ;;  %v2061_v46 = vmul.f32 0.7978846, %v1965_v20  ;;  %v1974_v3 = vadd.f32 %v1878_v50, %v4933_v19 }
 0x2aa   : > { %v2063_v49 = vmul.f32 0.7978846, %v1967_v27  ;;  %v4985_v47 = vmul.f32 %v2342_v13, %v4811_v53  ;;  %3254 = vtanh.f32 %v2060_v48  ;;  %v2068_v62 = vmul.f32 0.7978846, %v1972_v28  ;;  %v6042_v27 = vld [vmem:[#allocation72_spill] sm:$0xff]  ;;  %v6046_v14 = vld [vmem:[#allocation62_spill] sm:$0xff] }
 0x2ab   : > { %3256 = vtanh.f32 %v2062_v26  ;;  %v2070_v0 = vmul.f32 0.7978846, %v1974_v3  ;;  %v1687_v58 = vmul.f32 %v4952_v40, %v4952_v40  ;;  %v2189_v63 = vadd.f32 1.0, %v4527_v39  ;;  %v6043_v39 = vld [vmem:[#allocation38_spill] sm:$0xff] }
 0x2ac   : > { %3258 = vtanh.f32 %v2061_v46  ;;  %v1877_v31 = vmul.f32 0.044715, %v1781_v18  ;;  %v2197_v61 = vadd.f32 1.0, %v4607_v23  ;;  %v2191_v20 = vadd.f32 1.0, %v4553_v29  ;;  %v6044_v23 = vld [vmem:[#allocation41_spill] sm:$0xff]  ;;  %v6045_v29 = vld [vmem:[#allocation39_spill] sm:$0xff] }
 0x2ad   : > { %3260 = vtanh.f32 %v2063_v49  ;;  %v1783_v53 = vmul.f32 %v1687_v58, %v4952_v40  ;;  %v2285_v48 = vmul.f32 0.5, %v2189_v63  ;;  %v2199_v50 = vadd.f32 1.0, %v6042_v27  ;;  %v6047_v58 = vld [vmem:[#allocation67_spill] sm:$0xff] }
 0x2ae   : > { %3262 = vtanh.f32 %v2068_v62  ;;  %v1973_v6 = vadd.f32 %v1877_v31, %v4939_v44  ;;  %v2293_v13 = vmul.f32 0.5, %v2197_v61  ;;  %v2287_v26 = vmul.f32 0.5, %v2191_v20  ;;  %v6048_v62 = vld [vmem:[#allocation58_spill] sm:$0xff]  ;;  %v6049_v31 = vld [vmem:[#allocation65_spill] sm:$0xff] }
 0x2af   : > { %3264 = vtanh.f32 %v2070_v0  ;;  %v1879_v28 = vmul.f32 0.044715, %v1783_v53  ;;  %v2381_v46 = vmul.f32 %v2285_v48, %v6043_v39  ;;  %v2295_v3 = vmul.f32 0.5, %v2199_v50  ;;  %v6050_v61 = vld [vmem:[#allocation73_spill] sm:$0xff]  ;;  %v6052_v53 = vld [vmem:[#allocation68_spill] sm:$0xff] }
 0x2b0   : > { %v2069_v18 = vmul.f32 0.7978846, %v1973_v6  ;;  %v2389_v1 = vmul.f32 %v2293_v13, %v6044_v23  ;;  %v2383_v49 = vmul.f32 %v2287_v26, %v6045_v29  ;;  %v2494_v63 = vpack.c.bf16 %v6047_v58, %v6046_v14  ;;  %v6051_v0 = vld [vmem:[#allocation57_spill] sm:$0xff] }
 0x2b1   : > { %v1975_v27 = vadd.f32 %v1879_v28, %v4952_v40  ;;  %v2391_v8 = vmul.f32 %v2295_v3, %v6048_v62  ;;  %v2496_v20 = vpack.c.bf16 %v6050_v61, %v6049_v31  ;;  %v5007_v7 = vadd.f32 %v6052_v53, %v6051_v0  ;;  %v6053_v6 = vld [vmem:[#allocation69_spill] sm:$0xff] }
 0x2b2   : > { %3266 = vtanh.f32 %v2069_v18  ;;  %v2495_v48 = vpack.c.bf16 %v2389_v1, %v2381_v46  ;;  %v5011_v50 = vadd.f32 %v4670_v22, %v6051_v0  ;;  %v5015_v14 = vadd.f32 %v6053_v6, %v6051_v0  ;;  %v6056_v46 = vld [vmem:[#allocation43_spill] sm:$0xff]  ;;  %v6057_v18 = vld [vmem:[#allocation70_spill] sm:$0xff] }
 0x2b3   : > { %v2071_v13 = vmul.f32 0.7978846, %v1975_v27  ;;  %v2497_v26 = vpack.c.bf16 %v2391_v8, %v2383_v49  ;;  %v1600_v28 = vmul.f32 %v5007_v7, %v5007_v7  ;;  %v5021_v39 = vadd.f32 %v4677_v12, %v6051_v0 }
 0x2b4   : > { %6054 = vst [vmem:[#allocation72_spill] sm:$0xff] %v5015_v14  ;;  %v3255_v3 = vpop.eup %3254  ;;  %2540 = vmatprep.subr.bf16.mxu0 %v2495_v48  ;;  %v1602_v1 = vmul.f32 %v5011_v50, %v5011_v50  ;;  %v1601_v22 = vmul.f32 %v5015_v14, %v5015_v14  ;;  %v5029_v23 = vadd.f32 %v6057_v18, %v6056_v46 }
 0x2b5   : > { %6055 = vst [vmem:[#allocation38_spill] sm:$0xff] %v5021_v39  ;;  %v5033_v8 = vadd.f32 %v4694_v17, %v6056_v46  ;;  %v3257_v29 = vpop.eup %3256  ;;  %v2252_v49 = vadd.f32 1.0, %v3255_v3  ;;  %3268 = vtanh.f32 %v2071_v13  ;;  %2581 = vmatprep.subr.bf16.mxu1 %v2497_v26  ;;  %2541 = vmatpush1.bf16.msra.mxu0 %v2494_v63  ;;  %v1696_v12 = vmul.f32 %v1600_v28, %v5007_v7 }
 0x2b6   : > { %v1603_v58 = vmul.f32 %v5021_v39, %v5021_v39  ;;  %v5038_v27 = vpop.eup %3258  ;;  %v2254_v62 = vadd.f32 1.0, %v3257_v29  ;;  %2582 = vmatpush1.bf16.msra.mxu1 %v2496_v20  ;;  %v1698_v31 = vmul.f32 %v1602_v1, %v5011_v50  ;;  %v1697_v61 = vmul.f32 %v1601_v22, %v5015_v14 }
 0x2b7   : > { %v1608_v17 = vmul.f32 %v5029_v23, %v5029_v23  ;;  %v5044_v0 = vpop.eup %3260  ;;  %v2348_v53 = vmul.f32 0.5, %v2252_v49  ;;  %v1792_v63 = vmul.f32 0.044715, %v1696_v12  ;;  %v1610_v6 = vmul.f32 %v5033_v8, %v5033_v8 }
 0x2b8   : > { %v1699_v48 = vmul.f32 %v1603_v58, %v5021_v39  ;;  %v3263_v13 = vpop.eup %3262  ;;  %v2350_v26 = vmul.f32 0.5, %v2254_v62  ;;  %v1794_v28 = vmul.f32 0.044715, %v1698_v31  ;;  %v1793_v20 = vmul.f32 0.044715, %v1697_v61 }
 0x2b9   : > { %v1704_v3 = vmul.f32 %v1608_v17, %v5029_v23  ;;  %v3265_v1 = vpop.eup %3264  ;;  %v5051_v22 = vmul.f32 %v2348_v53, %v4894_v37  ;;  %v2260_v18 = vadd.f32 1.0, %v3263_v13  ;;  %v1888_v29 = vadd.f32 %v1792_v63, %v5007_v7 }
 0x2ba   : > { %v1795_v49 = vmul.f32 0.044715, %v1699_v48  ;;  %v5055_v12 = vmul.f32 %v2350_v26, %v4898_v11  ;;  %v2262_v58 = vadd.f32 1.0, %v3265_v1  ;;  %v1890_v4 = vadd.f32 %v1794_v28, %v5011_v50 }
 0x2bb   : > { %v1889_v62 = vadd.f32 %v1793_v20, %v5015_v14  ;;  %v2356_v31 = vmul.f32 0.5, %v2260_v18  ;;  %v1984_v61 = vmul.f32 0.7978846, %v1888_v29  ;;  %v1800_v30 = vmul.f32 0.044715, %v1704_v3  ;;  %v6058_v3 = vld [vmem:[#allocation74_spill] sm:$0xff] }
 0x2bc   : > { %v1891_v17 = vadd.f32 %v1795_v49, %v5021_v39  ;;  %v5060_v52 = vpop.eup %3266  ;;  %v2358_v37 = vmul.f32 0.5, %v2262_v58  ;;  %v1986_v53 = vmul.f32 0.7978846, %v1890_v4  ;;  %v1706_v63 = vmul.f32 %v1610_v6, %v5033_v8  ;;  %v6060_v18 = vld [vmem:[#allocation76_spill] sm:$0xff] }
 0x2bd   : > { %v1985_v13 = vmul.f32 0.7978846, %v1889_v62  ;;  %v5064_v11 = vmul.f32 %v2356_v31, %v4915_v35  ;;  %3270 = vtanh.f32 %v1984_v61  ;;  %v1896_v26 = vadd.f32 %v1800_v30, %v5029_v23  ;;  %v6061_v49 = vld [vmem:[#allocation92_spill] sm:$0xff]  ;;  %v6062_v61 = vld [vmem:[#allocation83_spill] sm:$0xff] }
 0x2be   : > { %v1987_v48 = vmul.f32 0.7978846, %v1891_v17  ;;  %v5068_v28 = vmul.f32 %v2358_v37, %v4933_v19  ;;  %3272 = vtanh.f32 %v1986_v53  ;;  %v1802_v20 = vmul.f32 0.044715, %v1706_v63  ;;  %v6063_v63 = vld [vmem:[#allocation59_spill] sm:$0xff] }
 0x2bf   : > { %v5072_v1 = vadd.f32 %v6058_v3, %v6056_v46  ;;  %v5074_v4 = vpop.eup %3268  ;;  %3274 = vtanh.f32 %v1985_v13  ;;  %v1992_v6 = vmul.f32 0.7978846, %v1896_v26  ;;  %v5078_v35 = vadd.f32 %v4714_v21, %v6056_v46  ;;  %v6065_v3 = vld [vmem:[#allocation93_spill] sm:$0xff] }
 0x2c0   : > { %v2205_v29 = vadd.f32 1.0, %v6060_v18  ;;  %3276 = vtanh.f32 %v1987_v48  ;;  %v1898_v30 = vadd.f32 %v1802_v20, %v5033_v8  ;;  %v2213_v58 = vadd.f32 1.0, %v6061_v49  ;;  %v6064_v20 = vld [vmem:[#allocation80_spill] sm:$0xff]  ;;  %v6066_v49 = vld [vmem:[#allocation63_spill] sm:$0xff] }
 0x2c1   : > { %6059 = vst [vmem:[#allocation41_spill] sm:$0xff] %v5078_v35  ;;  %v1609_v19 = vmul.f32 %v5072_v1, %v5072_v1  ;;  %3278 = vtanh.f32 %v1992_v6  ;;  %v1611_v62 = vmul.f32 %v5078_v35, %v5078_v35  ;;  %v2207_v17 = vadd.f32 1.0, %v6062_v61 }
 0x2c2   : > { %v2301_v31 = vmul.f32 0.5, %v2205_v29  ;;  %v1994_v37 = vmul.f32 0.7978846, %v1898_v30  ;;  %v2309_v46 = vmul.f32 0.5, %v2213_v58  ;;  %v2215_v53 = vadd.f32 1.0, %v4755_v33  ;;  %v6067_v30 = vld [vmem:[#allocation60_spill] sm:$0xff] }
 0x2c3   : > { %v1705_v21 = vmul.f32 %v1609_v19, %v5072_v1  ;;  %v1707_v13 = vmul.f32 %v1611_v62, %v5078_v35  ;;  %v2303_v26 = vmul.f32 0.5, %v2207_v17  ;;  %v2502_v6 = vpack.c.bf16 %v6065_v3, %v6064_v20  ;;  %v6068_v19 = vld [vmem:[#allocation84_spill] sm:$0xff]  ;;  %v6069_v33 = vld [vmem:[#allocation46_spill] sm:$0xff] }
 0x2c4   : > { %v2397_v48 = vmul.f32 %v2301_v31, %v6063_v63  ;;  %3280 = vtanh.f32 %v1994_v37  ;;  %v2405_v29 = vmul.f32 %v2309_v46, %v6066_v49  ;;  %v2311_v39 = vmul.f32 0.5, %v2215_v53  ;;  %v6071_v63 = vld [vmem:[#allocation64_spill] sm:$0xff]  ;;  %v6072_v37 = vld [vmem:[#allocation89_spill] sm:$0xff] }
 0x2c5   : > { %v1801_v18 = vmul.f32 0.044715, %v1705_v21  ;;  %v1803_v61 = vmul.f32 0.044715, %v1707_v13  ;;  %v2399_v14 = vmul.f32 %v2303_v26, %v6067_v30  ;;  %v2504_v58 = vpack.c.bf16 %v4768_v32, %v6068_v19  ;;  %v6073_v32 = vld [vmem:[#allocation79_spill] sm:$0xff] }
 0x2c6   : > { %v5100_v62 = vadd.f32 %v6070_v56, %v6069_v33  ;;  %v2503_v17 = vpack.c.bf16 %v2405_v29, %v2397_v48  ;;  %v2407_v20 = vmul.f32 %v2311_v39, %v6071_v63  ;;  %v5106_v21 = vadd.f32 %v6072_v37, %v6069_v33  ;;  %v6075_v56 = vld [vmem:[#allocation90_spill] sm:$0xff] }
 0x2c7   : > { %v1897_v31 = vadd.f32 %v1801_v18, %v5072_v1  ;;  %v3271_v46 = vpop.eup %3270  ;;  %v1899_v53 = vadd.f32 %v1803_v61, %v5078_v35  ;;  %v5113_v26 = vadd.f32 %v6073_v32, %v6069_v33  ;;  %v5117_v3 = vadd.f32 %v6075_v56, %v6069_v33 }
 0x2c8   : > { %v1616_v13 = vmul.f32 %v5100_v62, %v5100_v62  ;;  %v3273_v48 = vpop.eup %3272  ;;  %v2176_v39 = vadd.f32 1.0, %v3271_v46  ;;  %2542 = vmatprep.subr.bf16.mxu0 %v2503_v17  ;;  %v2505_v49 = vpack.c.bf16 %v2407_v20, %v2399_v14  ;;  %v1618_v29 = vmul.f32 %v5106_v21, %v5106_v21 }
 0x2c9   : > { %6074 = vst [vmem:[#allocation39_spill] sm:$0xff] %v5113_v26  ;;  %6076 = vst [vmem:[#allocation62_spill] sm:$0xff] %v5117_v3  ;;  %v1993_v18 = vmul.f32 0.7978846, %v1897_v31  ;;  %v5121_v61 = vpop.eup %3274  ;;  %v2178_v30 = vadd.f32 1.0, %v3273_v48  ;;  %2543 = vmatpush1.bf16.msra.mxu0 %v2502_v6  ;;  %v1617_v37 = vmul.f32 %v5113_v26, %v5113_v26  ;;  %v1619_v31 = vmul.f32 %v5117_v3, %v5117_v3 }
 0x2ca   : > { %v1995_v19 = vmul.f32 0.7978846, %v1899_v53  ;;  %v1712_v63 = vmul.f32 %v1616_v13, %v5100_v62  ;;  %v5126_v33 = vpop.eup %3276  ;;  %v2272_v32 = vmul.f32 0.5, %v2176_v39  ;;  %2583 = vmatprep.subr.bf16.mxu1 %v2505_v49  ;;  %v1714_v14 = vmul.f32 %v1618_v29, %v5106_v21  ;;  %v6078_v29 = vld [vmem:[#allocation40_spill] sm:$0xff] }
 0x2cb   : > { %3282 = vtanh.f32 %v1993_v18  ;;  %v3279_v17 = vpop.eup %3278  ;;  %v2274_v20 = vmul.f32 0.5, %v2178_v30  ;;  %2584 = vmatpush1.bf16.msra.mxu1 %v2504_v58  ;;  %v1713_v46 = vmul.f32 %v1617_v37, %v5113_v26  ;;  %v1715_v48 = vmul.f32 %v1619_v31, %v5117_v3  ;;  %v6079_v30 = vld [vmem:[#allocation81_spill] sm:$0xff] }
 0x2cc   : > { %3284 = vtanh.f32 %v1995_v19  ;;  %v1808_v6 = vmul.f32 0.044715, %v1712_v63  ;;  %v5133_v53 = vmul.f32 %v2272_v32, %v5007_v7  ;;  %v2184_v13 = vadd.f32 1.0, %v3279_v17  ;;  %v6080_v32 = vld [vmem:[#allocation94_spill] sm:$0xff] }
 0x2cd   : > { %v1810_v56 = vmul.f32 0.044715, %v1714_v14  ;;  %v5137_v39 = vmul.f32 %v2274_v20, %v5011_v50  ;;  %v1809_v49 = vmul.f32 0.044715, %v1713_v46  ;;  %v5142_v19 = vadd.f32 %v6079_v30, %v6078_v29 }
 0x2ce   : > { %v1904_v18 = vadd.f32 %v1808_v6, %v5100_v62  ;;  %v3281_v58 = vpop.eup %3280  ;;  %v2280_v63 = vmul.f32 0.5, %v2184_v13  ;;  %v1811_v7 = vmul.f32 0.044715, %v1715_v48  ;;  %v5147_v14 = vadd.f32 %v6080_v32, %v6078_v29  ;;  %v6081_v32 = vld [vmem:[#allocation82_spill] sm:$0xff] }
 0x2cf   : > { %6077 = vst [vmem:[#allocation67_spill] sm:$0xff] %v5137_v39  ;;  %v1906_v37 = vadd.f32 %v1810_v56, %v5106_v21  ;;  %v2186_v31 = vadd.f32 1.0, %v3281_v58  ;;  %v1905_v50 = vadd.f32 %v1809_v49, %v5113_v26  ;;  %v1624_v20 = vmul.f32 %v5142_v19, %v5142_v19 }
 0x2d0   : > { %v2000_v17 = vmul.f32 0.7978846, %v1904_v18  ;;  %v5153_v6 = vmul.f32 %v2280_v63, %v5029_v23  ;;  %v1907_v13 = vadd.f32 %v1811_v7, %v5117_v3  ;;  %v1626_v56 = vmul.f32 %v5147_v14, %v5147_v14  ;;  %v6085_v3 = vld [vmem:[#allocation71_spill] sm:$0xff] }
 0x2d1   : > { %v2002_v46 = vmul.f32 0.7978846, %v1906_v37  ;;  %v2282_v48 = vmul.f32 0.5, %v2186_v31  ;;  %v2001_v30 = vmul.f32 0.7978846, %v1905_v50  ;;  %v1720_v58 = vmul.f32 %v1624_v20, %v5142_v19 }
 0x2d2   : > { %3286 = vtanh.f32 %v2000_v17  ;;  %v2003_v18 = vmul.f32 0.7978846, %v1907_v13  ;;  %v1722_v49 = vmul.f32 %v1626_v56, %v5147_v14  ;;  %v5162_v26 = vadd.f32 %v6081_v32, %v6078_v29 }
 0x2d3   : > { %3288 = vtanh.f32 %v2002_v46  ;;  %v5165_v23 = vmul.f32 %v2282_v48, %v5033_v8  ;;  %v1816_v63 = vmul.f32 0.044715, %v1720_v58  ;;  %v5169_v37 = vadd.f32 %v4759_v36, %v6078_v29 }
 0x2d4   : > { %6082 = vst [vmem:[#allocation58_spill] sm:$0xff] %v5162_v26  ;;  %3290 = vtanh.f32 %v2001_v30  ;;  %v1818_v31 = vmul.f32 0.044715, %v1722_v49  ;;  %v1625_v17 = vmul.f32 %v5162_v26, %v5162_v26  ;;  %v2221_v50 = vadd.f32 1.0, %v4778_v42 }
 0x2d5   : > { %6083 = vst [vmem:[#allocation65_spill] sm:$0xff] %v5165_v23  ;;  %6084 = vst [vmem:[#allocation73_spill] sm:$0xff] %v5169_v37  ;;  %v5171_v7 = vpop.eup %3282  ;;  %3292 = vtanh.f32 %v2003_v18  ;;  %v1912_v8 = vadd.f32 %v1816_v63, %v5142_v19  ;;  %v1627_v46 = vmul.f32 %v5169_v37, %v5169_v37  ;;  %v2229_v13 = vadd.f32 1.0, %v4854_v25 }
 0x2d6   : > { %v5176_v20 = vpop.eup %3284  ;;  %v2223_v36 = vadd.f32 1.0, %v4803_v51  ;;  %v1914_v29 = vadd.f32 %v1818_v31, %v5147_v14  ;;  %v1721_v56 = vmul.f32 %v1625_v17, %v5162_v26  ;;  %v2317_v48 = vmul.f32 0.5, %v2221_v50  ;;  %v6086_v31 = vld [vmem:[#allocation75_spill] sm:$0xff] }
 0x2d7   : > { %v2231_v30 = vadd.f32 1.0, %v4859_v59  ;;  %v2008_v58 = vmul.f32 0.7978846, %v1912_v8  ;;  %v1723_v42 = vmul.f32 %v1627_v46, %v5169_v37  ;;  %v2325_v18 = vmul.f32 0.5, %v2229_v13  ;;  %v6087_v59 = vld [vmem:[#allocation86_spill] sm:$0xff] }
 0x2d8   : > { %v2319_v49 = vmul.f32 0.5, %v2223_v36  ;;  %v2010_v32 = vmul.f32 0.7978846, %v1914_v29  ;;  %v1817_v63 = vmul.f32 0.044715, %v1721_v56  ;;  %v2413_v23 = vmul.f32 %v2317_v48, %v6085_v3  ;;  %v6088_v3 = vld [vmem:[#allocation107_spill] sm:$0xff] }
 0x2d9   : > { %v2327_v39 = vmul.f32 0.5, %v2231_v30  ;;  %3294 = vtanh.f32 %v2008_v58  ;;  %v1819_v25 = vmul.f32 0.044715, %v1723_v42  ;;  %v2421_v51 = vmul.f32 %v2325_v18, %v4700_v16  ;;  %v6089_v56 = vld [vmem:[#allocation42_spill] sm:$0xff]  ;;  %v6090_v48 = vld [vmem:[#allocation87_spill] sm:$0xff] }
 0x2da   : > { %v2415_v35 = vmul.f32 %v2319_v49, %v6086_v31  ;;  %3296 = vtanh.f32 %v2010_v32  ;;  %v1913_v17 = vadd.f32 %v1817_v63, %v5162_v26  ;;  %v2510_v8 = vpack.c.bf16 %v4868_v10, %v4787_v41  ;;  %v6094_v31 = vld [vmem:[#allocation103_spill] sm:$0xff] }
 0x2db   : > { %v2423_v50 = vmul.f32 %v2327_v39, %v6087_v59  ;;  %v1915_v13 = vadd.f32 %v1819_v25, %v5169_v37  ;;  %v2511_v36 = vpack.c.bf16 %v2421_v51, %v2413_v23  ;;  %v2512_v29 = vpack.c.bf16 %v4871_v45, %v6088_v3  ;;  %v6091_v39 = vld [vmem:[#allocation100_spill] sm:$0xff]  ;;  %v6096_v3 = vld [vmem:[#allocation61_spill] sm:$0xff] }
 0x2dc   : > { %v3287_v46 = vpop.eup %3286  ;;  %v5199_v16 = vadd.f32 %v6090_v48, %v6089_v56  ;;  %v2009_v42 = vmul.f32 0.7978846, %v1913_v17  ;;  %v5203_v49 = vadd.f32 %v6091_v39, %v6089_v56  ;;  %v6092_v23 = vld [vmem:[#allocation88_spill] sm:$0xff]  ;;  %v5219_v17 = vadd.f32 %v6094_v31, %v6089_v56  ;;  %v6097_v48 = vld [vmem:[#allocation91_spill] sm:$0xff]  ;;  %v6101_v31 = vld [vmem:[#allocation106_spill] sm:$0xff] }
 0x2dd   : > { %v3289_v30 = vpop.eup %3288  ;;  %v2192_v58 = vadd.f32 1.0, %v3287_v46  ;;  %v2513_v18 = vpack.c.bf16 %v2423_v50, %v2415_v35  ;;  %v2011_v32 = vmul.f32 0.7978846, %v1915_v13  ;;  %2544 = vmatprep.subr.bf16.mxu0 %v2511_v36  ;;  %v5211_v63 = vadd.f32 %v6092_v23, %v6089_v56 }
 0x2de   : > { %v5205_v41 = vpop.eup %3290  ;;  %v2194_v10 = vadd.f32 1.0, %v3289_v30  ;;  %v1632_v45 = vmul.f32 %v5199_v16, %v5199_v16  ;;  %3298 = vtanh.f32 %v2009_v42  ;;  %2545 = vmatpush1.bf16.msra.mxu0 %v2510_v8  ;;  %v1634_v35 = vmul.f32 %v5203_v49, %v5203_v49  ;;  %v6099_v42 = vld [vmem:[#allocation105_spill] sm:$0xff] }
 0x2df   : > { %v5213_v25 = vpop.eup %3292  ;;  %v2288_v51 = vmul.f32 0.5, %v2192_v58  ;;  %2585 = vmatprep.subr.bf16.mxu1 %v2513_v18  ;;  %3300 = vtanh.f32 %v2011_v32  ;;  %v1633_v46 = vmul.f32 %v5211_v63, %v5211_v63  ;;  %v1635_v36 = vmul.f32 %v5219_v17, %v5219_v17  ;;  %v6100_v32 = vld [vmem:[#allocation95_spill] sm:$0xff] }
 0x2e0   : > { %6093 = vst [vmem:[#allocation57_spill] sm:$0xff] %v5213_v25  ;;  %v2290_v59 = vmul.f32 0.5, %v2194_v10  ;;  %2586 = vmatpush1.bf16.msra.mxu1 %v2512_v29  ;;  %v1728_v50 = vmul.f32 %v1632_v45, %v5199_v16  ;;  %v1730_v8 = vmul.f32 %v1634_v35, %v5203_v49  ;;  %v5232_v56 = vadd.f32 %v6097_v48, %v6096_v3 }
 0x2e1   : > { %v5225_v13 = vmul.f32 %v2288_v51, %v5100_v62  ;;  %v1729_v58 = vmul.f32 %v1633_v46, %v5211_v63  ;;  %v5240_v18 = vadd.f32 %v6099_v42, %v6096_v3  ;;  %v1731_v39 = vmul.f32 %v1635_v36, %v5219_v17 }
 0x2e2   : > { %v5235_v30 = vmul.f32 %v2290_v59, %v5106_v21  ;;  %v1824_v29 = vmul.f32 0.044715, %v1728_v50  ;;  %v1826_v62 = vmul.f32 0.044715, %v1730_v8  ;;  %v1640_v10 = vmul.f32 %v5232_v56, %v5232_v56 }
 0x2e3   : > { %6095 = vst [vmem:[#allocation68_spill] sm:$0xff] %v5225_v13  ;;  %v5247_v45 = vadd.f32 %v6100_v32, %v6096_v3  ;;  %v3295_v23 = vpop.eup %3294  ;;  %v1825_v51 = vmul.f32 0.044715, %v1729_v58  ;;  %v1642_v35 = vmul.f32 %v5240_v18, %v5240_v18  ;;  %v5254_v59 = vadd.f32 %v6101_v31, %v6096_v3 }
 0x2e4   : > { %6098 = vst [vmem:[#allocation69_spill] sm:$0xff] %v5235_v30  ;;  %v1920_v21 = vadd.f32 %v1824_v29, %v5199_v16  ;;  %v3297_v50 = vpop.eup %3296  ;;  %v2200_v46 = vadd.f32 1.0, %v3295_v23  ;;  %v1922_v8 = vadd.f32 %v1826_v62, %v5203_v49  ;;  %v1827_v36 = vmul.f32 0.044715, %v1731_v39 }
 0x2e5   : > { %v1736_v48 = vmul.f32 %v1640_v10, %v5232_v56  ;;  %v2202_v42 = vadd.f32 1.0, %v3297_v50  ;;  %v1921_v37 = vadd.f32 %v1825_v51, %v5211_v63  ;;  %v1738_v29 = vmul.f32 %v1642_v35, %v5240_v18 }
 0x2e6   : > { %v2016_v32 = vmul.f32 0.7978846, %v1920_v21  ;;  %v2296_v58 = vmul.f32 0.5, %v2200_v46  ;;  %v2018_v30 = vmul.f32 0.7978846, %v1922_v8  ;;  %v1923_v13 = vadd.f32 %v1827_v36, %v5219_v17 }
 0x2e7   : > { %v1832_v26 = vmul.f32 0.044715, %v1736_v48  ;;  %v2298_v3 = vmul.f32 0.5, %v2202_v42  ;;  %v2017_v31 = vmul.f32 0.7978846, %v1921_v37  ;;  %v1641_v37 = vmul.f32 %v5247_v45, %v5247_v45 }
 0x2e8   : > { %3302 = vtanh.f32 %v2016_v32  ;;  %v1834_v23 = vmul.f32 0.044715, %v1738_v29  ;;  %v5261_v25 = vpop.eup %3298  ;;  %v5264_v62 = vmul.f32 %v2296_v58, %v5142_v19  ;;  %v2019_v39 = vmul.f32 0.7978846, %v1923_v13 }
 0x2e9   : > { %3304 = vtanh.f32 %v2018_v30  ;;  %v1928_v10 = vadd.f32 %v1832_v26, %v5232_v56  ;;  %v5267_v21 = vpop.eup %3300  ;;  %v5270_v51 = vmul.f32 %v2298_v3, %v5147_v14  ;;  %v1643_v19 = vmul.f32 %v5254_v59, %v5254_v59  ;;  %v6102_v3 = vld [vmem:[#allocation96_spill] sm:$0xff] }
 0x2ea   : > { %3306 = vtanh.f32 %v2017_v31  ;;  %v1930_v35 = vadd.f32 %v1834_v23, %v5240_v18  ;;  %v2237_v13 = vadd.f32 1.0, %v4888_v24  ;;  %v1737_v26 = vmul.f32 %v1641_v37, %v5247_v45 }
 0x2eb   : > { %3308 = vtanh.f32 %v2019_v39  ;;  %v2024_v50 = vmul.f32 0.7978846, %v1928_v10  ;;  %v2245_v46 = vadd.f32 1.0, %v4961_v57  ;;  %v2239_v14 = vadd.f32 1.0, %v4941_v38  ;;  %v6103_v39 = vld [vmem:[#allocation102_spill] sm:$0xff] }
 0x2ec   : > { %v2026_v30 = vmul.f32 0.7978846, %v1930_v35  ;;  %v1739_v8 = vmul.f32 %v1643_v19, %v5254_v59  ;;  %v2333_v36 = vmul.f32 0.5, %v2237_v13  ;;  %v2247_v48 = vadd.f32 1.0, %v4969_v55  ;;  %v6105_v19 = vld [vmem:[#allocation97_spill] sm:$0xff] }
 0x2ed   : > { %3310 = vtanh.f32 %v2024_v50  ;;  %v1833_v42 = vmul.f32 0.044715, %v1737_v26  ;;  %v2341_v32 = vmul.f32 0.5, %v2245_v46  ;;  %v2335_v29 = vmul.f32 0.5, %v2239_v14  ;;  %v6104_v50 = vld [vmem:[#allocation66_spill] sm:$0xff]  ;;  %v6107_v46 = vld [vmem:[#allocation99_spill] sm:$0xff] }
 0x2ee   : > { %3312 = vtanh.f32 %v2026_v30  ;;  %v1835_v58 = vmul.f32 0.044715, %v1739_v8  ;;  %v2429_v24 = vmul.f32 %v2333_v36, %v6102_v3  ;;  %v2343_v31 = vmul.f32 0.5, %v2247_v48  ;;  %v6106_v30 = vld [vmem:[#allocation110_spill] sm:$0xff] }
 0x2ef   : > { %v2518_v23 = vpack.c.bf16 %v4981_v9, %v4882_v43  ;;  %v1929_v57 = vadd.f32 %v1833_v42, %v5247_v45  ;;  %v2437_v38 = vmul.f32 %v2341_v32, %v4815_v5  ;;  %v2431_v10 = vmul.f32 %v2335_v29, %v6103_v39 }
 0x2f0   : > { %v2520_v55 = vpack.c.bf16 %v4985_v47, %v4903_v34  ;;  %v1931_v35 = vadd.f32 %v1835_v58, %v5254_v59  ;;  %v2439_v37 = vmul.f32 %v2343_v31, %v4825_v60  ;;  %v5295_v13 = vadd.f32 %v6105_v19, %v6104_v50  ;;  %v6108_v34 = vld [vmem:[#allocation112_spill] sm:$0xff] }
 0x2f1   : > { %v5299_v43 = vadd.f32 %v6106_v30, %v6104_v50  ;;  %v2025_v26 = vmul.f32 0.7978846, %v1929_v57  ;;  %v2519_v5 = vpack.c.bf16 %v2437_v38, %v2429_v24  ;;  %v5303_v14 = vadd.f32 %v6107_v46, %v6104_v50 }
 0x2f2   : > { %v3303_v9 = vpop.eup %3302  ;;  %v5307_v47 = vadd.f32 %v6108_v34, %v6104_v50  ;;  %v2027_v36 = vmul.f32 0.7978846, %v1931_v35  ;;  %v2521_v48 = vpack.c.bf16 %v2439_v37, %v2431_v10  ;;  %v1648_v42 = vmul.f32 %v5295_v13, %v5295_v13  ;;  %v6109_v37 = vld [vmem:[#allocation78_spill] sm:$0xff]  ;;  %v6110_v50 = vld [vmem:[#allocation101_spill] sm:$0xff] }
 0x2f3   : > { %v3305_v60 = vpop.eup %3304  ;;  %v2208_v8 = vadd.f32 1.0, %v3303_v9  ;;  %3314 = vtanh.f32 %v2025_v26  ;;  %2546 = vmatprep.subr.bf16.mxu0 %v2519_v5  ;;  %v1650_v58 = vmul.f32 %v5299_v43, %v5299_v43  ;;  %v1649_v3 = vmul.f32 %v5303_v14, %v5303_v14 }
 0x2f4   : > { %v5311_v32 = vpop.eup %3306  ;;  %v2210_v29 = vadd.f32 1.0, %v3305_v60  ;;  %3316 = vtanh.f32 %v2027_v36  ;;  %2587 = vmatprep.subr.bf16.mxu1 %v2521_v48  ;;  %2547 = vmatpush1.bf16.msra.mxu0 %v2518_v23  ;;  %v1744_v57 = vmul.f32 %v1648_v42, %v5295_v13  ;;  %v1651_v38 = vmul.f32 %v5307_v47, %v5307_v47 }
 0x2f5   : > { %v5317_v24 = vpop.eup %3308  ;;  %v2304_v31 = vmul.f32 0.5, %v2208_v8  ;;  %2588 = vmatpush1.bf16.msra.mxu1 %v2520_v55  ;;  %v1746_v10 = vmul.f32 %v1650_v58, %v5299_v43  ;;  %v1745_v35 = vmul.f32 %v1649_v3, %v5303_v14  ;;  %v5326_v19 = vadd.f32 %v6110_v50, %v6109_v37 }
 0x2f6   : > { %v2306_v39 = vmul.f32 0.5, %v2210_v29  ;;  %v1840_v23 = vmul.f32 0.044715, %v1744_v57  ;;  %v1747_v26 = vmul.f32 %v1651_v38, %v5307_v47  ;;  %v5334_v5 = vadd.f32 %v4857_v54, %v6109_v37 }
 0x2f7   : > { %v3311_v30 = vpop.eup %3310  ;;  %v5329_v9 = vmul.f32 %v2304_v31, %v5199_v16  ;;  %v1842_v60 = vmul.f32 0.044715, %v1746_v10  ;;  %v1841_v8 = vmul.f32 0.044715, %v1745_v35  ;;  %v1656_v16 = vmul.f32 %v5326_v19, %v5326_v19 }
 0x2f8   : > { %v3313_v55 = vpop.eup %3312  ;;  %v5337_v46 = vmul.f32 %v2306_v39, %v5203_v49  ;;  %v2216_v34 = vadd.f32 1.0, %v3311_v30  ;;  %v1936_v48 = vadd.f32 %v1840_v23, %v5295_v13  ;;  %v1843_v42 = vmul.f32 0.044715, %v1747_v26 }
 0x2f9   : > { %v2218_v36 = vadd.f32 1.0, %v3313_v55  ;;  %v1938_v58 = vadd.f32 %v1842_v60, %v5299_v43  ;;  %v1937_v54 = vadd.f32 %v1841_v8, %v5303_v14  ;;  %v1658_v3 = vmul.f32 %v5334_v5, %v5334_v5  ;;  %v6111_v60 = vld [vmem:[#allocation104_spill] sm:$0xff] }
 0x2fa   : > { %v2312_v29 = vmul.f32 0.5, %v2216_v34  ;;  %v2032_v31 = vmul.f32 0.7978846, %v1936_v48  ;;  %v1939_v57 = vadd.f32 %v1843_v42, %v5307_v47  ;;  %v1752_v38 = vmul.f32 %v1656_v16, %v5326_v19 }
 0x2fb   : > { %v2314_v49 = vmul.f32 0.5, %v2218_v36  ;;  %v2034_v10 = vmul.f32 0.7978846, %v1938_v58  ;;  %v2033_v35 = vmul.f32 0.7978846, %v1937_v54  ;;  %v1754_v50 = vmul.f32 %v1658_v3, %v5334_v5 }
 0x2fc   : > { %v5349_v39 = vmul.f32 %v2312_v29, %v5232_v56  ;;  %3318 = vtanh.f32 %v2032_v31  ;;  %v2035_v23 = vmul.f32 0.7978846, %v1939_v57  ;;  %v1848_v26 = vmul.f32 0.044715, %v1752_v38  ;;  %v6112_v56 = vld [vmem:[#allocation114_spill] sm:$0xff] }
 0x2fd   : > { %v5353_v30 = vmul.f32 %v2314_v49, %v5240_v18  ;;  %v5355_v55 = vpop.eup %3314  ;;  %3320 = vtanh.f32 %v2034_v10  ;;  %v1850_v34 = vmul.f32 0.044715, %v1754_v50  ;;  %v5359_v8 = vadd.f32 %v6111_v60, %v6109_v37 }
 0x2fe   : > { %v5363_v36 = vadd.f32 %v6112_v56, %v6109_v37  ;;  %v5365_v48 = vpop.eup %3316  ;;  %3322 = vtanh.f32 %v2033_v35  ;;  %v1944_v18 = vadd.f32 %v1848_v26, %v5326_v19  ;;  %v2253_v42 = vadd.f32 1.0, %v5038_v27 }
 0x2ff   : > { %v2261_v16 = vadd.f32 1.0, %v5060_v52  ;;  %3324 = vtanh.f32 %v2035_v23  ;;  %v1946_v29 = vadd.f32 %v1850_v34, %v5334_v5  ;;  %v1657_v58 = vmul.f32 %v5359_v8, %v5359_v8 }
 0x300   : > { %v1659_v54 = vmul.f32 %v5363_v36, %v5363_v36  ;;  %v2040_v37 = vmul.f32 0.7978846, %v1944_v18  ;;  %v2349_v3 = vmul.f32 0.5, %v2253_v42  ;;  %v2255_v31 = vadd.f32 1.0, %v5044_v0  ;;  %v6113_v42 = vld [vmem:[#allocation85_spill] sm:$0xff] }
 0x301   : > { %v2357_v49 = vmul.f32 0.5, %v2261_v16  ;;  %v2042_v57 = vmul.f32 0.7978846, %v1946_v29  ;;  %v1753_v38 = vmul.f32 %v1657_v58, %v5359_v8  ;;  %v2263_v52 = vadd.f32 1.0, %v5074_v4  ;;  %v6114_v16 = vld [vmem:[#allocation108_spill] sm:$0xff] }
 0x302   : > { %v1755_v27 = vmul.f32 %v1659_v54, %v5363_v36  ;;  %3326 = vtanh.f32 %v2040_v37  ;;  %v2445_v10 = vmul.f32 %v2349_v3, %v4907_v2  ;;  %v2351_v50 = vmul.f32 0.5, %v2255_v31  ;;  %v6120_v37 = vld [vmem:[#allocation98_spill] sm:$0xff] }
 0x303   : > { %v2453_v35 = vmul.f32 %v2357_v49, %v4939_v44  ;;  %3328 = vtanh.f32 %v2042_v57  ;;  %v1849_v23 = vmul.f32 0.044715, %v1753_v38  ;;  %v2359_v34 = vmul.f32 0.5, %v2263_v52 }
 0x304   : > { %v1851_v26 = vmul.f32 0.044715, %v1755_v27  ;;  %v2447_v0 = vmul.f32 %v2351_v50, %v4911_v15  ;;  %v2526_v56 = vpack.c.bf16 %v5064_v11, %v5051_v22  ;;  %v2528_v18 = vpack.c.bf16 %v5068_v28, %v5055_v12  ;;  %v6115_v15 = vld [vmem:[#allocation115_spill] sm:$0xff]  ;;  %v6116_v22 = vld [vmem:[#allocation109_spill] sm:$0xff] }
 0x305   : > { %v2527_v60 = vpack.c.bf16 %v2453_v35, %v2445_v10  ;;  %v1945_v4 = vadd.f32 %v1849_v23, %v5359_v8  ;;  %v2455_v44 = vmul.f32 %v2359_v34, %v4952_v40  ;;  %v5391_v29 = vadd.f32 %v6114_v16, %v6113_v42  ;;  %v6118_v12 = vld [vmem:[#allocation117_spill] sm:$0xff]  ;;  %v6121_v40 = vld [vmem:[#allocation111_spill] sm:$0xff] }
 0x306   : > { %v1947_v2 = vadd.f32 %v1851_v26, %v5363_v36  ;;  %v3319_v58 = vpop.eup %3318  ;;  %v5395_v54 = vadd.f32 %v6115_v15, %v6113_v42  ;;  %v5399_v11 = vadd.f32 %v6116_v22, %v6113_v42  ;;  %v5403_v28 = vadd.f32 %v6118_v12, %v6113_v42 }
 0x307   : > { %2548 = vmatprep.subr.bf16.mxu0 %v2527_v60  ;;  %v5407_v3 = vadd.f32 %v6121_v40, %v6120_v37  ;;  %v3321_v49 = vpop.eup %3320  ;;  %v2224_v31 = vadd.f32 1.0, %v3319_v58  ;;  %v2041_v57 = vmul.f32 0.7978846, %v1945_v4  ;;  %v2529_v27 = vpack.c.bf16 %v2455_v44, %v2447_v0 }
 0x308   : > { %6117 = vst [vmem:[#allocation43_spill] sm:$0xff] %v5399_v11  ;;  %6119 = vst [vmem:[#allocation70_spill] sm:$0xff] %v5403_v28  ;;  %v2043_v38 = vmul.f32 0.7978846, %v1947_v2  ;;  %2549 = vmatpush1.bf16.msra.mxu0 %v2526_v56  ;;  %v5409_v52 = vpop.eup %3322  ;;  %v2226_v10 = vadd.f32 1.0, %v3321_v49  ;;  %v1664_v35 = vmul.f32 %v5391_v29, %v5391_v29  ;;  %v1666_v50 = vmul.f32 %v5395_v54, %v5395_v54 }
 0x309   : > { %v1665_v23 = vmul.f32 %v5399_v11, %v5399_v11  ;;  %v5417_v26 = vpop.eup %3324  ;;  %v2320_v34 = vmul.f32 0.5, %v2224_v31  ;;  %3330 = vtanh.f32 %v2041_v57  ;;  %2589 = vmatprep.subr.bf16.mxu1 %v2529_v27  ;;  %v1667_v60 = vmul.f32 %v5403_v28, %v5403_v28  ;;  %v6123_v27 = vld [vmem:[#allocation113_spill] sm:$0xff] }
 0x30a   : > { %v1672_v0 = vmul.f32 %v5407_v3, %v5407_v3  ;;  %v2322_v56 = vmul.f32 0.5, %v2226_v10  ;;  %3332 = vtanh.f32 %v2043_v38  ;;  %2590 = vmatpush1.bf16.msra.mxu1 %v2528_v18  ;;  %v1760_v4 = vmul.f32 %v1664_v35, %v5391_v29  ;;  %v6122_v18 = vld [vmem:[#allocation119_spill] sm:$0xff] }
 0x30b   : > { %v1762_v2 = vmul.f32 %v1666_v50, %v5395_v54  ;;  %v5426_v44 = vmul.f32 %v2320_v34, %v5295_v13  ;;  %v1761_v42 = vmul.f32 %v1665_v23, %v5399_v11  ;;  %v1763_v16 = vmul.f32 %v1667_v60, %v5403_v28 }
 0x30c   : > { %v1768_v58 = vmul.f32 %v1672_v0, %v5407_v3  ;;  %v3327_v15 = vpop.eup %3326  ;;  %v5432_v22 = vmul.f32 %v2322_v56, %v5299_v43  ;;  %v1856_v12 = vmul.f32 0.044715, %v1760_v4  ;;  %v5436_v49 = vadd.f32 %v6122_v18, %v6120_v37 }
 0x30d   : > { %v1858_v40 = vmul.f32 0.044715, %v1762_v2  ;;  %v3329_v31 = vpop.eup %3328  ;;  %v2232_v57 = vadd.f32 1.0, %v3327_v15  ;;  %v1857_v13 = vmul.f32 0.044715, %v1761_v42  ;;  %v5440_v10 = vadd.f32 %v6123_v27, %v6120_v37  ;;  %v6125_v27 = vld [vmem:[#allocation120_spill] sm:$0xff] }
 0x30e   : > { %v1859_v38 = vmul.f32 0.044715, %v1763_v16  ;;  %v2234_v35 = vadd.f32 1.0, %v3329_v31  ;;  %v1952_v50 = vadd.f32 %v1856_v12, %v5391_v29  ;;  %v1864_v23 = vmul.f32 0.044715, %v1768_v58 }
 0x30f   : > { %6124 = vst [vmem:[#allocation74_spill] sm:$0xff] %v5440_v10  ;;  %v1954_v43 = vadd.f32 %v1858_v40, %v5395_v54  ;;  %v2328_v34 = vmul.f32 0.5, %v2232_v57  ;;  %v1953_v60 = vadd.f32 %v1857_v13, %v5399_v11  ;;  %v1674_v56 = vmul.f32 %v5436_v49, %v5436_v49 }
 0x310   : > { %v1955_v0 = vadd.f32 %v1859_v38, %v5403_v28  ;;  %v2330_v4 = vmul.f32 0.5, %v2234_v35  ;;  %v2048_v2 = vmul.f32 0.7978846, %v1952_v50  ;;  %v1960_v16 = vadd.f32 %v1864_v23, %v5407_v3 }
 0x311   : > { %v2050_v42 = vmul.f32 0.7978846, %v1954_v43  ;;  %v5450_v15 = vmul.f32 %v2328_v34, %v5326_v19  ;;  %v2049_v12 = vmul.f32 0.7978846, %v1953_v60  ;;  %v1770_v58 = vmul.f32 %v1674_v56, %v5436_v49 }
 0x312   : > { %v2051_v18 = vmul.f32 0.7978846, %v1955_v0  ;;  %v5454_v40 = vmul.f32 %v2330_v4, %v5334_v5  ;;  %3334 = vtanh.f32 %v2048_v2  ;;  %v2056_v31 = vmul.f32 0.7978846, %v1960_v16  ;;  %v5477_v4 = vld [vmem:[%s5749_s5] sm:$0x1] }
 0x313   : > { %v1673_v57 = vmul.f32 %v5440_v10, %v5440_v10  ;;  %v5458_v13 = vpop.eup %3330  ;;  %3336 = vtanh.f32 %v2050_v42  ;;  %v1866_v38 = vmul.f32 0.044715, %v1770_v58  ;;  %v5462_v19 = vadd.f32 %v6125_v27, %v6120_v37  ;;  %6127 = vst [vmem:[#allocation92_spill] sm:$0xff] %v5477_v4  ;;  %v6128_v2 = vld [vmem:[#allocation72_spill] sm:$0xff]  ;;  %3087 = vmatmul.mubr.msk.bf16.vlgmr.msra.gmra.mrb[72].mxu0 %vm2534_vm3, %v5477_v4  ;;  %3088 = vmatmul.mubr.msk.bf16.vlgmr.msra.gmra.mrb[72].mxu1 %vm2534_vm3, %v5477_v4 }
 0x314   : > { %v2177_v35 = vadd.f32 1.0, %v5121_v61  ;;  %v5465_v50 = vpop.eup %3332  ;;  %3338 = vtanh.f32 %v2049_v12  ;;  %v2185_v43 = vadd.f32 1.0, %v5171_v7  ;;  %v2179_v23 = vadd.f32 1.0, %v5126_v33 }
 0x315   : > { %6126 = vst [vmem:[#allocation76_spill] sm:$0xff] %v5462_v19  ;;  %v1769_v5 = vmul.f32 %v1673_v57, %v5440_v10  ;;  %3340 = vtanh.f32 %v2051_v18  ;;  %v1962_v34 = vadd.f32 %v1866_v38, %v5436_v49  ;;  %v1675_v60 = vmul.f32 %v5462_v19, %v5462_v19 }
 0x316   : > { %v2273_v0 = vmul.f32 0.5, %v2177_v35  ;;  %3342 = vtanh.f32 %v2056_v31  ;;  %v2281_v56 = vmul.f32 0.5, %v2185_v43  ;;  %v2187_v61 = vadd.f32 1.0, %v5176_v20  ;;  %v6129_v20 = vld [vmem:[#allocation38_spill] sm:$0xff] }
 0x317   : > { %v1865_v37 = vmul.f32 0.044715, %v1769_v5  ;;  %v2058_v7 = vmul.f32 0.7978846, %v1962_v34  ;;  %v1771_v33 = vmul.f32 %v1675_v60, %v5462_v19  ;;  %v2275_v16 = vmul.f32 0.5, %v2179_v23  ;;  %v6130_v5 = vld [vmem:[#allocation41_spill] sm:$0xff] }
 0x318   : > { %v2369_v42 = vmul.f32 %v2273_v0, %v6128_v2  ;;  %v2377_v18 = vmul.f32 %v2281_v56, %v5072_v1  ;;  %v2283_v58 = vmul.f32 0.5, %v2187_v61  ;;  %v2490_v38 = vpack.c.bf16 %v5153_v6, %v5133_v53  ;;  %v6131_v1 = vld [vmem:[#allocation67_spill] sm:$0xff]  ;;  %v6132_v23 = vld [vmem:[#allocation65_spill] sm:$0xff] }
 0x319   : > { %v1961_v12 = vadd.f32 %v1865_v37, %v5440_v10  ;;  %3344 = vtanh.f32 %v2058_v7  ;;  %v1867_v31 = vmul.f32 0.044715, %v1771_v33  ;;  %v2371_v57 = vmul.f32 %v2275_v16, %v6129_v20  ;;  %v6134_v37 = vld [vmem:[#allocation116_spill] sm:$0xff]  ;;  %v6135_v56 = vld [vmem:[#allocation121_spill] sm:$0xff]  ;;  %v6136_v7 = vld [vmem:[#allocation122_spill] sm:$0xff] }
 0x31a   : > { %v2491_v35 = vpack.c.bf16 %v2377_v18, %v2369_v42  ;;  %v2379_v43 = vmul.f32 %v2283_v58, %v6130_v5  ;;  %v2492_v34 = vpack.c.bf16 %v6132_v23, %v6131_v1  ;;  %v6133_v60 = vmov 0   ;;  %v6137_v6 = vld [vmem:[#allocation123_spill] sm:$0xff]  ;;  %v6139_v16 = vld [vmem:[#allocation124_spill] sm:$0xff]  ;;  %v6141_v18 = vld [vmem:[#allocation118_spill] sm:$0xff] }
 0x31b   : > { %v2057_v27 = vmul.f32 0.7978846, %v1961_v12  ;;  %2652 = vmatprep.mubr.bf16.mxu0 %v6133_v60  ;;  %2693 = vmatprep.mubr.bf16.mxu1 %v6133_v60  ;;  %v1963_v0 = vadd.f32 %v1867_v31, %v5462_v19  ;;  %v5498_v61 = vadd.f32 %v6135_v56, %v6134_v37  ;;  %v5502_v53 = vadd.f32 %v6136_v7, %v6134_v37  ;;  %v6142_v58 = vld [vmem:[#allocation125_spill] sm:$0xff] }
 0x31c   : > { %v5506_v33 = vadd.f32 %v6137_v6, %v6134_v37  ;;  %v3335_v2 = vpop.eup %3334  ;;  %2620 = vmatprep.subr.bf16.mxu0 %v2491_v35  ;;  %v2493_v42 = vpack.c.bf16 %v2379_v43, %v2371_v57  ;;  %v5510_v12 = vadd.f32 %v6139_v16, %v6134_v37  ;;  %v5514_v31 = vadd.f32 %v6142_v58, %v6141_v18 }
 0x31d   : > { %3346 = vtanh.f32 %v2057_v27  ;;  %v3337_v20 = vpop.eup %3336  ;;  %v2240_v5 = vadd.f32 1.0, %v3335_v2  ;;  %v2059_v1 = vmul.f32 0.7978846, %v1963_v0  ;;  %2621 = vmatpush1.bf16.msra.mxu0 %v2490_v38  ;;  %v1680_v23 = vmul.f32 %v5498_v61, %v5498_v61 }
 0x31e   : > { %6138 = vst [vmem:[#allocation83_spill] sm:$0xff] %v5506_v33  ;;  %6140 = vst [vmem:[#allocation59_spill] sm:$0xff] %v5510_v12  ;;  %v1682_v27 = vmul.f32 %v5502_v53, %v5502_v53  ;;  %v5520_v35 = vpop.eup %3338  ;;  %v2242_v57 = vadd.f32 1.0, %v3337_v20  ;;  %2661 = vmatprep.subr.bf16.mxu1 %v2493_v42  ;;  %v1681_v43 = vmul.f32 %v5506_v33, %v5506_v33 }
 0x31f   : > { %v1683_v37 = vmul.f32 %v5510_v12, %v5510_v12  ;;  %v1688_v0 = vmul.f32 %v5514_v31, %v5514_v31  ;;  %v5528_v38 = vpop.eup %3340  ;;  %v2336_v56 = vmul.f32 0.5, %v2240_v5  ;;  %3348 = vtanh.f32 %v2059_v1  ;;  %2662 = vmatpush1.bf16.msra.mxu1 %v2492_v34 }
 0x320   : > { %v1776_v7 = vmul.f32 %v1680_v23, %v5498_v61  ;;  %v1778_v6 = vmul.f32 %v1682_v27, %v5502_v53  ;;  %v3343_v2 = vpop.eup %3342  ;;  %v2338_v42 = vmul.f32 0.5, %v2242_v57  ;;  %v1777_v16 = vmul.f32 %v1681_v43, %v5506_v33 }
 0x321   : > { %v1779_v58 = vmul.f32 %v1683_v37, %v5510_v12  ;;  %v1784_v20 = vmul.f32 %v1688_v0, %v5514_v31  ;;  %v5536_v60 = vmul.f32 %v2336_v56, %v5391_v29  ;;  %v2248_v4 = vadd.f32 1.0, %v3343_v2  ;;  %v6143_v0 = vld [vmem:[#allocation126_spill] sm:$0xff] }
 0x322   : > { %v1872_v19 = vmul.f32 0.044715, %v1776_v7  ;;  %v1874_v5 = vmul.f32 0.044715, %v1778_v6  ;;  %v5539_v34 = vmul.f32 %v2338_v42, %v5395_v54  ;;  %v1873_v1 = vmul.f32 0.044715, %v1777_v16 }
 0x323   : > { %v1875_v23 = vmul.f32 0.044715, %v1779_v58  ;;  %v1880_v27 = vmul.f32 0.044715, %v1784_v20  ;;  %v3345_v28 = vpop.eup %3344  ;;  %v2344_v57 = vmul.f32 0.5, %v2248_v4  ;;  %v5545_v10 = vadd.f32 %v6143_v0, %v6141_v18 }
 0x324   : > { %v1968_v43 = vadd.f32 %v1872_v19, %v5498_v61  ;;  %v1970_v37 = vadd.f32 %v1874_v5, %v5502_v53  ;;  %v2250_v29 = vadd.f32 1.0, %v3345_v28  ;;  %v1969_v56 = vadd.f32 %v1873_v1, %v5506_v33  ;;  %v6144_v28 = vld [vmem:[#allocation127_spill] sm:$0xff] }
 0x325   : > { %v1971_v7 = vadd.f32 %v1875_v23, %v5510_v12  ;;  %v1976_v54 = vadd.f32 %v1880_v27, %v5514_v31  ;;  %v5551_v6 = vmul.f32 %v2344_v57, %v5407_v3  ;;  %v1690_v19 = vmul.f32 %v5545_v10, %v5545_v10  ;;  %v6145_v3 = vld [vmem:[#allocation128_spill] sm:$0xff] }
 0x326   : > { %v2064_v2 = vmul.f32 0.7978846, %v1968_v43  ;;  %v2066_v4 = vmul.f32 0.7978846, %v1970_v37  ;;  %v2346_v16 = vmul.f32 0.5, %v2250_v29  ;;  %v5559_v5 = vadd.f32 %v6144_v28, %v6141_v18 }
 0x327   : > { %v5555_v42 = vpop.eup %3346  ;;  %v2065_v58 = vmul.f32 0.7978846, %v1969_v56  ;;  %v2067_v20 = vmul.f32 0.7978846, %v1971_v7  ;;  %v2072_v1 = vmul.f32 0.7978846, %v1976_v54  ;;  %v1786_v23 = vmul.f32 %v1690_v19, %v5545_v10 }
 0x328   : > { %3350 = vtanh.f32 %v2064_v2  ;;  %v5564_v27 = vadd.f32 %v6145_v3, %v6141_v18  ;;  %v5567_v57 = vmul.f32 %v2346_v16, %v5436_v49  ;;  %v1689_v43 = vmul.f32 %v5559_v5, %v5559_v5  ;;  %v6146_v54 = vld [vmem:[#allocation57_spill] sm:$0xff] }
 0x329   : > { %3352 = vtanh.f32 %v2066_v4  ;;  %v2193_v37 = vadd.f32 1.0, %v5205_v41  ;;  %v5572_v0 = vpop.eup %3348  ;;  %v1882_v29 = vmul.f32 0.044715, %v1786_v23  ;;  %v2201_v7 = vadd.f32 1.0, %v5261_v25 }
 0x32a   : > { %3354 = vtanh.f32 %v2065_v58  ;;  %v1691_v56 = vmul.f32 %v5564_v27, %v5564_v27  ;;  %v1785_v18 = vmul.f32 %v1689_v43, %v5559_v5  ;;  %v2195_v2 = vadd.f32 1.0, %v6146_v54  ;;  %v6147_v58 = vld [vmem:[#allocation39_spill] sm:$0xff]  ;;  %v6149_v43 = vld [vmem:[#allocation68_spill] sm:$0xff] }
 0x32b   : > { %3356 = vtanh.f32 %v2067_v20  ;;  %v2289_v49 = vmul.f32 0.5, %v2193_v37  ;;  %v1978_v4 = vadd.f32 %v1882_v29, %v5545_v10  ;;  %v2297_v19 = vmul.f32 0.5, %v2201_v7  ;;  %v6148_v20 = vld [vmem:[#allocation58_spill] sm:$0xff] }
 0x32c   : > { %3358 = vtanh.f32 %v2072_v1  ;;  %v1787_v41 = vmul.f32 %v1691_v56, %v5564_v27  ;;  %v1881_v16 = vmul.f32 0.044715, %v1785_v18  ;;  %v2203_v23 = vadd.f32 1.0, %v5267_v21  ;;  %v6150_v29 = vld [vmem:[#allocation62_spill] sm:$0xff]  ;;  %v6151_v56 = vld [vmem:[#allocation69_spill] sm:$0xff] }
 0x32d   : > { %v2385_v28 = vmul.f32 %v2289_v49, %v6147_v58  ;;  %v2291_v3 = vmul.f32 0.5, %v2195_v2  ;;  %v2074_v12 = vmul.f32 0.7978846, %v1978_v4  ;;  %v2393_v33 = vmul.f32 %v2297_v19, %v6148_v20  ;;  %v6152_v4 = vld [vmem:[#allocation73_spill] sm:$0xff] }
 0x32e   : > { %v1883_v25 = vmul.f32 0.044715, %v1787_v41  ;;  %v2498_v37 = vpack.c.bf16 %v5264_v62, %v6149_v43  ;;  %v1977_v1 = vadd.f32 %v1881_v16, %v5559_v5  ;;  %v2299_v54 = vmul.f32 0.5, %v2203_v23 }
 0x32f   : > { %v2387_v11 = vmul.f32 %v2291_v3, %v6150_v29  ;;  %v2500_v7 = vpack.c.bf16 %v5270_v51, %v6151_v56  ;;  %3360 = vtanh.f32 %v2074_v12  ;;  %v2499_v21 = vpack.c.bf16 %v2393_v33, %v2385_v28 }
 0x330   : > { %v1979_v18 = vadd.f32 %v1883_v25, %v5564_v27  ;;  %v2209_v49 = vadd.f32 1.0, %v5311_v32  ;;  %v2073_v2 = vmul.f32 0.7978846, %v1977_v1  ;;  %v2395_v41 = vmul.f32 %v2299_v54, %v6152_v4 }
 0x331   : > { %v2217_v19 = vadd.f32 1.0, %v5355_v55  ;;  %v2211_v62 = vadd.f32 1.0, %v5317_v24  ;;  %2622 = vmatprep.subr.bf16.mxu0 %v2499_v21  ;;  %v2219_v3 = vadd.f32 1.0, %v5365_v48  ;;  %v2506_v51 = vpack.c.bf16 %v5349_v39, %v5329_v9 }
 0x332   : > { %v3351_v16 = vpop.eup %3350  ;;  %v2075_v58 = vmul.f32 0.7978846, %v1979_v18  ;;  %v2305_v23 = vmul.f32 0.5, %v2209_v49  ;;  %3362 = vtanh.f32 %v2073_v2  ;;  %v2501_v32 = vpack.c.bf16 %v2395_v41, %v2387_v11  ;;  %2623 = vmatpush1.bf16.msra.mxu0 %v2498_v37 }
 0x333   : > { %v3353_v12 = vpop.eup %3352  ;;  %v2256_v33 = vadd.f32 1.0, %v3351_v16  ;;  %v2313_v28 = vmul.f32 0.5, %v2217_v19  ;;  %v2307_v20 = vmul.f32 0.5, %v2211_v62  ;;  %v2315_v9 = vmul.f32 0.5, %v2219_v3 }
 0x334   : > { %v5598_v25 = vpop.eup %3354  ;;  %v2258_v55 = vadd.f32 1.0, %v3353_v12  ;;  %3364 = vtanh.f32 %v2075_v58  ;;  %v2401_v24 = vmul.f32 %v2305_v23, %v5211_v63  ;;  %2663 = vmatprep.subr.bf16.mxu1 %v2501_v32  ;;  %v2508_v39 = vpack.c.bf16 %v5353_v30, %v5337_v46  ;;  %v6153_v12 = vld [vmem:[#allocation43_spill] sm:$0xff]  ;;  %v6154_v32 = vld [vmem:[#allocation74_spill] sm:$0xff] }
 0x335   : > { %v5601_v43 = vpop.eup %3356  ;;  %v2352_v1 = vmul.f32 0.5, %v2256_v33  ;;  %v2409_v48 = vmul.f32 %v2313_v28, %v5247_v45  ;;  %2664 = vmatpush1.bf16.msra.mxu1 %v2500_v7  ;;  %v2403_v54 = vmul.f32 %v2307_v20, %v5219_v17  ;;  %v2225_v29 = vadd.f32 1.0, %v5409_v52 }
 0x336   : > { %v3359_v11 = vpop.eup %3358  ;;  %v2354_v37 = vmul.f32 0.5, %v2258_v55  ;;  %v2233_v63 = vadd.f32 1.0, %v5458_v13  ;;  %v2411_v45 = vmul.f32 %v2315_v9, %v5254_v59  ;;  %v2227_v7 = vadd.f32 1.0, %v5417_v26 }
 0x337   : > { %v5610_v56 = vmul.f32 %v2352_v1, %v5498_v61  ;;  %v2264_v18 = vadd.f32 1.0, %v3359_v11  ;;  %v2507_v21 = vpack.c.bf16 %v2409_v48, %v2401_v24  ;;  %v2321_v46 = vmul.f32 0.5, %v2225_v29  ;;  %v6156_v1 = vld [vmem:[#allocation76_spill] sm:$0xff] }
 0x338   : > { %v5614_v49 = vmul.f32 %v2354_v37, %v5502_v53  ;;  %v2329_v30 = vmul.f32 0.5, %v2233_v63  ;;  %v2509_v17 = vpack.c.bf16 %v2411_v45, %v2403_v54  ;;  %v2235_v52 = vadd.f32 1.0, %v5465_v50 }
 0x339   : > { %v2360_v2 = vmul.f32 0.5, %v2264_v18  ;;  %2624 = vmatprep.subr.bf16.mxu0 %v2507_v21  ;;  %v2514_v13 = vpack.c.bf16 %v5450_v15, %v5426_v44  ;;  %v3361_v61 = vpop.eup %3360  ;;  %v2417_v4 = vmul.f32 %v2321_v46, %v5303_v14  ;;  %v2323_v53 = vmul.f32 0.5, %v2227_v7  ;;  %v6159_v46 = vld [vmem:[#allocation10_spill] sm:$0xff]  ;;  %v6161_v7 = vld [vmem:[#allocation11_spill] sm:$0xff] }
 0x33a   : > { %2625 = vmatpush1.bf16.msra.mxu0 %v2506_v51  ;;  %v2425_v59 = vmul.f32 %v2329_v30, %v5359_v8  ;;  %v2516_v41 = vpack.c.bf16 %v5454_v40, %v5432_v22  ;;  %v2266_v19 = vadd.f32 1.0, %v3361_v61  ;;  %2665 = vmatprep.subr.bf16.mxu1 %v2509_v17  ;;  %v2331_v62 = vmul.f32 0.5, %v2235_v52  ;;  %v6164_v52 = vld [vmem:[#allocation12_spill] sm:$0xff] }
 0x33b   : > { %v2456_v26 = vmul.f32 %v2360_v2, %v5514_v31  ;;  %v2241_v50 = vadd.f32 1.0, %v5520_v35  ;;  %2666 = vmatpush1.bf16.msra.mxu1 %v2508_v39  ;;  %v2419_v44 = vmul.f32 %v2323_v53, %v5307_v47  ;;  %v2249_v15 = vadd.f32 1.0, %v5555_v42  ;;  %v6162_v2 = vld [vmem:[#allocation7_spill] sm:$0xff]  ;;  %v6166_v61 = vld [vmem:[#allocation4_spill] sm:$0xff]  ;;  %v6169_v53 = vld [vmem:[#allocation13_spill] sm:$0xff] }
 0x33c   : > { %v2515_v16 = vpack.c.bf16 %v2425_v59, %v2417_v4  ;;  %v2243_v14 = vadd.f32 1.0, %v5528_v38  ;;  %v3363_v8 = vpop.eup %3362  ;;  %v2362_v58 = vmul.f32 0.5, %v2266_v19  ;;  %v2427_v23 = vmul.f32 %v2331_v62, %v5363_v36  ;;  %v6167_v4 = vld [vmem:[#allocation2_spill] sm:$0xff]  ;;  %v6171_v19 = vld [vmem:[#allocation5_spill] sm:$0xff]  ;;  %v6172_v62 = vld [vmem:[#allocation3_spill] sm:$0xff] }
 0x33d   : > { %v2337_v22 = vmul.f32 0.5, %v2241_v50  ;;  %v2251_v40 = vadd.f32 1.0, %v5572_v0  ;;  %v2345_v3 = vmul.f32 0.5, %v2249_v15  ;;  %v2522_v35 = vpack.c.bf16 %v5551_v6, %v5536_v60  ;;  %v6155_v0 = vld [vmem:[#allocation70_spill] sm:$0xff]  ;;  %v6176_v15 = vld [vmem:[#allocation24_spill] sm:$0xff] }
 0x33e   : > { %v3365_v31 = vpop.eup %3364  ;;  %2626 = vmatprep.subr.bf16.mxu0 %v2515_v16  ;;  %v2339_v51 = vmul.f32 0.5, %v2243_v14  ;;  %v2524_v47 = vpack.c.bf16 %v5567_v57, %v5539_v34  ;;  %v2458_v42 = vmul.f32 %v2362_v58, %v5545_v10  ;;  %v2517_v38 = vpack.c.bf16 %v2427_v23, %v2419_v44  ;;  %v6175_v44 = vld [vmem:[#allocation20_spill] sm:$0xff] }
 0x33f   : > { %2627 = vmatpush1.bf16.msra.mxu0 %v2514_v13  ;;  %v2433_v33 = vmul.f32 %v2337_v22, %v6153_v12  ;;  %v2347_v36 = vmul.f32 0.5, %v2251_v40  ;;  %v2441_v28 = vmul.f32 %v2345_v3, %v6154_v32  ;;  %v2257_v24 = vadd.f32 1.0, %v5598_v25  ;;  %v6157_v25 = vld [vmem:[#allocation83_spill] sm:$0xff]  ;;  %v6178_v58 = vld [vmem:[#allocation8_spill] sm:$0xff]  ;;  %v6180_v22 = vld [vmem:[#allocation21_spill] sm:$0xff] }
 0x340   : > { %v2435_v55 = vmul.f32 %v2339_v51, %v6155_v0  ;;  %v2265_v20 = vadd.f32 1.0, %v3363_v8  ;;  %2667 = vmatprep.subr.bf16.mxu1 %v2517_v38  ;;  %v2259_v6 = vadd.f32 1.0, %v5601_v43  ;;  %v2267_v34 = vadd.f32 1.0, %v3365_v31  ;;  %v6158_v43 = vld [vmem:[#allocation59_spill] sm:$0xff]  ;;  %v6177_v8 = vld [vmem:[#allocation14_spill] sm:$0xff]  ;;  %v6181_v40 = vld [vmem:[#allocation25_spill] sm:$0xff] }
 0x341   : > { %v2443_v60 = vmul.f32 %v2347_v36, %v6156_v1  ;;  %v2530_v10 = vpack.c.bf16 %v2456_v26, %v5610_v56  ;;  %2668 = vmatpush1.bf16.msra.mxu1 %v2516_v41  ;;  %v2523_v57 = vpack.c.bf16 %v2441_v28, %v2433_v33  ;;  %v2353_v48 = vmul.f32 0.5, %v2257_v24  ;;  %v6170_v41 = vld [vmem:[#allocation17_spill] sm:$0xff]  ;;  %v6182_v3 = vld [vmem:[#allocation15_spill] sm:$0xff]  ;;  %v6187_v12 = vld [vmem:[#allocation22_spill] sm:$0xff] }
 0x342   : > { %v2361_v9 = vmul.f32 0.5, %v2265_v20  ;;  %v2532_v39 = vpack.c.bf16 %v2458_v42, %v5614_v49  ;;  %v2355_v37 = vmul.f32 0.5, %v2259_v6  ;;  %v2363_v54 = vmul.f32 0.5, %v2267_v34  ;;  %v6160_v49 = vld [vmem:[#allocation6_spill] sm:$0xff]  ;;  %v6183_v51 = vld [vmem:[#allocation9_spill] sm:$0xff]  ;;  %v6186_v42 = vld [vmem:[#allocation32_spill] sm:$0xff] }
 0x343   : > { %v2525_v11 = vpack.c.bf16 %v2443_v60, %v2435_v55  ;;  %2628 = vmatprep.subr.bf16.mxu0 %v2523_v57  ;;  %v2449_v29 = vmul.f32 %v2353_v48, %v6157_v25  ;;  %v2462_v30 = vpack.c.bf16 %v6160_v49, %v6159_v46  ;;  %v2464_v17 = vpack.c.bf16 %v6162_v2, %v6161_v7  ;;  %v6188_v33 = vld [vmem:[#allocation18_spill] sm:$0xff]  ;;  %v6190_v32 = vld [vmem:[#allocation31_spill] sm:$0xff]  ;;  %v6191_v28 = vld [vmem:[#allocation33_spill] sm:$0xff] }
 0x344   : > { %v2457_v63 = vmul.f32 %v2361_v9, %v5559_v5  ;;  %2629 = vmatpush1.bf16.msra.mxu0 %v2522_v35  ;;  %v2451_v18 = vmul.f32 %v2355_v37, %v6158_v43  ;;  %v2459_v56 = vmul.f32 %v2363_v54, %v5564_v27  ;;  %v6163_v5 = vld [vmem:[#allocation92_spill] sm:$0xff]  ;;  %v6168_v59 = vpack.c.bf16 %v6166_v61, %v6167_v4  ;;  %v2460_v55 = vld [vmem:[%s5750_s6] sm:$0x1]  ;;  %v6192_v24 = vld [vmem:[#allocation23_spill] sm:$0xff] }
 0x345   : > { %2669 = vmatprep.subr.bf16.mxu1 %v2525_v11  ;;  %v6165_v27 = vld [vmem:[#allocation16_spill] sm:$0xff]  ;;  %v2472_v26 = vpack.c.bf16 %v6170_v41, %v6169_v53  ;;  %v6173_v50 = vpack.c.bf16 %v6171_v19, %v6172_v62  ;;  %v6174_v16 = vmov 0   ;;  %v2478_v14 = vpack.c.bf16 %v6176_v15, %v6175_v44  ;;  %v6193_v20 = vld [vmem:[#allocation19_spill] sm:$0xff]  ;;  %v6198_v57 = vld [vmem:[#allocation26_spill] sm:$0xff] }
 0x346   : > { %2670 = vmatpush1.bf16.msra.mxu1 %v2524_v47  ;;  %v2531_v21 = vpack.c.bf16 %v2457_v63, %v2449_v29  ;;  %v2533_v45 = vpack.c.bf16 %v2459_v56, %v2451_v18  ;;  %v2470_v13 = vpack.c.bf16 %v6165_v27, %v6164_v52  ;;  %v6179_v23 = vpack.c.bf16 %v6177_v8, %v6178_v58  ;;  %v6185_v47 = vld [vmem:[#allocation30_spill] sm:$0xff]  ;;  %v6195_v60 = vld [vmem:[#allocation36_spill] sm:$0xff]  ;;  %v6196_v6 = vld [vmem:[#allocation47_spill] sm:$0xff] }
 0x347   : > { %v2480_v31 = vpack.c.bf16 %v6181_v40, %v6180_v22  ;;  %v6184_v35 = vpack.c.bf16 %v6182_v3, %v6183_v51  ;;  %v2466_v38 = vpack.c.bf16 %v6186_v42, %v6185_v47  ;;  %v6189_v36 = vpack.c.bf16 %v6187_v12, %v6188_v33  ;;  %v6200_v9 = vld [vmem:[#allocation37_spill] sm:$0xff]  ;;  %v6202_v37 = vld [vmem:[#allocation28_spill] sm:$0xff]  ;;  %v6206_v63 = vld [vmem:[#allocation34_spill] sm:$0xff]  ;;  %v2873_v51 = vpop.permute.xlu0 %2872 }
 0x348   : > { %2630 = vmatprep.subr.bf16.mxu0 %v2531_v21  ;;  %2671 = vmatprep.subr.bf16.mxu1 %v2533_v45  ;;  %v2468_v0 = vpack.c.bf16 %v6191_v28, %v6190_v32  ;;  %v6194_v1 = vpack.c.bf16 %v6192_v24, %v6193_v20  ;;  %v2474_v34 = vpack.c.bf16 %v6196_v6, %v6195_v60  ;;  %v6203_v54 = vld [vmem:[#allocation29_spill] sm:$0xff]  ;;  %v6205_v29 = vld [vmem:[#allocation44_spill] sm:$0xff]  ;;  %v6209_v56 = vld [vmem:[#allocation35_spill] sm:$0xff]  ;;  %v3407_v40 = vmov 1983009808  }
 0x349   : > { %2631 = vmatpush1.bf16.msra.mxu0 %v2530_v10  ;;  %v6197_v10 = vld [vmem:[#allocation27_spill] sm:$0xff]  ;;  %v6204_v25 = vpack.c.bf16 %v6202_v37, %v6203_v54  ;;  %v6207_v43 = vpack.c.bf16 %v6205_v29, %v6206_v63  ;;  %v6208_v18 = vld [vmem:[#allocation45_spill] sm:$0xff]  ;;  %v6215_v7 = vld [vmem:[#allocation52_spill] sm:$0xff]  ;;  %v2896_v3 = vlaneseq }
 0x34a   : > { %2672 = vmatpush1.bf16.msra.mxu1 %v2532_v39  ;;  %2705 = vmatprep.subr.bf16.mxu0 %v2462_v30  ;;  %v6199_v48 = vpack.c.bf16 %v6197_v10, %v6198_v57  ;;  %v6201_v39 = vld [vmem:[#allocation48_spill] sm:$0xff]  ;;  %v6210_v21 = vpack.c.bf16 %v6208_v18, %v6209_v56  ;;  %v6211_v45 = vld [vmem:[#allocation55_spill] sm:$0xff]  ;;  %v6220_v27 = vld [vmem:[#allocation54_spill] sm:$0xff] }
 0x34b   : > { %2746 = vmatprep.subr.bf16.mxu1 %v2464_v17  ;;  %v2476_v11 = vpack.c.bf16 %v6201_v39, %v6200_v9  ;;  %v6212_v46 = vld [vmem:[#allocation51_spill] sm:$0xff]  ;;  %v6214_v30 = vld [vmem:[#allocation56_spill] sm:$0xff]  ;;  %v6217_v17 = vld [vmem:[#allocation53_spill] sm:$0xff]  ;;  %v2897_v42 = vshrl.u32 %v2896_v3, 7 }
 0x34c   : > { %3089 = vmatmul.mubr.msk.bf16.vlgmr.msra.gmra.mrb[76].mxu0 %vm2534_vm3, %v6163_v5  ;;  %v6213_v49 = vpack.c.bf16 %v6211_v45, %v6212_v46  ;;  %v6216_v2 = vpack.c.bf16 %v6214_v30, %v6215_v7 }
 0x34d   : > { %3090 = vmatmul.mubr.msk.bf16.vlgmr.msra.gmra.mrb[76].mxu1 %vm2534_vm3, %v6163_v5  ;;  %2706 = vmatpush1.bf16.msra.mxu0 %v6168_v59  ;;  %v6218_v5 = vld [vmem:[#allocation49_spill] sm:$0xff] }
 0x34e   : > { %2747 = vmatpush1.bf16.msra.mxu1 %v6173_v50  ;;  %2707 = vmatprep.subr.bf16.mxu0 %v2470_v13  ;;  %v6219_v52 = vpack.c.bf16 %v6217_v17, %v6218_v5  ;;  %v6221_v13 = vld [vmem:[#allocation50_spill] sm:$0xff] }
 0x34f   : > { %2748 = vmatprep.subr.bf16.mxu1 %v2472_v26  ;;  %2737 = vmatprep.mubr.bf16.mxu0 %v6174_v16  ;;  %v6222_v61 = vpack.c.bf16 %v6220_v27, %v6221_v13 }
 0x350   : > { %2778 = vmatprep.mubr.bf16.mxu1 %v6174_v16 }
 0x351   : > { %2708 = vmatpush1.bf16.msra.mxu0 %v6179_v23 }
 0x352   : > { %2749 = vmatpush1.bf16.msra.mxu1 %v6184_v35  ;;  %2709 = vmatprep.subr.bf16.mxu0 %v2478_v14 }
 0x353   : > { %2750 = vmatprep.subr.bf16.mxu1 %v2480_v31  ;;  %v2894_v31 = vunpack.c.l.s4 %v3407_v40 }
 0x355   : > { %2710 = vmatpush1.bf16.msra.mxu0 %v6189_v36  ;;  %v2895_v47 = vunpack.c.0.s8 %v2894_v31 }
 0x356   : > { %2751 = vmatpush1.bf16.msra.mxu1 %v6194_v1  ;;  %2787 = vmatprep.subr.bf16.mxu0 %v2466_v38 }
 0x357   : > { %2828 = vmatprep.subr.bf16.mxu1 %v2468_v0 }
 0x358   : > { %3091 = vmatmul.mubr.msk.bf16.vlgmr.msra.gmra.mrb[80].mxu0 %vm1205_vm2, %v2460_v55 }
 0x359   : > { %3092 = vmatmul.mubr.msk.bf16.vlgmr.msra.gmra.mrb[80].mxu1 %vm1205_vm2, %v2460_v55  ;;  %2788 = vmatpush1.bf16.msra.mxu0 %v6199_v48 }
 0x35a   : > { %2829 = vmatpush1.bf16.msra.mxu1 %v6204_v25  ;;  %2789 = vmatprep.subr.bf16.mxu0 %v2474_v34  ;;  %v2898_v34 = vsub.s32 %v2895_v47, %v2897_v42 }
 0x35b   : > { %2830 = vmatprep.subr.bf16.mxu1 %v2476_v11  ;;  %2819 = vmatprep.mubr.bf16.mxu0 %v6174_v16 }
 0x35c   : > { %2860 = vmatprep.mubr.bf16.mxu1 %v6174_v16 }
 0x35d   : > { %2790 = vmatpush1.bf16.msra.mxu0 %v6207_v43 }
 0x35e   : > { %2831 = vmatpush1.bf16.msra.mxu1 %v6210_v21  ;;  %2791 = vmatprep.subr.bf16.mxu0 %v6213_v49 }
 0x35f   : > { %2832 = vmatprep.subr.bf16.mxu1 %v6216_v2 }
 0x361   : > { %2792 = vmatpush1.bf16.msra.mxu0 %v6219_v52 }
 0x362   : > { %2833 = vmatpush1.bf16.msra.mxu1 %v6222_v61 }
 0x364   : > { %3093 = vmatmul.mubr.msk.bf16.vlgmr.msra.gmra.mrb[84].mxu0 %vm1205_vm2, %v2460_v55 }
 0x365   : > { %3094 = vmatmul.mubr.msk.bf16.vlgmr.msra.gmra.mrb[84].mxu1 %vm1205_vm2, %v2460_v55 }
 0x3e6   : > { %v2572_v4 = vpop.f32.mrb[72].mxu0  ;;  %v2613_v59 = vpop.f32.mrb[72].mxu1 }
 0x3e7   : > { %v2574_v53 = vpop.f32.mrb[73].mxu0  ;;  %v2615_v41 = vpop.f32.mrb[73].mxu1 }
 0x3e8   : > { %v2576_v26 = vpop.f32.mrb[74].mxu0  ;;  %v2617_v19 = vpop.f32.mrb[74].mxu1 }
 0x3e9   : > { %v2577_v62 = vpop.f32.mrb[75].mxu0  ;;  %v2618_v50 = vpop.f32.mrb[75].mxu1 }
 0x41f   : > { %v2654_v16 = vpop.f32.mrb[76].mxu0 }
 0x420   : > { %v2695_v44 = vpop.f32.mrb[76].mxu1  ;;  %v2656_v15 = vpop.f32.mrb[77].mxu0 }
 0x421   : > { %v2697_v14 = vpop.f32.mrb[77].mxu1  ;;  %v2658_v8 = vpop.f32.mrb[78].mxu0 }
 0x422   : > { %v2699_v58 = vpop.f32.mrb[78].mxu1  ;;  %v2659_v23 = vpop.f32.mrb[79].mxu0 }
 0x423   : > { %v2700_v22 = vpop.f32.mrb[79].mxu1 }
 0x42b   : > { %v2739_v35 = vpop.f32.mrb[80].mxu0 }
 0x42c   : > { %v2740_v38 = vadd.f32 %v2739_v35, %v2572_v4  ;;  %v2780_v12 = vpop.f32.mrb[80].mxu1  ;;  %v2741_v33 = vpop.f32.mrb[81].mxu0 }
 0x42d   : > { %v2781_v36 = vadd.f32 %v2780_v12, %v2613_v59  ;;  %v2742_v32 = vadd.f32 %v2741_v33, %v2574_v53  ;;  %v2782_v28 = vpop.f32.mrb[81].mxu1  ;;  %v2743_v0 = vpop.f32.mrb[82].mxu0 }
 0x42e   : > { %v2875_v55 = vadd.f32 %v2873_v51, %v2740_v38  ;;  %v2783_v24 = vadd.f32 %v2782_v28, %v2615_v41  ;;  %v2784_v20 = vpop.f32.mrb[82].mxu1  ;;  %v2744_v1 = vpop.f32.mrb[83].mxu0 }
 0x42f   : > { %v2877_v60 = vadd.f32 %v2873_v51, %v2781_v36  ;;  %v2876_v6 = vadd.f32 %v2873_v51, %v2742_v32  ;;  %v2785_v10 = vpop.f32.mrb[83].mxu1 }
 0x430   : > { %v2878_v57 = vadd.f32 %v2873_v51, %v2783_v24 }
 0x431   : > { %v2891_v48 = vcombine.low %v2875_v55, %v2876_v6 }
 0x432   : > { %v2892_v9 = vcombine.low %v2877_v60, %v2878_v57 }
 0x433   : > { %v2899_v39 = vrot.slane %v2891_v48, %v2898_v34 }
 0x434   : > { %v2906_v11 = vrot.slane %v2892_v9, %v2898_v34 }
 0x436   : > { %v2907_v37 = vcombine.low %v2899_v39, %v2906_v11 }
 0x437   : > { %v2821_v54 = vpop.f32.mrb[84].mxu0 }
 0x438   : > { %2927 = vst [vmem:[%s343_s17] sm:$0xff] %v2907_v37  ;;  %v2822_v25 = vadd.f32 %v2821_v54, %v2654_v16  ;;  %v2862_v29 = vpop.f32.mrb[84].mxu1  ;;  %v2823_v63 = vpop.f32.mrb[85].mxu0 }
 0x439   : > { %v2863_v43 = vadd.f32 %v2862_v29, %v2695_v44  ;;  %v2824_v18 = vadd.f32 %v2823_v63, %v2656_v15  ;;  %v2864_v56 = vpop.f32.mrb[85].mxu1  ;;  %v2825_v21 = vpop.f32.mrb[86].mxu0 }
 0x43a   : > { %v2879_v45 = vadd.f32 %v2873_v51, %v2822_v25  ;;  %v2865_v46 = vadd.f32 %v2864_v56, %v2697_v14  ;;  %v2866_v49 = vpop.f32.mrb[86].mxu1  ;;  %v2826_v30 = vpop.f32.mrb[87].mxu0 }
 0x43b   : > { %v2881_v7 = vadd.f32 %v2873_v51, %v2863_v43  ;;  %v2880_v2 = vadd.f32 %v2873_v51, %v2824_v18  ;;  %v2867_v17 = vpop.f32.mrb[87].mxu1 }
 0x43c   : > { %v2882_v5 = vadd.f32 %v2873_v51, %v2865_v46 }
 0x43d   : > { %v2908_v52 = vcombine.low %v2879_v45, %v2880_v2 }
 0x43e   : > { %v2909_v27 = vcombine.low %v2881_v7, %v2882_v5 }
 0x43f   : > { %v2916_v13 = vrot.slane %v2908_v52, %v2898_v34 }
 0x440   : > { %v2923_v61 = vrot.slane %v2909_v27, %v2898_v34 }
 0x442   : > { %v2924_v4 = vcombine.low %v2916_v13, %v2923_v61 }
 0x444   : > { %2928 = vst [vmem:[%s343_s17 + $0x8] sm:$0xff] %v2924_v4 }
 0x445 PF: > { %s18_s9 = sadd.s32 1, %s3404_s9   ;;  %s6223_s27 = smov %s3396_s29 }
 0x446   : > { %p15_p7 = scmp.ge.s32.totalorder %s18_s9, 10   ;;  %s6224_s28 = smov %s3400_s30 }
 0x447   : > { %s6225_s29 = smov %s6228_s10  ;;  %s6226_s30 = smov %s6232_s11 }
 0x448   :  { %17 = sbr.rel (!%p15_p7) target bundleno = 3 (0x3), region = 82 }

</bundles_post_ra>
